<compile_context>
chip_gen: v7x
topology: tpu7x:2x2x1
jax: 0.10.0
libtpu: 0.0.40
codegen_flags: <defaults>
</compile_context>

<pallas_src>
import functools

import numpy as np
import jax
import jax.numpy as jnp
from jax import lax
from jax.experimental import pallas as pl
from jax.experimental.pallas import tpu as pltpu

BN_EPS = 1e-5


# ----------------------------------------------------------------------------
# Fused Pallas kernel
# ----------------------------------------------------------------------------
def _block_post(y4, bias, gamma, beta):
    """MaxPool2x2 (over the 4 fused pool positions) + bias + BN(train) + ReLU.

    y4    : (4*M, C) conv pre-activations, rows ordered (pool_pos, b, yo, xo)
    bias, gamma, beta : (1, C)
    returns (M, C)
    """
    four_m, _ = y4.shape
    M = four_m // 4
    # MaxPool2d(2): elementwise max over the 4 pool positions (static slices).
    m = jnp.maximum(jnp.maximum(y4[0 * M:1 * M], y4[1 * M:2 * M]),
                    jnp.maximum(y4[2 * M:3 * M], y4[3 * M:4 * M]))
    # Bias is per-channel -> adding it once after the max is exact.
    m = m + bias
    # One-pass batch statistics (biased variance, training-mode BatchNorm).
    mean = jnp.mean(m, axis=0, keepdims=True)
    mean_sq = jnp.mean(m * m, axis=0, keepdims=True)
    var = jnp.maximum(mean_sq - mean * mean, 0.0)
    y = (m - mean) * lax.rsqrt(var + BN_EPS)
    y = y * gamma + beta
    return jnp.maximum(y, 0.0)


def make_fused_kernel(num_layers):
    """Builds the single fused kernel for the whole network.

    Ref order:
      x1,                                  # (4*M1, 9)  im2col'd + pool-grouped input
      w1, b1, g1, be1,                     # layer 1 params
      [sel_k, wst_k, b_k, g_k, be_k] * (num_layers - 1),
      w_head, b_head,
      o_ref                                # (B, num_classes)
    """

    def kernel(*refs):
        it = iter(refs)
        x1_ref = next(it)
        w1_ref, b1_ref, g1_ref, be1_ref = (next(it) for _ in range(4))

        # ---- layer 1: all 4 pool positions fused into the M dim of ONE
        # MXU matmul (4*M1, 9) @ (9, C).
        y = jnp.dot(x1_ref[...], w1_ref[...],
                    preferred_element_type=jnp.float32)
        act = _block_post(y, b1_ref[...], g1_ref[...], be1_ref[...])

        # ---- layers 2..L: fully VMEM-resident.  For each 3x3 patch offset j,
        #   xj = sel[j] @ act      (one-hot row gather = im2col + pool-group,
        #                           all 4 pool positions fused in the row dim)
        #   y += xj @ w[j]         (conv contribution of offset j)
        for _ in range(num_layers - 1):
            sel_ref, w_ref, b_ref, g_ref, be_ref = (next(it) for _ in range(5))
            y = None
            for j in range(9):  # patch offsets (dh, dw), unrolled
                xj = jnp.dot(sel_ref[j], act,
                             preferred_element_type=jnp.float32)
                t = jnp.dot(xj, w_ref[j], preferred_element_type=jnp.float32)
                y = t if y is None else y + t
            act = _block_post(y, b_ref[...], g_ref[...], be_ref[...])

        # ---- linear head (single-head): (B, C) @ (C, num_classes) + bias.
        wh_ref, bh_ref, o_ref = next(it), next(it), next(it)
        o_ref[...] = (jnp.dot(act, wh_ref[...],
                              preferred_element_type=jnp.float32)
                      + bh_ref[...])

    return kernel


# ----------------------------------------------------------------------------
# One-time parameter / selection-matrix preparation (outside jit)
# ----------------------------------------------------------------------------
def build_pool_im2col_selectors(batch, hi, wi):
    """One-hot matrices S (9, 4*Mo, Mi) such that S[j] @ act gathers, for
    3x3 patch offset j=(dh,dw), the pool-grouped im2col rows of the next layer.

    act rows are ordered (b, y, x) over (batch, hi, wi); output rows are
    ordered (pool_pos, b, yo, xo) with pool_pos = py*2 + px.  Out-of-bounds
    (SAME padding) rows are all-zero.
    """
    ho, wo = hi // 2, wi // 2
    mo = batch * ho * wo
    mi = batch * hi * wi
    sel = np.zeros((9, 4 * mo, mi), np.float32)
    for dh in range(3):
        for dw in range(3):
            j = dh * 3 + dw
            for p in range(4):
                py, px = p // 2, p % 2
                for b in range(batch):
                    for yo in range(ho):
                        y = 2 * yo + py + dh - 1
                        if y < 0 or y >= hi:
                            continue
                        for xo in range(wo):
                            x = 2 * xo + px + dw - 1
                            if x < 0 or x >= wi:
                                continue
                            r = ((p * batch + b) * ho + yo) * wo + xo
                            c = (b * hi + y) * wi + x
                            sel[j, r, c] = 1.0
    return sel


def prepare_params(conv_params, head_params, batch, imsize):
    """Hoists all weight layout work out of the jitted forward (done once)."""
    h, w = imsize
    num_layers = len(conv_params)
    assert h % (2 ** num_layers) == 0 and w % (2 ** num_layers) == 0
    assert h // (2 ** num_layers) == 1 and w // (2 ** num_layers) == 1, \
        "imsize must reduce to 1x1 after the pooling stack"

    args = []
    # Layer 1: single (9*Cin, Cout) matrix, K ordered (dh, dw, cin).
    w0, b0, g0, be0 = conv_params[0]
    cout, cin0 = w0.shape[0], w0.shape[1]
    w1 = jnp.transpose(w0, (2, 3, 1, 0)).reshape(9 * cin0, cout)
    args += [w1, b0.reshape(1, cout), g0.reshape(1, cout), be0.reshape(1, cout)]

    hi, wi = h // 2, w // 2  # spatial size of layer-2 input
    for (wk, bk, gk, bek) in conv_params[1:]:
        co, ci = wk.shape[0], wk.shape[1]
        sel = jnp.asarray(build_pool_im2col_selectors(batch, hi, wi))
        wst = jnp.transpose(wk, (2, 3, 1, 0)).reshape(9, ci, co)
        args += [sel, wst, bk.reshape(1, co), gk.reshape(1, co),
                 bek.reshape(1, co)]
        hi, wi = hi // 2, wi // 2

    w_h, b_h = head_params
    args += [w_h.T, b_h.reshape(1, -1)]
    return tuple(args)


# ----------------------------------------------------------------------------
# Forward pass (jitted): tiny layer-1 im2col glue + one pallas_call
# ----------------------------------------------------------------------------
def _im2col_pool_layer1(x_nhwc):
    """(B,H,W,Cin) -> (4*B*(H//2)*(W//2), 9*Cin); rows (pool_pos, b, yo, xo)."""
    B, H, W, Cin = x_nhwc.shape
    xp = jnp.pad(x_nhwc, ((0, 0), (1, 1), (1, 1), (0, 0)))
    patches = [xp[:, dh:dh + H, dw:dw + W, :] for dh in range(3) for dw in range(3)]
    pat = jnp.stack(patches, axis=3).reshape(B, H, W, 9 * Cin)
    Ho, Wo = H // 2, W // 2
    pat = pat.reshape(B, Ho, 2, Wo, 2, 9 * Cin)
    pat = pat.transpose(2, 4, 0, 1, 3, 5)        # (py, px, B, Ho, Wo, K)
    return pat.reshape(4 * B * Ho * Wo, 9 * Cin)


def omniconv_forward(x_nchw, prepared):
    # UnSqueeze: add channel dim if input is 3-d.
    if x_nchw.ndim == 3:
        x_nchw = x_nchw[:, None]
    B = x_nchw.shape[0]
    num_layers = (len(prepared) - 1) // 5
    num_classes = prepared[-1].shape[-1]

    x_nhwc = jnp.transpose(x_nchw, (0, 2, 3, 1))      # NCHW -> NHWC
    x1 = _im2col_pool_layer1(x_nhwc)                  # (4*M1, 9*Cin)

    in_args = (x1,) + tuple(prepared)
    in_specs = [pl.BlockSpec(tuple(a.shape), (lambda i, n=a.ndim: (0,) * n))
                for a in in_args]

    kernel = make_fused_kernel(num_layers)
    out = pl.pallas_call(
        kernel,
        grid=(1,),
        in_specs=in_specs,
        out_specs=pl.BlockSpec((B, num_classes), lambda i: (0, 0)),
        out_shape=jax.ShapeDtypeStruct((B, num_classes), jnp.float32),
        compiler_params=pltpu.CompilerParams(dimension_semantics=("arbitrary",)),
    )(*in_args)
    return out


# ----------------------------------------------------------------------------
# Pure-JAX reference (for verification only)
# ----------------------------------------------------------------------------
def reference_forward(x_nchw, conv_params, head_params):
    if x_nchw.ndim == 3:
        x_nchw = x_nchw[:, None]
    x = jnp.transpose(x_nchw, (0, 2, 3, 1))
    for (w_oihw, b, g, beta) in conv_params:
        w_hwio = jnp.transpose(w_oihw, (2, 3, 1, 0))
        y = lax.conv_general_dilated(
            x, w_hwio, (1, 1), "SAME",
            dimension_numbers=("NHWC", "HWIO", "NHWC")) + b
        y = lax.reduce_window(y, -jnp.inf, lax.max,
                              (1, 2, 2, 1), (1, 2, 2, 1), "VALID")
        mean = jnp.mean(y, axis=(0, 1, 2), keepdims=True)
        var = jnp.mean(jnp.square(y - mean), axis=(0, 1, 2), keepdims=True)
        y = (y - mean) * lax.rsqrt(var + BN_EPS) * g + beta
        x = jnp.maximum(y, 0.0)
    feat = x.reshape(x.shape[0], -1)
    w_h, b_h = head_params
    return feat @ w_h.T + b_h


# ----------------------------------------------------------------------------
# Deterministic parameter init (synthetic; shapes follow the PyTorch module)
# ----------------------------------------------------------------------------
def init_params(key, num_layers=4, num_filters=32, num_classes=10):
    conv_params = []
    cin = 1
    for _ in range(num_layers):
        key, k1, k2 = jax.random.split(key, 3)
        w = 0.1 * jax.random.normal(k1, (num_filters, cin, 3, 3), jnp.float32)  # OIHW
        b = 0.1 * jax.random.normal(k2, (num_filters,), jnp.float32)
        gamma = jnp.ones((num_filters,), jnp.float32)   # BatchNorm2d defaults
        beta = jnp.zeros((num_filters,), jnp.float32)
        conv_params.append((w, b, gamma, beta))
        cin = num_filters
    key, k1, k2 = jax.random.split(key, 3)
    w_head = 0.1 * jax.random.normal(k1, (num_classes, num_filters), jnp.float32)
    b_head = 0.1 * jax.random.normal(k2, (num_classes,), jnp.float32)
    return conv_params, (w_head, b_head)


if __name__ == "__main__":
    # Small shapes consistent with the module: batch=2, 1 input channel,
    # imsize=(16,16), num_layers=4, num_filters=32, num_classes=10, single head.
    key = jax.random.PRNGKey(0)
    key, kx = jax.random.split(key)
    B, H, W = 2, 16, 16
    NUM_LAYERS, NUM_FILTERS, NUM_CLASSES_SMALL = 4, 32, 10

    x = jax.random.normal(kx, (B, 1, H, W), jnp.float32)  # NCHW like PyTorch
    conv_params, head_params = init_params(
        key, num_layers=NUM_LAYERS, num_filters=NUM_FILTERS,
        num_classes=NUM_CLASSES_SMALL)

    # One-time parameter preparation (layout work hoisted out of the forward).
    prepared = prepare_params(conv_params, head_params, B, (H, W))

    fwd = jax.jit(omniconv_forward)
    out = jax.block_until_ready(fwd(x, prepared))

    ref = reference_forward(x, conv_params, head_params)
    assert out.shape == (B, NUM_CLASSES_SMALL), out.shape
    if not jnp.allclose(out, ref, rtol=2e-2, atol=2e-2):
        raise AssertionError(
            f"Pallas kernel mismatch vs reference: max err "
            f"{float(jnp.max(jnp.abs(out - ref)))}")

    print("KERNEL_OK")
</pallas_src>

<mosaic_0001>
module attributes {stable_mosaic.version = 11 : i64} {
  func.func @kernel(%arg0: i32, %arg1: memref<512x9xf32, #tpu.memory_space<vmem>>, %arg2: memref<9x32xf32, #tpu.memory_space<vmem>>, %arg3: memref<1x32xf32, #tpu.memory_space<vmem>>, %arg4: memref<1x32xf32, #tpu.memory_space<vmem>>, %arg5: memref<1x32xf32, #tpu.memory_space<vmem>>, %arg6: memref<9x128x128xf32, #tpu.memory_space<vmem>>, %arg7: memref<9x32x32xf32, #tpu.memory_space<vmem>>, %arg8: memref<1x32xf32, #tpu.memory_space<vmem>>, %arg9: memref<1x32xf32, #tpu.memory_space<vmem>>, %arg10: memref<1x32xf32, #tpu.memory_space<vmem>>, %arg11: memref<9x32x32xf32, #tpu.memory_space<vmem>>, %arg12: memref<9x32x32xf32, #tpu.memory_space<vmem>>, %arg13: memref<1x32xf32, #tpu.memory_space<vmem>>, %arg14: memref<1x32xf32, #tpu.memory_space<vmem>>, %arg15: memref<1x32xf32, #tpu.memory_space<vmem>>, %arg16: memref<9x8x8xf32, #tpu.memory_space<vmem>>, %arg17: memref<9x32x32xf32, #tpu.memory_space<vmem>>, %arg18: memref<1x32xf32, #tpu.memory_space<vmem>>, %arg19: memref<1x32xf32, #tpu.memory_space<vmem>>, %arg20: memref<1x32xf32, #tpu.memory_space<vmem>>, %arg21: memref<32x10xf32, #tpu.memory_space<vmem>>, %arg22: memref<1x10xf32, #tpu.memory_space<vmem>>, %arg23: memref<2x10xf32, #tpu.memory_space<vmem>>) attributes {dimension_semantics = [#tpu.dimension_semantics<arbitrary>], iteration_bounds = array<i64: 1>, scalar_prefetch = 0 : i64, scratch_operands = 0 : i64, tpu.core_type = #tpu.core_type<tc>, window_params = [{pipeline_mode = #tpu.pipeline_mode<synchronous>, transform_indices = @transform_0, window_bounds = array<i64: 512, 9>}, {pipeline_mode = #tpu.pipeline_mode<synchronous>, transform_indices = @transform_1, window_bounds = array<i64: 9, 32>}, {pipeline_mode = #tpu.pipeline_mode<synchronous>, transform_indices = @transform_2, window_bounds = array<i64: 1, 32>}, {pipeline_mode = #tpu.pipeline_mode<synchronous>, transform_indices = @transform_3, window_bounds = array<i64: 1, 32>}, {pipeline_mode = #tpu.pipeline_mode<synchronous>, transform_indices = @transform_4, window_bounds = array<i64: 1, 32>}, {pipeline_mode = #tpu.pipeline_mode<synchronous>, transform_indices = @transform_5, window_bounds = array<i64: 9, 128, 128>}, {pipeline_mode = #tpu.pipeline_mode<synchronous>, transform_indices = @transform_6, window_bounds = array<i64: 9, 32, 32>}, {pipeline_mode = #tpu.pipeline_mode<synchronous>, transform_indices = @transform_7, window_bounds = array<i64: 1, 32>}, {pipeline_mode = #tpu.pipeline_mode<synchronous>, transform_indices = @transform_8, window_bounds = array<i64: 1, 32>}, {pipeline_mode = #tpu.pipeline_mode<synchronous>, transform_indices = @transform_9, window_bounds = array<i64: 1, 32>}, {pipeline_mode = #tpu.pipeline_mode<synchronous>, transform_indices = @transform_10, window_bounds = array<i64: 9, 32, 32>}, {pipeline_mode = #tpu.pipeline_mode<synchronous>, transform_indices = @transform_11, window_bounds = array<i64: 9, 32, 32>}, {pipeline_mode = #tpu.pipeline_mode<synchronous>, transform_indices = @transform_12, window_bounds = array<i64: 1, 32>}, {pipeline_mode = #tpu.pipeline_mode<synchronous>, transform_indices = @transform_13, window_bounds = array<i64: 1, 32>}, {pipeline_mode = #tpu.pipeline_mode<synchronous>, transform_indices = @transform_14, window_bounds = array<i64: 1, 32>}, {pipeline_mode = #tpu.pipeline_mode<synchronous>, transform_indices = @transform_15, window_bounds = array<i64: 9, 8, 8>}, {pipeline_mode = #tpu.pipeline_mode<synchronous>, transform_indices = @transform_16, window_bounds = array<i64: 9, 32, 32>}, {pipeline_mode = #tpu.pipeline_mode<synchronous>, transform_indices = @transform_17, window_bounds = array<i64: 1, 32>}, {pipeline_mode = #tpu.pipeline_mode<synchronous>, transform_indices = @transform_18, window_bounds = array<i64: 1, 32>}, {pipeline_mode = #tpu.pipeline_mode<synchronous>, transform_indices = @transform_19, window_bounds = array<i64: 1, 32>}, {pipeline_mode = #tpu.pipeline_mode<synchronous>, transform_indices = @transform_20, window_bounds = array<i64: 32, 10>}, {pipeline_mode = #tpu.pipeline_mode<synchronous>, transform_indices = @transform_21, window_bounds = array<i64: 1, 10>}, {pipeline_mode = #tpu.pipeline_mode<synchronous>, transform_indices = @transform_22, window_bounds = array<i64: 2, 10>}]} {
    %c0 = arith.constant 0 : index
    %c0_0 = arith.constant 0 : index
    %0 = vector.load %arg1[%c0, %c0_0] : memref<512x9xf32, #tpu.memory_space<vmem>>, vector<512x9xf32>
    %c0_1 = arith.constant 0 : index
    %c0_2 = arith.constant 0 : index
    %1 = vector.load %arg2[%c0_1, %c0_2] : memref<9x32xf32, #tpu.memory_space<vmem>>, vector<9x32xf32>
    %cst = arith.constant dense<0.000000e+00> : vector<512x32xf32>
    %2 = tpu.matmul %0, %1, %cst {dimension_numbers = #tpu.dot_dimension_numbers<[1], [0], [0], [1], [0, 0, 1, 1], [], []>} : vector<512x9xf32>, vector<9x32xf32>, vector<512x32xf32> -> vector<512x32xf32>
    %c0_3 = arith.constant 0 : index
    %c0_4 = arith.constant 0 : index
    %3 = vector.load %arg3[%c0_3, %c0_4] : memref<1x32xf32, #tpu.memory_space<vmem>>, vector<1x32xf32>
    %c0_5 = arith.constant 0 : index
    %c0_6 = arith.constant 0 : index
    %4 = vector.load %arg4[%c0_5, %c0_6] : memref<1x32xf32, #tpu.memory_space<vmem>>, vector<1x32xf32>
    %c0_7 = arith.constant 0 : index
    %c0_8 = arith.constant 0 : index
    %5 = vector.load %arg5[%c0_7, %c0_8] : memref<1x32xf32, #tpu.memory_space<vmem>>, vector<1x32xf32>
    %6 = vector.extract_strided_slice %2 {offsets = [0, 0], sizes = [128, 32], strides = [1, 1]} : vector<512x32xf32> to vector<128x32xf32>
    %7 = vector.extract_strided_slice %2 {offsets = [128, 0], sizes = [128, 32], strides = [1, 1]} : vector<512x32xf32> to vector<128x32xf32>
    %8 = arith.maximumf %6, %7 : vector<128x32xf32>
    %9 = vector.extract_strided_slice %2 {offsets = [256, 0], sizes = [128, 32], strides = [1, 1]} : vector<512x32xf32> to vector<128x32xf32>
    %10 = vector.extract_strided_slice %2 {offsets = [384, 0], sizes = [128, 32], strides = [1, 1]} : vector<512x32xf32> to vector<128x32xf32>
    %11 = arith.maximumf %9, %10 : vector<128x32xf32>
    %12 = arith.maximumf %8, %11 : vector<128x32xf32>
    %13 = vector.broadcast %3 : vector<1x32xf32> to vector<128x32xf32>
    %14 = arith.addf %12, %13 : vector<128x32xf32>
    %cst_9 = arith.constant dense<0.000000e+00> : vector<32xf32>
    %15 = vector.multi_reduction <add>, %14, %cst_9 [0] : vector<128x32xf32> to vector<32xf32>
    %16 = vector.shape_cast %15 : vector<32xf32> to vector<1x32xf32>
    %cst_10 = arith.constant 1.280000e+02 : f32
    %17 = vector.broadcast %cst_10 : f32 to vector<1x32xf32>
    %18 = arith.divf %16, %17 : vector<1x32xf32>
    %19 = arith.mulf %14, %14 : vector<128x32xf32>
    %cst_11 = arith.constant dense<0.000000e+00> : vector<32xf32>
    %20 = vector.multi_reduction <add>, %19, %cst_11 [0] : vector<128x32xf32> to vector<32xf32>
    %21 = vector.shape_cast %20 : vector<32xf32> to vector<1x32xf32>
    %cst_12 = arith.constant 1.280000e+02 : f32
    %22 = vector.broadcast %cst_12 : f32 to vector<1x32xf32>
    %23 = arith.divf %21, %22 : vector<1x32xf32>
    %24 = arith.mulf %18, %18 : vector<1x32xf32>
    %25 = arith.subf %23, %24 : vector<1x32xf32>
    %cst_13 = arith.constant 0.000000e+00 : f32
    %26 = vector.broadcast %cst_13 : f32 to vector<1x32xf32>
    %27 = arith.maximumf %25, %26 : vector<1x32xf32>
    %28 = vector.broadcast %18 : vector<1x32xf32> to vector<128x32xf32>
    %29 = arith.subf %14, %28 : vector<128x32xf32>
    %cst_14 = arith.constant 9.99999974E-6 : f32
    %30 = vector.broadcast %cst_14 : f32 to vector<1x32xf32>
    %31 = arith.addf %27, %30 : vector<1x32xf32>
    %32 = math.rsqrt %31 : vector<1x32xf32>
    %33 = vector.broadcast %32 : vector<1x32xf32> to vector<128x32xf32>
    %34 = arith.mulf %29, %33 : vector<128x32xf32>
    %35 = vector.broadcast %4 : vector<1x32xf32> to vector<128x32xf32>
    %36 = arith.mulf %34, %35 : vector<128x32xf32>
    %37 = vector.broadcast %5 : vector<1x32xf32> to vector<128x32xf32>
    %38 = arith.addf %36, %37 : vector<128x32xf32>
    %cst_15 = arith.constant 0.000000e+00 : f32
    %39 = vector.broadcast %cst_15 : f32 to vector<128x32xf32>
    %40 = arith.maximumf %38, %39 : vector<128x32xf32>
    %c0_16 = arith.constant 0 : index
    %c0_17 = arith.constant 0 : index
    %c0_18 = arith.constant 0 : index
    %41 = vector.load %arg6[%c0_16, %c0_17, %c0_18] : memref<9x128x128xf32, #tpu.memory_space<vmem>>, vector<1x128x128xf32>
    %42 = vector.shape_cast %41 : vector<1x128x128xf32> to vector<128x128xf32>
    %cst_19 = arith.constant dense<0.000000e+00> : vector<128x32xf32>
    %43 = tpu.matmul %42, %40, %cst_19 {dimension_numbers = #tpu.dot_dimension_numbers<[1], [0], [0], [1], [0, 0, 1, 1], [], []>} : vector<128x128xf32>, vector<128x32xf32>, vector<128x32xf32> -> vector<128x32xf32>
    %c0_20 = arith.constant 0 : index
    %c0_21 = arith.constant 0 : index
    %c0_22 = arith.constant 0 : index
    %44 = vector.load %arg7[%c0_20, %c0_21, %c0_22] : memref<9x32x32xf32, #tpu.memory_space<vmem>>, vector<1x32x32xf32>
    %45 = vector.shape_cast %44 : vector<1x32x32xf32> to vector<32x32xf32>
    %cst_23 = arith.constant dense<0.000000e+00> : vector<128x32xf32>
    %46 = tpu.matmul %43, %45, %cst_23 {dimension_numbers = #tpu.dot_dimension_numbers<[1], [0], [0], [1], [0, 0, 1, 1], [], []>} : vector<128x32xf32>, vector<32x32xf32>, vector<128x32xf32> -> vector<128x32xf32>
    %c1 = arith.constant 1 : index
    %c0_24 = arith.constant 0 : index
    %c0_25 = arith.constant 0 : index
    %47 = vector.load %arg6[%c1, %c0_24, %c0_25] : memref<9x128x128xf32, #tpu.memory_space<vmem>>, vector<1x128x128xf32>
    %48 = vector.shape_cast %47 : vector<1x128x128xf32> to vector<128x128xf32>
    %cst_26 = arith.constant dense<0.000000e+00> : vector<128x32xf32>
    %49 = tpu.matmul %48, %40, %cst_26 {dimension_numbers = #tpu.dot_dimension_numbers<[1], [0], [0], [1], [0, 0, 1, 1], [], []>} : vector<128x128xf32>, vector<128x32xf32>, vector<128x32xf32> -> vector<128x32xf32>
    %c1_27 = arith.constant 1 : index
    %c0_28 = arith.constant 0 : index
    %c0_29 = arith.constant 0 : index
    %50 = vector.load %arg7[%c1_27, %c0_28, %c0_29] : memref<9x32x32xf32, #tpu.memory_space<vmem>>, vector<1x32x32xf32>
    %51 = vector.shape_cast %50 : vector<1x32x32xf32> to vector<32x32xf32>
    %cst_30 = arith.constant dense<0.000000e+00> : vector<128x32xf32>
    %52 = tpu.matmul %49, %51, %cst_30 {dimension_numbers = #tpu.dot_dimension_numbers<[1], [0], [0], [1], [0, 0, 1, 1], [], []>} : vector<128x32xf32>, vector<32x32xf32>, vector<128x32xf32> -> vector<128x32xf32>
    %53 = arith.addf %46, %52 : vector<128x32xf32>
    %c2 = arith.constant 2 : index
    %c0_31 = arith.constant 0 : index
    %c0_32 = arith.constant 0 : index
    %54 = vector.load %arg6[%c2, %c0_31, %c0_32] : memref<9x128x128xf32, #tpu.memory_space<vmem>>, vector<1x128x128xf32>
    %55 = vector.shape_cast %54 : vector<1x128x128xf32> to vector<128x128xf32>
    %cst_33 = arith.constant dense<0.000000e+00> : vector<128x32xf32>
    %56 = tpu.matmul %55, %40, %cst_33 {dimension_numbers = #tpu.dot_dimension_numbers<[1], [0], [0], [1], [0, 0, 1, 1], [], []>} : vector<128x128xf32>, vector<128x32xf32>, vector<128x32xf32> -> vector<128x32xf32>
    %c2_34 = arith.constant 2 : index
    %c0_35 = arith.constant 0 : index
    %c0_36 = arith.constant 0 : index
    %57 = vector.load %arg7[%c2_34, %c0_35, %c0_36] : memref<9x32x32xf32, #tpu.memory_space<vmem>>, vector<1x32x32xf32>
    %58 = vector.shape_cast %57 : vector<1x32x32xf32> to vector<32x32xf32>
    %cst_37 = arith.constant dense<0.000000e+00> : vector<128x32xf32>
    %59 = tpu.matmul %56, %58, %cst_37 {dimension_numbers = #tpu.dot_dimension_numbers<[1], [0], [0], [1], [0, 0, 1, 1], [], []>} : vector<128x32xf32>, vector<32x32xf32>, vector<128x32xf32> -> vector<128x32xf32>
    %60 = arith.addf %53, %59 : vector<128x32xf32>
    %c3 = arith.constant 3 : index
    %c0_38 = arith.constant 0 : index
    %c0_39 = arith.constant 0 : index
    %61 = vector.load %arg6[%c3, %c0_38, %c0_39] : memref<9x128x128xf32, #tpu.memory_space<vmem>>, vector<1x128x128xf32>
    %62 = vector.shape_cast %61 : vector<1x128x128xf32> to vector<128x128xf32>
    %cst_40 = arith.constant dense<0.000000e+00> : vector<128x32xf32>
    %63 = tpu.matmul %62, %40, %cst_40 {dimension_numbers = #tpu.dot_dimension_numbers<[1], [0], [0], [1], [0, 0, 1, 1], [], []>} : vector<128x128xf32>, vector<128x32xf32>, vector<128x32xf32> -> vector<128x32xf32>
    %c3_41 = arith.constant 3 : index
    %c0_42 = arith.constant 0 : index
    %c0_43 = arith.constant 0 : index
    %64 = vector.load %arg7[%c3_41, %c0_42, %c0_43] : memref<9x32x32xf32, #tpu.memory_space<vmem>>, vector<1x32x32xf32>
    %65 = vector.shape_cast %64 : vector<1x32x32xf32> to vector<32x32xf32>
    %cst_44 = arith.constant dense<0.000000e+00> : vector<128x32xf32>
    %66 = tpu.matmul %63, %65, %cst_44 {dimension_numbers = #tpu.dot_dimension_numbers<[1], [0], [0], [1], [0, 0, 1, 1], [], []>} : vector<128x32xf32>, vector<32x32xf32>, vector<128x32xf32> -> vector<128x32xf32>
    %67 = arith.addf %60, %66 : vector<128x32xf32>
    %c4 = arith.constant 4 : index
    %c0_45 = arith.constant 0 : index
    %c0_46 = arith.constant 0 : index
    %68 = vector.load %arg6[%c4, %c0_45, %c0_46] : memref<9x128x128xf32, #tpu.memory_space<vmem>>, vector<1x128x128xf32>
    %69 = vector.shape_cast %68 : vector<1x128x128xf32> to vector<128x128xf32>
    %cst_47 = arith.constant dense<0.000000e+00> : vector<128x32xf32>
    %70 = tpu.matmul %69, %40, %cst_47 {dimension_numbers = #tpu.dot_dimension_numbers<[1], [0], [0], [1], [0, 0, 1, 1], [], []>} : vector<128x128xf32>, vector<128x32xf32>, vector<128x32xf32> -> vector<128x32xf32>
    %c4_48 = arith.constant 4 : index
    %c0_49 = arith.constant 0 : index
    %c0_50 = arith.constant 0 : index
    %71 = vector.load %arg7[%c4_48, %c0_49, %c0_50] : memref<9x32x32xf32, #tpu.memory_space<vmem>>, vector<1x32x32xf32>
    %72 = vector.shape_cast %71 : vector<1x32x32xf32> to vector<32x32xf32>
    %cst_51 = arith.constant dense<0.000000e+00> : vector<128x32xf32>
    %73 = tpu.matmul %70, %72, %cst_51 {dimension_numbers = #tpu.dot_dimension_numbers<[1], [0], [0], [1], [0, 0, 1, 1], [], []>} : vector<128x32xf32>, vector<32x32xf32>, vector<128x32xf32> -> vector<128x32xf32>
    %74 = arith.addf %67, %73 : vector<128x32xf32>
    %c5 = arith.constant 5 : index
    %c0_52 = arith.constant 0 : index
    %c0_53 = arith.constant 0 : index
    %75 = vector.load %arg6[%c5, %c0_52, %c0_53] : memref<9x128x128xf32, #tpu.memory_space<vmem>>, vector<1x128x128xf32>
    %76 = vector.shape_cast %75 : vector<1x128x128xf32> to vector<128x128xf32>
    %cst_54 = arith.constant dense<0.000000e+00> : vector<128x32xf32>
    %77 = tpu.matmul %76, %40, %cst_54 {dimension_numbers = #tpu.dot_dimension_numbers<[1], [0], [0], [1], [0, 0, 1, 1], [], []>} : vector<128x128xf32>, vector<128x32xf32>, vector<128x32xf32> -> vector<128x32xf32>
    %c5_55 = arith.constant 5 : index
    %c0_56 = arith.constant 0 : index
    %c0_57 = arith.constant 0 : index
    %78 = vector.load %arg7[%c5_55, %c0_56, %c0_57] : memref<9x32x32xf32, #tpu.memory_space<vmem>>, vector<1x32x32xf32>
    %79 = vector.shape_cast %78 : vector<1x32x32xf32> to vector<32x32xf32>
    %cst_58 = arith.constant dense<0.000000e+00> : vector<128x32xf32>
    %80 = tpu.matmul %77, %79, %cst_58 {dimension_numbers = #tpu.dot_dimension_numbers<[1], [0], [0], [1], [0, 0, 1, 1], [], []>} : vector<128x32xf32>, vector<32x32xf32>, vector<128x32xf32> -> vector<128x32xf32>
    %81 = arith.addf %74, %80 : vector<128x32xf32>
    %c6 = arith.constant 6 : index
    %c0_59 = arith.constant 0 : index
    %c0_60 = arith.constant 0 : index
    %82 = vector.load %arg6[%c6, %c0_59, %c0_60] : memref<9x128x128xf32, #tpu.memory_space<vmem>>, vector<1x128x128xf32>
    %83 = vector.shape_cast %82 : vector<1x128x128xf32> to vector<128x128xf32>
    %cst_61 = arith.constant dense<0.000000e+00> : vector<128x32xf32>
    %84 = tpu.matmul %83, %40, %cst_61 {dimension_numbers = #tpu.dot_dimension_numbers<[1], [0], [0], [1], [0, 0, 1, 1], [], []>} : vector<128x128xf32>, vector<128x32xf32>, vector<128x32xf32> -> vector<128x32xf32>
    %c6_62 = arith.constant 6 : index
    %c0_63 = arith.constant 0 : index
    %c0_64 = arith.constant 0 : index
    %85 = vector.load %arg7[%c6_62, %c0_63, %c0_64] : memref<9x32x32xf32, #tpu.memory_space<vmem>>, vector<1x32x32xf32>
    %86 = vector.shape_cast %85 : vector<1x32x32xf32> to vector<32x32xf32>
    %cst_65 = arith.constant dense<0.000000e+00> : vector<128x32xf32>
    %87 = tpu.matmul %84, %86, %cst_65 {dimension_numbers = #tpu.dot_dimension_numbers<[1], [0], [0], [1], [0, 0, 1, 1], [], []>} : vector<128x32xf32>, vector<32x32xf32>, vector<128x32xf32> -> vector<128x32xf32>
    %88 = arith.addf %81, %87 : vector<128x32xf32>
    %c7 = arith.constant 7 : index
    %c0_66 = arith.constant 0 : index
    %c0_67 = arith.constant 0 : index
    %89 = vector.load %arg6[%c7, %c0_66, %c0_67] : memref<9x128x128xf32, #tpu.memory_space<vmem>>, vector<1x128x128xf32>
    %90 = vector.shape_cast %89 : vector<1x128x128xf32> to vector<128x128xf32>
    %cst_68 = arith.constant dense<0.000000e+00> : vector<128x32xf32>
    %91 = tpu.matmul %90, %40, %cst_68 {dimension_numbers = #tpu.dot_dimension_numbers<[1], [0], [0], [1], [0, 0, 1, 1], [], []>} : vector<128x128xf32>, vector<128x32xf32>, vector<128x32xf32> -> vector<128x32xf32>
    %c7_69 = arith.constant 7 : index
    %c0_70 = arith.constant 0 : index
    %c0_71 = arith.constant 0 : index
    %92 = vector.load %arg7[%c7_69, %c0_70, %c0_71] : memref<9x32x32xf32, #tpu.memory_space<vmem>>, vector<1x32x32xf32>
    %93 = vector.shape_cast %92 : vector<1x32x32xf32> to vector<32x32xf32>
    %cst_72 = arith.constant dense<0.000000e+00> : vector<128x32xf32>
    %94 = tpu.matmul %91, %93, %cst_72 {dimension_numbers = #tpu.dot_dimension_numbers<[1], [0], [0], [1], [0, 0, 1, 1], [], []>} : vector<128x32xf32>, vector<32x32xf32>, vector<128x32xf32> -> vector<128x32xf32>
    %95 = arith.addf %88, %94 : vector<128x32xf32>
    %c8 = arith.constant 8 : index
    %c0_73 = arith.constant 0 : index
    %c0_74 = arith.constant 0 : index
    %96 = vector.load %arg6[%c8, %c0_73, %c0_74] : memref<9x128x128xf32, #tpu.memory_space<vmem>>, vector<1x128x128xf32>
    %97 = vector.shape_cast %96 : vector<1x128x128xf32> to vector<128x128xf32>
    %cst_75 = arith.constant dense<0.000000e+00> : vector<128x32xf32>
    %98 = tpu.matmul %97, %40, %cst_75 {dimension_numbers = #tpu.dot_dimension_numbers<[1], [0], [0], [1], [0, 0, 1, 1], [], []>} : vector<128x128xf32>, vector<128x32xf32>, vector<128x32xf32> -> vector<128x32xf32>
    %c8_76 = arith.constant 8 : index
    %c0_77 = arith.constant 0 : index
    %c0_78 = arith.constant 0 : index
    %99 = vector.load %arg7[%c8_76, %c0_77, %c0_78] : memref<9x32x32xf32, #tpu.memory_space<vmem>>, vector<1x32x32xf32>
    %100 = vector.shape_cast %99 : vector<1x32x32xf32> to vector<32x32xf32>
    %cst_79 = arith.constant dense<0.000000e+00> : vector<128x32xf32>
    %101 = tpu.matmul %98, %100, %cst_79 {dimension_numbers = #tpu.dot_dimension_numbers<[1], [0], [0], [1], [0, 0, 1, 1], [], []>} : vector<128x32xf32>, vector<32x32xf32>, vector<128x32xf32> -> vector<128x32xf32>
    %102 = arith.addf %95, %101 : vector<128x32xf32>
    %c0_80 = arith.constant 0 : index
    %c0_81 = arith.constant 0 : index
    %103 = vector.load %arg8[%c0_80, %c0_81] : memref<1x32xf32, #tpu.memory_space<vmem>>, vector<1x32xf32>
    %c0_82 = arith.constant 0 : index
    %c0_83 = arith.constant 0 : index
    %104 = vector.load %arg9[%c0_82, %c0_83] : memref<1x32xf32, #tpu.memory_space<vmem>>, vector<1x32xf32>
    %c0_84 = arith.constant 0 : index
    %c0_85 = arith.constant 0 : index
    %105 = vector.load %arg10[%c0_84, %c0_85] : memref<1x32xf32, #tpu.memory_space<vmem>>, vector<1x32xf32>
    %106 = vector.extract_strided_slice %102 {offsets = [0, 0], sizes = [32, 32], strides = [1, 1]} : vector<128x32xf32> to vector<32x32xf32>
    %107 = vector.extract_strided_slice %102 {offsets = [32, 0], sizes = [32, 32], strides = [1, 1]} : vector<128x32xf32> to vector<32x32xf32>
    %108 = arith.maximumf %106, %107 : vector<32x32xf32>
    %109 = vector.extract_strided_slice %102 {offsets = [64, 0], sizes = [32, 32], strides = [1, 1]} : vector<128x32xf32> to vector<32x32xf32>
    %110 = vector.extract_strided_slice %102 {offsets = [96, 0], sizes = [32, 32], strides = [1, 1]} : vector<128x32xf32> to vector<32x32xf32>
    %111 = arith.maximumf %109, %110 : vector<32x32xf32>
    %112 = arith.maximumf %108, %111 : vector<32x32xf32>
    %113 = vector.broadcast %103 : vector<1x32xf32> to vector<32x32xf32>
    %114 = arith.addf %112, %113 : vector<32x32xf32>
    %cst_86 = arith.constant dense<0.000000e+00> : vector<32xf32>
    %115 = vector.multi_reduction <add>, %114, %cst_86 [0] : vector<32x32xf32> to vector<32xf32>
    %116 = vector.shape_cast %115 : vector<32xf32> to vector<1x32xf32>
    %cst_87 = arith.constant 3.200000e+01 : f32
    %117 = vector.broadcast %cst_87 : f32 to vector<1x32xf32>
    %118 = arith.divf %116, %117 : vector<1x32xf32>
    %119 = arith.mulf %114, %114 : vector<32x32xf32>
    %cst_88 = arith.constant dense<0.000000e+00> : vector<32xf32>
    %120 = vector.multi_reduction <add>, %119, %cst_88 [0] : vector<32x32xf32> to vector<32xf32>
    %121 = vector.shape_cast %120 : vector<32xf32> to vector<1x32xf32>
    %cst_89 = arith.constant 3.200000e+01 : f32
    %122 = vector.broadcast %cst_89 : f32 to vector<1x32xf32>
    %123 = arith.divf %121, %122 : vector<1x32xf32>
    %124 = arith.mulf %118, %118 : vector<1x32xf32>
    %125 = arith.subf %123, %124 : vector<1x32xf32>
    %cst_90 = arith.constant 0.000000e+00 : f32
    %126 = vector.broadcast %cst_90 : f32 to vector<1x32xf32>
    %127 = arith.maximumf %125, %126 : vector<1x32xf32>
    %128 = vector.broadcast %118 : vector<1x32xf32> to vector<32x32xf32>
    %129 = arith.subf %114, %128 : vector<32x32xf32>
    %cst_91 = arith.constant 9.99999974E-6 : f32
    %130 = vector.broadcast %cst_91 : f32 to vector<1x32xf32>
    %131 = arith.addf %127, %130 : vector<1x32xf32>
    %132 = math.rsqrt %131 : vector<1x32xf32>
    %133 = vector.broadcast %132 : vector<1x32xf32> to vector<32x32xf32>
    %134 = arith.mulf %129, %133 : vector<32x32xf32>
    %135 = vector.broadcast %104 : vector<1x32xf32> to vector<32x32xf32>
    %136 = arith.mulf %134, %135 : vector<32x32xf32>
    %137 = vector.broadcast %105 : vector<1x32xf32> to vector<32x32xf32>
    %138 = arith.addf %136, %137 : vector<32x32xf32>
    %cst_92 = arith.constant 0.000000e+00 : f32
    %139 = vector.broadcast %cst_92 : f32 to vector<32x32xf32>
    %140 = arith.maximumf %138, %139 : vector<32x32xf32>
    %c0_93 = arith.constant 0 : index
    %c0_94 = arith.constant 0 : index
    %c0_95 = arith.constant 0 : index
    %141 = vector.load %arg11[%c0_93, %c0_94, %c0_95] : memref<9x32x32xf32, #tpu.memory_space<vmem>>, vector<1x32x32xf32>
    %142 = vector.shape_cast %141 : vector<1x32x32xf32> to vector<32x32xf32>
    %cst_96 = arith.constant dense<0.000000e+00> : vector<32x32xf32>
    %143 = tpu.matmul %142, %140, %cst_96 {dimension_numbers = #tpu.dot_dimension_numbers<[1], [0], [0], [1], [0, 0, 1, 1], [], []>} : vector<32x32xf32>, vector<32x32xf32>, vector<32x32xf32> -> vector<32x32xf32>
    %c0_97 = arith.constant 0 : index
    %c0_98 = arith.constant 0 : index
    %c0_99 = arith.constant 0 : index
    %144 = vector.load %arg12[%c0_97, %c0_98, %c0_99] : memref<9x32x32xf32, #tpu.memory_space<vmem>>, vector<1x32x32xf32>
    %145 = vector.shape_cast %144 : vector<1x32x32xf32> to vector<32x32xf32>
    %cst_100 = arith.constant dense<0.000000e+00> : vector<32x32xf32>
    %146 = tpu.matmul %143, %145, %cst_100 {dimension_numbers = #tpu.dot_dimension_numbers<[1], [0], [0], [1], [0, 0, 1, 1], [], []>} : vector<32x32xf32>, vector<32x32xf32>, vector<32x32xf32> -> vector<32x32xf32>
    %c1_101 = arith.constant 1 : index
    %c0_102 = arith.constant 0 : index
    %c0_103 = arith.constant 0 : index
    %147 = vector.load %arg11[%c1_101, %c0_102, %c0_103] : memref<9x32x32xf32, #tpu.memory_space<vmem>>, vector<1x32x32xf32>
    %148 = vector.shape_cast %147 : vector<1x32x32xf32> to vector<32x32xf32>
    %cst_104 = arith.constant dense<0.000000e+00> : vector<32x32xf32>
    %149 = tpu.matmul %148, %140, %cst_104 {dimension_numbers = #tpu.dot_dimension_numbers<[1], [0], [0], [1], [0, 0, 1, 1], [], []>} : vector<32x32xf32>, vector<32x32xf32>, vector<32x32xf32> -> vector<32x32xf32>
    %c1_105 = arith.constant 1 : index
    %c0_106 = arith.constant 0 : index
    %c0_107 = arith.constant 0 : index
    %150 = vector.load %arg12[%c1_105, %c0_106, %c0_107] : memref<9x32x32xf32, #tpu.memory_space<vmem>>, vector<1x32x32xf32>
    %151 = vector.shape_cast %150 : vector<1x32x32xf32> to vector<32x32xf32>
    %cst_108 = arith.constant dense<0.000000e+00> : vector<32x32xf32>
    %152 = tpu.matmul %149, %151, %cst_108 {dimension_numbers = #tpu.dot_dimension_numbers<[1], [0], [0], [1], [0, 0, 1, 1], [], []>} : vector<32x32xf32>, vector<32x32xf32>, vector<32x32xf32> -> vector<32x32xf32>
    %153 = arith.addf %146, %152 : vector<32x32xf32>
    %c2_109 = arith.constant 2 : index
    %c0_110 = arith.constant 0 : index
    %c0_111 = arith.constant 0 : index
    %154 = vector.load %arg11[%c2_109, %c0_110, %c0_111] : memref<9x32x32xf32, #tpu.memory_space<vmem>>, vector<1x32x32xf32>
    %155 = vector.shape_cast %154 : vector<1x32x32xf32> to vector<32x32xf32>
    %cst_112 = arith.constant dense<0.000000e+00> : vector<32x32xf32>
    %156 = tpu.matmul %155, %140, %cst_112 {dimension_numbers = #tpu.dot_dimension_numbers<[1], [0], [0], [1], [0, 0, 1, 1], [], []>} : vector<32x32xf32>, vector<32x32xf32>, vector<32x32xf32> -> vector<32x32xf32>
    %c2_113 = arith.constant 2 : index
    %c0_114 = arith.constant 0 : index
    %c0_115 = arith.constant 0 : index
    %157 = vector.load %arg12[%c2_113, %c0_114, %c0_115] : memref<9x32x32xf32, #tpu.memory_space<vmem>>, vector<1x32x32xf32>
    %158 = vector.shape_cast %157 : vector<1x32x32xf32> to vector<32x32xf32>
    %cst_116 = arith.constant dense<0.000000e+00> : vector<32x32xf32>
    %159 = tpu.matmul %156, %158, %cst_116 {dimension_numbers = #tpu.dot_dimension_numbers<[1], [0], [0], [1], [0, 0, 1, 1], [], []>} : vector<32x32xf32>, vector<32x32xf32>, vector<32x32xf32> -> vector<32x32xf32>
    %160 = arith.addf %153, %159 : vector<32x32xf32>
    %c3_117 = arith.constant 3 : index
    %c0_118 = arith.constant 0 : index
    %c0_119 = arith.constant 0 : index
    %161 = vector.load %arg11[%c3_117, %c0_118, %c0_119] : memref<9x32x32xf32, #tpu.memory_space<vmem>>, vector<1x32x32xf32>
    %162 = vector.shape_cast %161 : vector<1x32x32xf32> to vector<32x32xf32>
    %cst_120 = arith.constant dense<0.000000e+00> : vector<32x32xf32>
    %163 = tpu.matmul %162, %140, %cst_120 {dimension_numbers = #tpu.dot_dimension_numbers<[1], [0], [0], [1], [0, 0, 1, 1], [], []>} : vector<32x32xf32>, vector<32x32xf32>, vector<32x32xf32> -> vector<32x32xf32>
    %c3_121 = arith.constant 3 : index
    %c0_122 = arith.constant 0 : index
    %c0_123 = arith.constant 0 : index
    %164 = vector.load %arg12[%c3_121, %c0_122, %c0_123] : memref<9x32x32xf32, #tpu.memory_space<vmem>>, vector<1x32x32xf32>
    %165 = vector.shape_cast %164 : vector<1x32x32xf32> to vector<32x32xf32>
    %cst_124 = arith.constant dense<0.000000e+00> : vector<32x32xf32>
    %166 = tpu.matmul %163, %165, %cst_124 {dimension_numbers = #tpu.dot_dimension_numbers<[1], [0], [0], [1], [0, 0, 1, 1], [], []>} : vector<32x32xf32>, vector<32x32xf32>, vector<32x32xf32> -> vector<32x32xf32>
    %167 = arith.addf %160, %166 : vector<32x32xf32>
    %c4_125 = arith.constant 4 : index
    %c0_126 = arith.constant 0 : index
    %c0_127 = arith.constant 0 : index
    %168 = vector.load %arg11[%c4_125, %c0_126, %c0_127] : memref<9x32x32xf32, #tpu.memory_space<vmem>>, vector<1x32x32xf32>
    %169 = vector.shape_cast %168 : vector<1x32x32xf32> to vector<32x32xf32>
    %cst_128 = arith.constant dense<0.000000e+00> : vector<32x32xf32>
    %170 = tpu.matmul %169, %140, %cst_128 {dimension_numbers = #tpu.dot_dimension_numbers<[1], [0], [0], [1], [0, 0, 1, 1], [], []>} : vector<32x32xf32>, vector<32x32xf32>, vector<32x32xf32> -> vector<32x32xf32>
    %c4_129 = arith.constant 4 : index
    %c0_130 = arith.constant 0 : index
    %c0_131 = arith.constant 0 : index
    %171 = vector.load %arg12[%c4_129, %c0_130, %c0_131] : memref<9x32x32xf32, #tpu.memory_space<vmem>>, vector<1x32x32xf32>
    %172 = vector.shape_cast %171 : vector<1x32x32xf32> to vector<32x32xf32>
    %cst_132 = arith.constant dense<0.000000e+00> : vector<32x32xf32>
    %173 = tpu.matmul %170, %172, %cst_132 {dimension_numbers = #tpu.dot_dimension_numbers<[1], [0], [0], [1], [0, 0, 1, 1], [], []>} : vector<32x32xf32>, vector<32x32xf32>, vector<32x32xf32> -> vector<32x32xf32>
    %174 = arith.addf %167, %173 : vector<32x32xf32>
    %c5_133 = arith.constant 5 : index
    %c0_134 = arith.constant 0 : index
    %c0_135 = arith.constant 0 : index
    %175 = vector.load %arg11[%c5_133, %c0_134, %c0_135] : memref<9x32x32xf32, #tpu.memory_space<vmem>>, vector<1x32x32xf32>
    %176 = vector.shape_cast %175 : vector<1x32x32xf32> to vector<32x32xf32>
    %cst_136 = arith.constant dense<0.000000e+00> : vector<32x32xf32>
    %177 = tpu.matmul %176, %140, %cst_136 {dimension_numbers = #tpu.dot_dimension_numbers<[1], [0], [0], [1], [0, 0, 1, 1], [], []>} : vector<32x32xf32>, vector<32x32xf32>, vector<32x32xf32> -> vector<32x32xf32>
    %c5_137 = arith.constant 5 : index
    %c0_138 = arith.constant 0 : index
    %c0_139 = arith.constant 0 : index
    %178 = vector.load %arg12[%c5_137, %c0_138, %c0_139] : memref<9x32x32xf32, #tpu.memory_space<vmem>>, vector<1x32x32xf32>
    %179 = vector.shape_cast %178 : vector<1x32x32xf32> to vector<32x32xf32>
    %cst_140 = arith.constant dense<0.000000e+00> : vector<32x32xf32>
    %180 = tpu.matmul %177, %179, %cst_140 {dimension_numbers = #tpu.dot_dimension_numbers<[1], [0], [0], [1], [0, 0, 1, 1], [], []>} : vector<32x32xf32>, vector<32x32xf32>, vector<32x32xf32> -> vector<32x32xf32>
    %181 = arith.addf %174, %180 : vector<32x32xf32>
    %c6_141 = arith.constant 6 : index
    %c0_142 = arith.constant 0 : index
    %c0_143 = arith.constant 0 : index
    %182 = vector.load %arg11[%c6_141, %c0_142, %c0_143] : memref<9x32x32xf32, #tpu.memory_space<vmem>>, vector<1x32x32xf32>
    %183 = vector.shape_cast %182 : vector<1x32x32xf32> to vector<32x32xf32>
    %cst_144 = arith.constant dense<0.000000e+00> : vector<32x32xf32>
    %184 = tpu.matmul %183, %140, %cst_144 {dimension_numbers = #tpu.dot_dimension_numbers<[1], [0], [0], [1], [0, 0, 1, 1], [], []>} : vector<32x32xf32>, vector<32x32xf32>, vector<32x32xf32> -> vector<32x32xf32>
    %c6_145 = arith.constant 6 : index
    %c0_146 = arith.constant 0 : index
    %c0_147 = arith.constant 0 : index
    %185 = vector.load %arg12[%c6_145, %c0_146, %c0_147] : memref<9x32x32xf32, #tpu.memory_space<vmem>>, vector<1x32x32xf32>
    %186 = vector.shape_cast %185 : vector<1x32x32xf32> to vector<32x32xf32>
    %cst_148 = arith.constant dense<0.000000e+00> : vector<32x32xf32>
    %187 = tpu.matmul %184, %186, %cst_148 {dimension_numbers = #tpu.dot_dimension_numbers<[1], [0], [0], [1], [0, 0, 1, 1], [], []>} : vector<32x32xf32>, vector<32x32xf32>, vector<32x32xf32> -> vector<32x32xf32>
    %188 = arith.addf %181, %187 : vector<32x32xf32>
    %c7_149 = arith.constant 7 : index
    %c0_150 = arith.constant 0 : index
    %c0_151 = arith.constant 0 : index
    %189 = vector.load %arg11[%c7_149, %c0_150, %c0_151] : memref<9x32x32xf32, #tpu.memory_space<vmem>>, vector<1x32x32xf32>
    %190 = vector.shape_cast %189 : vector<1x32x32xf32> to vector<32x32xf32>
    %cst_152 = arith.constant dense<0.000000e+00> : vector<32x32xf32>
    %191 = tpu.matmul %190, %140, %cst_152 {dimension_numbers = #tpu.dot_dimension_numbers<[1], [0], [0], [1], [0, 0, 1, 1], [], []>} : vector<32x32xf32>, vector<32x32xf32>, vector<32x32xf32> -> vector<32x32xf32>
    %c7_153 = arith.constant 7 : index
    %c0_154 = arith.constant 0 : index
    %c0_155 = arith.constant 0 : index
    %192 = vector.load %arg12[%c7_153, %c0_154, %c0_155] : memref<9x32x32xf32, #tpu.memory_space<vmem>>, vector<1x32x32xf32>
    %193 = vector.shape_cast %192 : vector<1x32x32xf32> to vector<32x32xf32>
    %cst_156 = arith.constant dense<0.000000e+00> : vector<32x32xf32>
    %194 = tpu.matmul %191, %193, %cst_156 {dimension_numbers = #tpu.dot_dimension_numbers<[1], [0], [0], [1], [0, 0, 1, 1], [], []>} : vector<32x32xf32>, vector<32x32xf32>, vector<32x32xf32> -> vector<32x32xf32>
    %195 = arith.addf %188, %194 : vector<32x32xf32>
    %c8_157 = arith.constant 8 : index
    %c0_158 = arith.constant 0 : index
    %c0_159 = arith.constant 0 : index
    %196 = vector.load %arg11[%c8_157, %c0_158, %c0_159] : memref<9x32x32xf32, #tpu.memory_space<vmem>>, vector<1x32x32xf32>
    %197 = vector.shape_cast %196 : vector<1x32x32xf32> to vector<32x32xf32>
    %cst_160 = arith.constant dense<0.000000e+00> : vector<32x32xf32>
    %198 = tpu.matmul %197, %140, %cst_160 {dimension_numbers = #tpu.dot_dimension_numbers<[1], [0], [0], [1], [0, 0, 1, 1], [], []>} : vector<32x32xf32>, vector<32x32xf32>, vector<32x32xf32> -> vector<32x32xf32>
    %c8_161 = arith.constant 8 : index
    %c0_162 = arith.constant 0 : index
    %c0_163 = arith.constant 0 : index
    %199 = vector.load %arg12[%c8_161, %c0_162, %c0_163] : memref<9x32x32xf32, #tpu.memory_space<vmem>>, vector<1x32x32xf32>
    %200 = vector.shape_cast %199 : vector<1x32x32xf32> to vector<32x32xf32>
    %cst_164 = arith.constant dense<0.000000e+00> : vector<32x32xf32>
    %201 = tpu.matmul %198, %200, %cst_164 {dimension_numbers = #tpu.dot_dimension_numbers<[1], [0], [0], [1], [0, 0, 1, 1], [], []>} : vector<32x32xf32>, vector<32x32xf32>, vector<32x32xf32> -> vector<32x32xf32>
    %202 = arith.addf %195, %201 : vector<32x32xf32>
    %c0_165 = arith.constant 0 : index
    %c0_166 = arith.constant 0 : index
    %203 = vector.load %arg13[%c0_165, %c0_166] : memref<1x32xf32, #tpu.memory_space<vmem>>, vector<1x32xf32>
    %c0_167 = arith.constant 0 : index
    %c0_168 = arith.constant 0 : index
    %204 = vector.load %arg14[%c0_167, %c0_168] : memref<1x32xf32, #tpu.memory_space<vmem>>, vector<1x32xf32>
    %c0_169 = arith.constant 0 : index
    %c0_170 = arith.constant 0 : index
    %205 = vector.load %arg15[%c0_169, %c0_170] : memref<1x32xf32, #tpu.memory_space<vmem>>, vector<1x32xf32>
    %206 = vector.extract_strided_slice %202 {offsets = [0, 0], sizes = [8, 32], strides = [1, 1]} : vector<32x32xf32> to vector<8x32xf32>
    %207 = vector.extract_strided_slice %202 {offsets = [8, 0], sizes = [8, 32], strides = [1, 1]} : vector<32x32xf32> to vector<8x32xf32>
    %208 = arith.maximumf %206, %207 : vector<8x32xf32>
    %209 = vector.extract_strided_slice %202 {offsets = [16, 0], sizes = [8, 32], strides = [1, 1]} : vector<32x32xf32> to vector<8x32xf32>
    %210 = vector.extract_strided_slice %202 {offsets = [24, 0], sizes = [8, 32], strides = [1, 1]} : vector<32x32xf32> to vector<8x32xf32>
    %211 = arith.maximumf %209, %210 : vector<8x32xf32>
    %212 = arith.maximumf %208, %211 : vector<8x32xf32>
    %213 = vector.broadcast %203 : vector<1x32xf32> to vector<8x32xf32>
    %214 = arith.addf %212, %213 : vector<8x32xf32>
    %cst_171 = arith.constant dense<0.000000e+00> : vector<32xf32>
    %215 = vector.multi_reduction <add>, %214, %cst_171 [0] : vector<8x32xf32> to vector<32xf32>
    %216 = vector.shape_cast %215 : vector<32xf32> to vector<1x32xf32>
    %cst_172 = arith.constant 8.000000e+00 : f32
    %217 = vector.broadcast %cst_172 : f32 to vector<1x32xf32>
    %218 = arith.divf %216, %217 : vector<1x32xf32>
    %219 = arith.mulf %214, %214 : vector<8x32xf32>
    %cst_173 = arith.constant dense<0.000000e+00> : vector<32xf32>
    %220 = vector.multi_reduction <add>, %219, %cst_173 [0] : vector<8x32xf32> to vector<32xf32>
    %221 = vector.shape_cast %220 : vector<32xf32> to vector<1x32xf32>
    %cst_174 = arith.constant 8.000000e+00 : f32
    %222 = vector.broadcast %cst_174 : f32 to vector<1x32xf32>
    %223 = arith.divf %221, %222 : vector<1x32xf32>
    %224 = arith.mulf %218, %218 : vector<1x32xf32>
    %225 = arith.subf %223, %224 : vector<1x32xf32>
    %cst_175 = arith.constant 0.000000e+00 : f32
    %226 = vector.broadcast %cst_175 : f32 to vector<1x32xf32>
    %227 = arith.maximumf %225, %226 : vector<1x32xf32>
    %228 = vector.broadcast %218 : vector<1x32xf32> to vector<8x32xf32>
    %229 = arith.subf %214, %228 : vector<8x32xf32>
    %cst_176 = arith.constant 9.99999974E-6 : f32
    %230 = vector.broadcast %cst_176 : f32 to vector<1x32xf32>
    %231 = arith.addf %227, %230 : vector<1x32xf32>
    %232 = math.rsqrt %231 : vector<1x32xf32>
    %233 = vector.broadcast %232 : vector<1x32xf32> to vector<8x32xf32>
    %234 = arith.mulf %229, %233 : vector<8x32xf32>
    %235 = vector.broadcast %204 : vector<1x32xf32> to vector<8x32xf32>
    %236 = arith.mulf %234, %235 : vector<8x32xf32>
    %237 = vector.broadcast %205 : vector<1x32xf32> to vector<8x32xf32>
    %238 = arith.addf %236, %237 : vector<8x32xf32>
    %cst_177 = arith.constant 0.000000e+00 : f32
    %239 = vector.broadcast %cst_177 : f32 to vector<8x32xf32>
    %240 = arith.maximumf %238, %239 : vector<8x32xf32>
    %c0_178 = arith.constant 0 : index
    %c0_179 = arith.constant 0 : index
    %c0_180 = arith.constant 0 : index
    %241 = vector.load %arg16[%c0_178, %c0_179, %c0_180] : memref<9x8x8xf32, #tpu.memory_space<vmem>>, vector<1x8x8xf32>
    %242 = vector.shape_cast %241 : vector<1x8x8xf32> to vector<8x8xf32>
    %cst_181 = arith.constant dense<0.000000e+00> : vector<8x32xf32>
    %243 = tpu.matmul %242, %240, %cst_181 {dimension_numbers = #tpu.dot_dimension_numbers<[1], [0], [0], [1], [0, 0, 1, 1], [], []>} : vector<8x8xf32>, vector<8x32xf32>, vector<8x32xf32> -> vector<8x32xf32>
    %c0_182 = arith.constant 0 : index
    %c0_183 = arith.constant 0 : index
    %c0_184 = arith.constant 0 : index
    %244 = vector.load %arg17[%c0_182, %c0_183, %c0_184] : memref<9x32x32xf32, #tpu.memory_space<vmem>>, vector<1x32x32xf32>
    %245 = vector.shape_cast %244 : vector<1x32x32xf32> to vector<32x32xf32>
    %cst_185 = arith.constant dense<0.000000e+00> : vector<8x32xf32>
    %246 = tpu.matmul %243, %245, %cst_185 {dimension_numbers = #tpu.dot_dimension_numbers<[1], [0], [0], [1], [0, 0, 1, 1], [], []>} : vector<8x32xf32>, vector<32x32xf32>, vector<8x32xf32> -> vector<8x32xf32>
    %c1_186 = arith.constant 1 : index
    %c0_187 = arith.constant 0 : index
    %c0_188 = arith.constant 0 : index
    %247 = vector.load %arg16[%c1_186, %c0_187, %c0_188] : memref<9x8x8xf32, #tpu.memory_space<vmem>>, vector<1x8x8xf32>
    %248 = vector.shape_cast %247 : vector<1x8x8xf32> to vector<8x8xf32>
    %cst_189 = arith.constant dense<0.000000e+00> : vector<8x32xf32>
    %249 = tpu.matmul %248, %240, %cst_189 {dimension_numbers = #tpu.dot_dimension_numbers<[1], [0], [0], [1], [0, 0, 1, 1], [], []>} : vector<8x8xf32>, vector<8x32xf32>, vector<8x32xf32> -> vector<8x32xf32>
    %c1_190 = arith.constant 1 : index
    %c0_191 = arith.constant 0 : index
    %c0_192 = arith.constant 0 : index
    %250 = vector.load %arg17[%c1_190, %c0_191, %c0_192] : memref<9x32x32xf32, #tpu.memory_space<vmem>>, vector<1x32x32xf32>
    %251 = vector.shape_cast %250 : vector<1x32x32xf32> to vector<32x32xf32>
    %cst_193 = arith.constant dense<0.000000e+00> : vector<8x32xf32>
    %252 = tpu.matmul %249, %251, %cst_193 {dimension_numbers = #tpu.dot_dimension_numbers<[1], [0], [0], [1], [0, 0, 1, 1], [], []>} : vector<8x32xf32>, vector<32x32xf32>, vector<8x32xf32> -> vector<8x32xf32>
    %253 = arith.addf %246, %252 : vector<8x32xf32>
    %c2_194 = arith.constant 2 : index
    %c0_195 = arith.constant 0 : index
    %c0_196 = arith.constant 0 : index
    %254 = vector.load %arg16[%c2_194, %c0_195, %c0_196] : memref<9x8x8xf32, #tpu.memory_space<vmem>>, vector<1x8x8xf32>
    %255 = vector.shape_cast %254 : vector<1x8x8xf32> to vector<8x8xf32>
    %cst_197 = arith.constant dense<0.000000e+00> : vector<8x32xf32>
    %256 = tpu.matmul %255, %240, %cst_197 {dimension_numbers = #tpu.dot_dimension_numbers<[1], [0], [0], [1], [0, 0, 1, 1], [], []>} : vector<8x8xf32>, vector<8x32xf32>, vector<8x32xf32> -> vector<8x32xf32>
    %c2_198 = arith.constant 2 : index
    %c0_199 = arith.constant 0 : index
    %c0_200 = arith.constant 0 : index
    %257 = vector.load %arg17[%c2_198, %c0_199, %c0_200] : memref<9x32x32xf32, #tpu.memory_space<vmem>>, vector<1x32x32xf32>
    %258 = vector.shape_cast %257 : vector<1x32x32xf32> to vector<32x32xf32>
    %cst_201 = arith.constant dense<0.000000e+00> : vector<8x32xf32>
    %259 = tpu.matmul %256, %258, %cst_201 {dimension_numbers = #tpu.dot_dimension_numbers<[1], [0], [0], [1], [0, 0, 1, 1], [], []>} : vector<8x32xf32>, vector<32x32xf32>, vector<8x32xf32> -> vector<8x32xf32>
    %260 = arith.addf %253, %259 : vector<8x32xf32>
    %c3_202 = arith.constant 3 : index
    %c0_203 = arith.constant 0 : index
    %c0_204 = arith.constant 0 : index
    %261 = vector.load %arg16[%c3_202, %c0_203, %c0_204] : memref<9x8x8xf32, #tpu.memory_space<vmem>>, vector<1x8x8xf32>
    %262 = vector.shape_cast %261 : vector<1x8x8xf32> to vector<8x8xf32>
    %cst_205 = arith.constant dense<0.000000e+00> : vector<8x32xf32>
    %263 = tpu.matmul %262, %240, %cst_205 {dimension_numbers = #tpu.dot_dimension_numbers<[1], [0], [0], [1], [0, 0, 1, 1], [], []>} : vector<8x8xf32>, vector<8x32xf32>, vector<8x32xf32> -> vector<8x32xf32>
    %c3_206 = arith.constant 3 : index
    %c0_207 = arith.constant 0 : index
    %c0_208 = arith.constant 0 : index
    %264 = vector.load %arg17[%c3_206, %c0_207, %c0_208] : memref<9x32x32xf32, #tpu.memory_space<vmem>>, vector<1x32x32xf32>
    %265 = vector.shape_cast %264 : vector<1x32x32xf32> to vector<32x32xf32>
    %cst_209 = arith.constant dense<0.000000e+00> : vector<8x32xf32>
    %266 = tpu.matmul %263, %265, %cst_209 {dimension_numbers = #tpu.dot_dimension_numbers<[1], [0], [0], [1], [0, 0, 1, 1], [], []>} : vector<8x32xf32>, vector<32x32xf32>, vector<8x32xf32> -> vector<8x32xf32>
    %267 = arith.addf %260, %266 : vector<8x32xf32>
    %c4_210 = arith.constant 4 : index
    %c0_211 = arith.constant 0 : index
    %c0_212 = arith.constant 0 : index
    %268 = vector.load %arg16[%c4_210, %c0_211, %c0_212] : memref<9x8x8xf32, #tpu.memory_space<vmem>>, vector<1x8x8xf32>
    %269 = vector.shape_cast %268 : vector<1x8x8xf32> to vector<8x8xf32>
    %cst_213 = arith.constant dense<0.000000e+00> : vector<8x32xf32>
    %270 = tpu.matmul %269, %240, %cst_213 {dimension_numbers = #tpu.dot_dimension_numbers<[1], [0], [0], [1], [0, 0, 1, 1], [], []>} : vector<8x8xf32>, vector<8x32xf32>, vector<8x32xf32> -> vector<8x32xf32>
    %c4_214 = arith.constant 4 : index
    %c0_215 = arith.constant 0 : index
    %c0_216 = arith.constant 0 : index
    %271 = vector.load %arg17[%c4_214, %c0_215, %c0_216] : memref<9x32x32xf32, #tpu.memory_space<vmem>>, vector<1x32x32xf32>
    %272 = vector.shape_cast %271 : vector<1x32x32xf32> to vector<32x32xf32>
    %cst_217 = arith.constant dense<0.000000e+00> : vector<8x32xf32>
    %273 = tpu.matmul %270, %272, %cst_217 {dimension_numbers = #tpu.dot_dimension_numbers<[1], [0], [0], [1], [0, 0, 1, 1], [], []>} : vector<8x32xf32>, vector<32x32xf32>, vector<8x32xf32> -> vector<8x32xf32>
    %274 = arith.addf %267, %273 : vector<8x32xf32>
    %c5_218 = arith.constant 5 : index
    %c0_219 = arith.constant 0 : index
    %c0_220 = arith.constant 0 : index
    %275 = vector.load %arg16[%c5_218, %c0_219, %c0_220] : memref<9x8x8xf32, #tpu.memory_space<vmem>>, vector<1x8x8xf32>
    %276 = vector.shape_cast %275 : vector<1x8x8xf32> to vector<8x8xf32>
    %cst_221 = arith.constant dense<0.000000e+00> : vector<8x32xf32>
    %277 = tpu.matmul %276, %240, %cst_221 {dimension_numbers = #tpu.dot_dimension_numbers<[1], [0], [0], [1], [0, 0, 1, 1], [], []>} : vector<8x8xf32>, vector<8x32xf32>, vector<8x32xf32> -> vector<8x32xf32>
    %c5_222 = arith.constant 5 : index
    %c0_223 = arith.constant 0 : index
    %c0_224 = arith.constant 0 : index
    %278 = vector.load %arg17[%c5_222, %c0_223, %c0_224] : memref<9x32x32xf32, #tpu.memory_space<vmem>>, vector<1x32x32xf32>
    %279 = vector.shape_cast %278 : vector<1x32x32xf32> to vector<32x32xf32>
    %cst_225 = arith.constant dense<0.000000e+00> : vector<8x32xf32>
    %280 = tpu.matmul %277, %279, %cst_225 {dimension_numbers = #tpu.dot_dimension_numbers<[1], [0], [0], [1], [0, 0, 1, 1], [], []>} : vector<8x32xf32>, vector<32x32xf32>, vector<8x32xf32> -> vector<8x32xf32>
    %281 = arith.addf %274, %280 : vector<8x32xf32>
    %c6_226 = arith.constant 6 : index
    %c0_227 = arith.constant 0 : index
    %c0_228 = arith.constant 0 : index
    %282 = vector.load %arg16[%c6_226, %c0_227, %c0_228] : memref<9x8x8xf32, #tpu.memory_space<vmem>>, vector<1x8x8xf32>
    %283 = vector.shape_cast %282 : vector<1x8x8xf32> to vector<8x8xf32>
    %cst_229 = arith.constant dense<0.000000e+00> : vector<8x32xf32>
    %284 = tpu.matmul %283, %240, %cst_229 {dimension_numbers = #tpu.dot_dimension_numbers<[1], [0], [0], [1], [0, 0, 1, 1], [], []>} : vector<8x8xf32>, vector<8x32xf32>, vector<8x32xf32> -> vector<8x32xf32>
    %c6_230 = arith.constant 6 : index
    %c0_231 = arith.constant 0 : index
    %c0_232 = arith.constant 0 : index
    %285 = vector.load %arg17[%c6_230, %c0_231, %c0_232] : memref<9x32x32xf32, #tpu.memory_space<vmem>>, vector<1x32x32xf32>
    %286 = vector.shape_cast %285 : vector<1x32x32xf32> to vector<32x32xf32>
    %cst_233 = arith.constant dense<0.000000e+00> : vector<8x32xf32>
    %287 = tpu.matmul %284, %286, %cst_233 {dimension_numbers = #tpu.dot_dimension_numbers<[1], [0], [0], [1], [0, 0, 1, 1], [], []>} : vector<8x32xf32>, vector<32x32xf32>, vector<8x32xf32> -> vector<8x32xf32>
    %288 = arith.addf %281, %287 : vector<8x32xf32>
    %c7_234 = arith.constant 7 : index
    %c0_235 = arith.constant 0 : index
    %c0_236 = arith.constant 0 : index
    %289 = vector.load %arg16[%c7_234, %c0_235, %c0_236] : memref<9x8x8xf32, #tpu.memory_space<vmem>>, vector<1x8x8xf32>
    %290 = vector.shape_cast %289 : vector<1x8x8xf32> to vector<8x8xf32>
    %cst_237 = arith.constant dense<0.000000e+00> : vector<8x32xf32>
    %291 = tpu.matmul %290, %240, %cst_237 {dimension_numbers = #tpu.dot_dimension_numbers<[1], [0], [0], [1], [0, 0, 1, 1], [], []>} : vector<8x8xf32>, vector<8x32xf32>, vector<8x32xf32> -> vector<8x32xf32>
    %c7_238 = arith.constant 7 : index
    %c0_239 = arith.constant 0 : index
    %c0_240 = arith.constant 0 : index
    %292 = vector.load %arg17[%c7_238, %c0_239, %c0_240] : memref<9x32x32xf32, #tpu.memory_space<vmem>>, vector<1x32x32xf32>
    %293 = vector.shape_cast %292 : vector<1x32x32xf32> to vector<32x32xf32>
    %cst_241 = arith.constant dense<0.000000e+00> : vector<8x32xf32>
    %294 = tpu.matmul %291, %293, %cst_241 {dimension_numbers = #tpu.dot_dimension_numbers<[1], [0], [0], [1], [0, 0, 1, 1], [], []>} : vector<8x32xf32>, vector<32x32xf32>, vector<8x32xf32> -> vector<8x32xf32>
    %295 = arith.addf %288, %294 : vector<8x32xf32>
    %c8_242 = arith.constant 8 : index
    %c0_243 = arith.constant 0 : index
    %c0_244 = arith.constant 0 : index
    %296 = vector.load %arg16[%c8_242, %c0_243, %c0_244] : memref<9x8x8xf32, #tpu.memory_space<vmem>>, vector<1x8x8xf32>
    %297 = vector.shape_cast %296 : vector<1x8x8xf32> to vector<8x8xf32>
    %cst_245 = arith.constant dense<0.000000e+00> : vector<8x32xf32>
    %298 = tpu.matmul %297, %240, %cst_245 {dimension_numbers = #tpu.dot_dimension_numbers<[1], [0], [0], [1], [0, 0, 1, 1], [], []>} : vector<8x8xf32>, vector<8x32xf32>, vector<8x32xf32> -> vector<8x32xf32>
    %c8_246 = arith.constant 8 : index
    %c0_247 = arith.constant 0 : index
    %c0_248 = arith.constant 0 : index
    %299 = vector.load %arg17[%c8_246, %c0_247, %c0_248] : memref<9x32x32xf32, #tpu.memory_space<vmem>>, vector<1x32x32xf32>
    %300 = vector.shape_cast %299 : vector<1x32x32xf32> to vector<32x32xf32>
    %cst_249 = arith.constant dense<0.000000e+00> : vector<8x32xf32>
    %301 = tpu.matmul %298, %300, %cst_249 {dimension_numbers = #tpu.dot_dimension_numbers<[1], [0], [0], [1], [0, 0, 1, 1], [], []>} : vector<8x32xf32>, vector<32x32xf32>, vector<8x32xf32> -> vector<8x32xf32>
    %302 = arith.addf %295, %301 : vector<8x32xf32>
    %c0_250 = arith.constant 0 : index
    %c0_251 = arith.constant 0 : index
    %303 = vector.load %arg18[%c0_250, %c0_251] : memref<1x32xf32, #tpu.memory_space<vmem>>, vector<1x32xf32>
    %c0_252 = arith.constant 0 : index
    %c0_253 = arith.constant 0 : index
    %304 = vector.load %arg19[%c0_252, %c0_253] : memref<1x32xf32, #tpu.memory_space<vmem>>, vector<1x32xf32>
    %c0_254 = arith.constant 0 : index
    %c0_255 = arith.constant 0 : index
    %305 = vector.load %arg20[%c0_254, %c0_255] : memref<1x32xf32, #tpu.memory_space<vmem>>, vector<1x32xf32>
    %306 = vector.extract_strided_slice %302 {offsets = [0, 0], sizes = [2, 32], strides = [1, 1]} : vector<8x32xf32> to vector<2x32xf32>
    %307 = vector.extract_strided_slice %302 {offsets = [2, 0], sizes = [2, 32], strides = [1, 1]} : vector<8x32xf32> to vector<2x32xf32>
    %308 = arith.maximumf %306, %307 : vector<2x32xf32>
    %309 = vector.extract_strided_slice %302 {offsets = [4, 0], sizes = [2, 32], strides = [1, 1]} : vector<8x32xf32> to vector<2x32xf32>
    %310 = vector.extract_strided_slice %302 {offsets = [6, 0], sizes = [2, 32], strides = [1, 1]} : vector<8x32xf32> to vector<2x32xf32>
    %311 = arith.maximumf %309, %310 : vector<2x32xf32>
    %312 = arith.maximumf %308, %311 : vector<2x32xf32>
    %313 = vector.broadcast %303 : vector<1x32xf32> to vector<2x32xf32>
    %314 = arith.addf %312, %313 : vector<2x32xf32>
    %cst_256 = arith.constant dense<0.000000e+00> : vector<32xf32>
    %315 = vector.multi_reduction <add>, %314, %cst_256 [0] : vector<2x32xf32> to vector<32xf32>
    %316 = vector.shape_cast %315 : vector<32xf32> to vector<1x32xf32>
    %cst_257 = arith.constant 2.000000e+00 : f32
    %317 = vector.broadcast %cst_257 : f32 to vector<1x32xf32>
    %318 = arith.divf %316, %317 : vector<1x32xf32>
    %319 = arith.mulf %314, %314 : vector<2x32xf32>
    %cst_258 = arith.constant dense<0.000000e+00> : vector<32xf32>
    %320 = vector.multi_reduction <add>, %319, %cst_258 [0] : vector<2x32xf32> to vector<32xf32>
    %321 = vector.shape_cast %320 : vector<32xf32> to vector<1x32xf32>
    %cst_259 = arith.constant 2.000000e+00 : f32
    %322 = vector.broadcast %cst_259 : f32 to vector<1x32xf32>
    %323 = arith.divf %321, %322 : vector<1x32xf32>
    %324 = arith.mulf %318, %318 : vector<1x32xf32>
    %325 = arith.subf %323, %324 : vector<1x32xf32>
    %cst_260 = arith.constant 0.000000e+00 : f32
    %326 = vector.broadcast %cst_260 : f32 to vector<1x32xf32>
    %327 = arith.maximumf %325, %326 : vector<1x32xf32>
    %328 = vector.broadcast %318 : vector<1x32xf32> to vector<2x32xf32>
    %329 = arith.subf %314, %328 : vector<2x32xf32>
    %cst_261 = arith.constant 9.99999974E-6 : f32
    %330 = vector.broadcast %cst_261 : f32 to vector<1x32xf32>
    %331 = arith.addf %327, %330 : vector<1x32xf32>
    %332 = math.rsqrt %331 : vector<1x32xf32>
    %333 = vector.broadcast %332 : vector<1x32xf32> to vector<2x32xf32>
    %334 = arith.mulf %329, %333 : vector<2x32xf32>
    %335 = vector.broadcast %304 : vector<1x32xf32> to vector<2x32xf32>
    %336 = arith.mulf %334, %335 : vector<2x32xf32>
    %337 = vector.broadcast %305 : vector<1x32xf32> to vector<2x32xf32>
    %338 = arith.addf %336, %337 : vector<2x32xf32>
    %cst_262 = arith.constant 0.000000e+00 : f32
    %339 = vector.broadcast %cst_262 : f32 to vector<2x32xf32>
    %340 = arith.maximumf %338, %339 : vector<2x32xf32>
    %c0_263 = arith.constant 0 : index
    %c0_264 = arith.constant 0 : index
    %341 = vector.load %arg21[%c0_263, %c0_264] : memref<32x10xf32, #tpu.memory_space<vmem>>, vector<32x10xf32>
    %cst_265 = arith.constant dense<0.000000e+00> : vector<2x10xf32>
    %342 = tpu.matmul %340, %341, %cst_265 {dimension_numbers = #tpu.dot_dimension_numbers<[1], [0], [0], [1], [0, 0, 1, 1], [], []>} : vector<2x32xf32>, vector<32x10xf32>, vector<2x10xf32> -> vector<2x10xf32>
    %c0_266 = arith.constant 0 : index
    %c0_267 = arith.constant 0 : index
    %343 = vector.load %arg22[%c0_266, %c0_267] : memref<1x10xf32, #tpu.memory_space<vmem>>, vector<1x10xf32>
    %344 = vector.broadcast %343 : vector<1x10xf32> to vector<2x10xf32>
    %345 = arith.addf %342, %344 : vector<2x10xf32>
    %c0_268 = arith.constant 0 : index
    %c0_269 = arith.constant 0 : index
    %346 = vector.load %arg23[%c0_268, %c0_269] : memref<2x10xf32, #tpu.memory_space<vmem>>, vector<2x10xf32>
    tpu.vector_store %arg23[%c0_268, %c0_269], %345 {strides = array<i32>} : memref<2x10xf32, #tpu.memory_space<vmem>>, vector<2x10xf32>,
    return
  }
  func.func @transform_0(%arg0: i32) -> (i32, i32) {
    %c0_i32 = arith.constant 0 : i32
    %c0_i32_0 = arith.constant 0 : i32
    %c0_i32_1 = arith.constant 0 : i32
    return %c0_i32, %c0_i32_0 : i32, i32
  }
  func.func @transform_1(%arg0: i32) -> (i32, i32) {
    %c0_i32 = arith.constant 0 : i32
    %c0_i32_0 = arith.constant 0 : i32
    %c0_i32_1 = arith.constant 0 : i32
    return %c0_i32, %c0_i32_0 : i32, i32
  }
  func.func @transform_2(%arg0: i32) -> (i32, i32) {
    %c0_i32 = arith.constant 0 : i32
    %c0_i32_0 = arith.constant 0 : i32
    %c0_i32_1 = arith.constant 0 : i32
    return %c0_i32, %c0_i32_0 : i32, i32
  }
  func.func @transform_3(%arg0: i32) -> (i32, i32) {
    %c0_i32 = arith.constant 0 : i32
    %c0_i32_0 = arith.constant 0 : i32
    %c0_i32_1 = arith.constant 0 : i32
    return %c0_i32, %c0_i32_0 : i32, i32
  }
  func.func @transform_4(%arg0: i32) -> (i32, i32) {
    %c0_i32 = arith.constant 0 : i32
    %c0_i32_0 = arith.constant 0 : i32
    %c0_i32_1 = arith.constant 0 : i32
    return %c0_i32, %c0_i32_0 : i32, i32
  }
  func.func @transform_5(%arg0: i32) -> (i32, i32, i32) {
    %c0_i32 = arith.constant 0 : i32
    %c0_i32_0 = arith.constant 0 : i32
    %c0_i32_1 = arith.constant 0 : i32
    %c0_i32_2 = arith.constant 0 : i32
    return %c0_i32, %c0_i32_0, %c0_i32_1 : i32, i32, i32
  }
  func.func @transform_6(%arg0: i32) -> (i32, i32, i32) {
    %c0_i32 = arith.constant 0 : i32
    %c0_i32_0 = arith.constant 0 : i32
    %c0_i32_1 = arith.constant 0 : i32
    %c0_i32_2 = arith.constant 0 : i32
    return %c0_i32, %c0_i32_0, %c0_i32_1 : i32, i32, i32
  }
  func.func @transform_7(%arg0: i32) -> (i32, i32) {
    %c0_i32 = arith.constant 0 : i32
    %c0_i32_0 = arith.constant 0 : i32
    %c0_i32_1 = arith.constant 0 : i32
    return %c0_i32, %c0_i32_0 : i32, i32
  }
  func.func @transform_8(%arg0: i32) -> (i32, i32) {
    %c0_i32 = arith.constant 0 : i32
    %c0_i32_0 = arith.constant 0 : i32
    %c0_i32_1 = arith.constant 0 : i32
    return %c0_i32, %c0_i32_0 : i32, i32
  }
  func.func @transform_9(%arg0: i32) -> (i32, i32) {
    %c0_i32 = arith.constant 0 : i32
    %c0_i32_0 = arith.constant 0 : i32
    %c0_i32_1 = arith.constant 0 : i32
    return %c0_i32, %c0_i32_0 : i32, i32
  }
  func.func @transform_10(%arg0: i32) -> (i32, i32, i32) {
    %c0_i32 = arith.constant 0 : i32
    %c0_i32_0 = arith.constant 0 : i32
    %c0_i32_1 = arith.constant 0 : i32
    %c0_i32_2 = arith.constant 0 : i32
    return %c0_i32, %c0_i32_0, %c0_i32_1 : i32, i32, i32
  }
  func.func @transform_11(%arg0: i32) -> (i32, i32, i32) {
    %c0_i32 = arith.constant 0 : i32
    %c0_i32_0 = arith.constant 0 : i32
    %c0_i32_1 = arith.constant 0 : i32
    %c0_i32_2 = arith.constant 0 : i32
    return %c0_i32, %c0_i32_0, %c0_i32_1 : i32, i32, i32
  }
  func.func @transform_12(%arg0: i32) -> (i32, i32) {
    %c0_i32 = arith.constant 0 : i32
    %c0_i32_0 = arith.constant 0 : i32
    %c0_i32_1 = arith.constant 0 : i32
    return %c0_i32, %c0_i32_0 : i32, i32
  }
  func.func @transform_13(%arg0: i32) -> (i32, i32) {
    %c0_i32 = arith.constant 0 : i32
    %c0_i32_0 = arith.constant 0 : i32
    %c0_i32_1 = arith.constant 0 : i32
    return %c0_i32, %c0_i32_0 : i32, i32
  }
  func.func @transform_14(%arg0: i32) -> (i32, i32) {
    %c0_i32 = arith.constant 0 : i32
    %c0_i32_0 = arith.constant 0 : i32
    %c0_i32_1 = arith.constant 0 : i32
    return %c0_i32, %c0_i32_0 : i32, i32
  }
  func.func @transform_15(%arg0: i32) -> (i32, i32, i32) {
    %c0_i32 = arith.constant 0 : i32
    %c0_i32_0 = arith.constant 0 : i32
    %c0_i32_1 = arith.constant 0 : i32
    %c0_i32_2 = arith.constant 0 : i32
    return %c0_i32, %c0_i32_0, %c0_i32_1 : i32, i32, i32
  }
  func.func @transform_16(%arg0: i32) -> (i32, i32, i32) {
    %c0_i32 = arith.constant 0 : i32
    %c0_i32_0 = arith.constant 0 : i32
    %c0_i32_1 = arith.constant 0 : i32
    %c0_i32_2 = arith.constant 0 : i32
    return %c0_i32, %c0_i32_0, %c0_i32_1 : i32, i32, i32
  }
  func.func @transform_17(%arg0: i32) -> (i32, i32) {
    %c0_i32 = arith.constant 0 : i32
    %c0_i32_0 = arith.constant 0 : i32
    %c0_i32_1 = arith.constant 0 : i32
    return %c0_i32, %c0_i32_0 : i32, i32
  }
  func.func @transform_18(%arg0: i32) -> (i32, i32) {
    %c0_i32 = arith.constant 0 : i32
    %c0_i32_0 = arith.constant 0 : i32
    %c0_i32_1 = arith.constant 0 : i32
    return %c0_i32, %c0_i32_0 : i32, i32
  }
  func.func @transform_19(%arg0: i32) -> (i32, i32) {
    %c0_i32 = arith.constant 0 : i32
    %c0_i32_0 = arith.constant 0 : i32
    %c0_i32_1 = arith.constant 0 : i32
    return %c0_i32, %c0_i32_0 : i32, i32
  }
  func.func @transform_20(%arg0: i32) -> (i32, i32) {
    %c0_i32 = arith.constant 0 : i32
    %c0_i32_0 = arith.constant 0 : i32
    %c0_i32_1 = arith.constant 0 : i32
    return %c0_i32, %c0_i32_0 : i32, i32
  }
  func.func @transform_21(%arg0: i32) -> (i32, i32) {
    %c0_i32 = arith.constant 0 : i32
    %c0_i32_0 = arith.constant 0 : i32
    %c0_i32_1 = arith.constant 0 : i32
    return %c0_i32, %c0_i32_0 : i32, i32
  }
  func.func @transform_22(%arg0: i32) -> (i32, i32) {
    %c0_i32 = arith.constant 0 : i32
    %c0_i32_0 = arith.constant 0 : i32
    %c0_i32_1 = arith.constant 0 : i32
    return %c0_i32, %c0_i32_0 : i32, i32
  }
}

</mosaic_0001>

<bundles_post_ra>
// kernel: omniconv_forward.1
= control target key start
LH: loop header
LB: loop body
LE: loop exit
PB: predicated region body
PF: predicated region fallthrough
CT: control target
= control target key end

     0   :  { %s13806_s0 = inlined_call_operand.vmem [shape: f32[512,9], index: 0, kind: input, shape index: {}]   ;;  %s13807_s1 = inlined_call_operand.vmem [shape: f32[9,32], index: 1, kind: input, shape index: {}]   ;;  %s13808_s2 = inlined_call_operand.vmem [shape: f32[1,32], index: 2, kind: input, shape index: {}]   ;;  %s13809_s3 = inlined_call_operand.vmem [shape: f32[1,32], index: 3, kind: input, shape index: {}]   ;;  %s13810_s4 = inlined_call_operand.vmem [shape: f32[1,32], index: 4, kind: input, shape index: {}]   ;;  %s13811_s5 = inlined_call_operand.vmem [shape: f32[9,128,128], index: 5, kind: input, shape index: {}]   ;;  %s13812_s6 = inlined_call_operand.vmem [shape: f32[9,32,32], index: 6, kind: input, shape index: {}]   ;;  %s13813_s7 = inlined_call_operand.vmem [shape: f32[1,32], index: 7, kind: input, shape index: {}]   ;;  %s13814_s8 = inlined_call_operand.vmem [shape: f32[1,32], index: 8, kind: input, shape index: {}]   ;;  %s13815_s9 = inlined_call_operand.vmem [shape: f32[1,32], index: 9, kind: input, shape index: {}]   ;;  %s13816_s10 = inlined_call_operand.vmem [shape: f32[9,32,32], index: 10, kind: input, shape index: {}]   ;;  %s13817_s11 = inlined_call_operand.vmem [shape: f32[9,32,32], index: 11, kind: input, shape index: {}]   ;;  %s13818_s12 = inlined_call_operand.vmem [shape: f32[1,32], index: 12, kind: input, shape index: {}]   ;;  %s13819_s13 = inlined_call_operand.vmem [shape: f32[1,32], index: 13, kind: input, shape index: {}]   ;;  %s13820_s14 = inlined_call_operand.vmem [shape: f32[1,32], index: 14, kind: input, shape index: {}]   ;;  %s13821_s15 = inlined_call_operand.vmem [shape: f32[9,8,8], index: 15, kind: input, shape index: {}]   ;;  %s13822_s16 = inlined_call_operand.vmem [shape: f32[9,32,32], index: 16, kind: input, shape index: {}]   ;;  %s13823_s17 = inlined_call_operand.vmem [shape: f32[1,32], index: 17, kind: input, shape index: {}]   ;;  %s13824_s18 = inlined_call_operand.vmem [shape: f32[1,32], index: 18, kind: input, shape index: {}]   ;;  %s13825_s19 = inlined_call_operand.vmem [shape: f32[1,32], index: 19, kind: input, shape index: {}]   ;;  %s13826_s20 = inlined_call_operand.vmem [shape: f32[32,10], index: 20, kind: input, shape index: {}]   ;;  %s13827_s21 = inlined_call_operand.vmem [shape: f32[1,10], index: 21, kind: input, shape index: {}]   ;;  %s13828_s22 = inlined_call_operand.hbm [shape: f32[2,10], index: 22, kind: output, shape index: {}]  }
   0x1   :  { %13833 = sst [smem:[#allocation5_spill]] %s13806_s0 }
   0x2   :  { %13834 = sst [smem:[#allocation6_spill]] %s13807_s1 }
   0x3   :  { %13835 = sst [smem:[#allocation7_spill]] %s13808_s2 }
   0x4   :  { %13836 = sst [smem:[#allocation8_spill]] %s13809_s3 }
   0x5   :  { %13837 = sst [smem:[#allocation9_spill]] %s13810_s4 }
   0x6   :  { %13838 = sst [smem:[#allocation10_spill]] %s13811_s5 }
   0x7   :  { %13839 = sst [smem:[#allocation11_spill]] %s13812_s6 }
   0x8   :  { %s13840_s29 = sld [smem:[#allocation6_spill]]  ;;  %vm331_vm0 = vcmask 1040384   ;;  %s13841_s1 = sld [smem:[#allocation5_spill]]  ;;  %vm11295_vm1 = vmmov 1   ;;  %vm138_vm3 = vcmask 72704  }
   0x9   :  { %vm10509_vm2 = vmpackc.low %vm331_vm0, %vm11295_vm1 }
   0xe   :  { %v136_v0 = vld [vmem:[%s13840_s29] sm:$0xff]  ;;  %v137_v1 = vld [vmem:[%s13840_s29 + $0x8] sm:$0x1]  ;;  %v74_v5 = vld [vmem:[%s13841_s1 + $0x10] sm:$0xff] }
   0xf   :  { %v72_v2 = vld [vmem:[%s13841_s1] sm:$0xff]  ;;  %v10508_v3 = vpack.c.bf16 %v137_v1, %v136_v0  ;;  %v73_v4 = vld [vmem:[%s13841_s1 + $0x8] sm:$0xff]  ;;  %v75_v6 = vld [vmem:[%s13841_s1 + $0x18] sm:$0xff] }
  0x10   :  { %9213 = vmatprep.mubr.msk.f32.mxu0 %vm138_vm3, %v72_v2  ;;  %v76_v7 = vld [vmem:[%s13841_s1 + $0x20] sm:$0xff]  ;;  %v77_v8 = vld [vmem:[%s13841_s1 + $0x28] sm:$0xff]  ;;  %v78_v9 = vld [vmem:[%s13841_s1 + $0x30] sm:$0xff] }
  0x11   :  { %10510 = vmatprep.subr.msk.bf16.mxu0 %vm10509_vm2, %v10508_v3  ;;  %v79_v10 = vld [vmem:[%s13841_s1 + $0x38] sm:$0xff]  ;;  %v80_v11 = vld [vmem:[%s13841_s1 + $0x40] sm:$0xff]  ;;  %v81_v12 = vld [vmem:[%s13841_s1 + $0x48] sm:$0xff] }
  0x12   :  { %10513 = vmatpush3.bf16.msk.msra.mxu0 %vm10509_vm2, %v10508_v3  ;;  %v82_v13 = vld [vmem:[%s13841_s1 + $0x50] sm:$0xff] }
  0x15   :  { %9214 = vmatmul.mubr.msk.f32.vlgmr.msra.gmra.mrb[0].mxu0 %vm138_vm3, %v73_v4 }
  0x16   :  { %9216 = vmatprep.mubr.msk.f32.mxu0 %vm138_vm3, %v74_v5 }
  0x19   :  { %9217 = vmatmul.mubr.msk.f32.gmra.mrb[2].mxu0 %vm138_vm3, %v75_v6 }
  0x1a   :  { %9219 = vmatprep.mubr.msk.f32.mxu0 %vm138_vm3, %v76_v7 }
  0x1d   :  { %9220 = vmatmul.mubr.msk.f32.gmra.mrb[4].mxu0 %vm138_vm3, %v77_v8 }
  0x1e   :  { %9222 = vmatprep.mubr.msk.f32.mxu0 %vm138_vm3, %v78_v9 }
  0x21   :  { %9223 = vmatmul.mubr.msk.f32.gmra.mrb[6].mxu0 %vm138_vm3, %v79_v10 }
  0x22   :  { %9225 = vmatprep.mubr.msk.f32.mxu0 %vm138_vm3, %v80_v11 }
  0x23   :  { %27 = vsyncpa [#allocation3], 0  ;;  %v83_v14 = vld [vmem:[%s13841_s1 + $0x58] sm:$0xff]  ;;  %v84_v15 = vld [vmem:[%s13841_s1 + $0x60] sm:$0xff]  ;;  %s13842_s24 = sld [smem:[#allocation10_spill]]  ;;  %s13843_s27 = sld [smem:[#allocation7_spill]] }
  0x24   :  { %v85_v16 = vld [vmem:[%s13841_s1 + $0x68] sm:$0xff]  ;;  %v86_v17 = vld [vmem:[%s13841_s1 + $0x70] sm:$0xff]  ;;  %v87_v18 = vld [vmem:[%s13841_s1 + $0x78] sm:$0xff]  ;;  %vm793_vm4 = vcmask 261120   ;;  %s13853_s29 = sld [smem:[#allocation8_spill]]  ;;  %s13854_s0 = sld [smem:[#allocation9_spill]] }
  0x25   :  { %9226 = vmatmul.mubr.msk.f32.gmra.mrb[8].mxu0 %vm138_vm3, %v81_v12  ;;  %v88_v19 = vld [vmem:[%s13841_s1 + $0x80] sm:$0xff]  ;;  %v89_v20 = vld [vmem:[%s13841_s1 + $0x88] sm:$0xff]  ;;  %v90_v21 = vld [vmem:[%s13841_s1 + $0x90] sm:$0xff]  ;;  %vm11297_vm5 = vmmov 0   ;;  %vm6345_vm6 = vcmask 64512   ;;  %vm7745_vm7 = vcmask 254976  }
  0x26   :  { %9228 = vmatprep.mubr.msk.f32.mxu0 %vm138_vm3, %v82_v13  ;;  %v91_v22 = vld [vmem:[%s13841_s1 + $0x98] sm:$0xff]  ;;  %v92_v23 = vld [vmem:[%s13841_s1 + $0xa0] sm:$0xff]  ;;  %v93_v24 = vld [vmem:[%s13841_s1 + $0xa8] sm:$0xff]  ;;  %s11299_s30 = smov [#allocation2]   ;;  %vm7870_vm8 = vcmask 74752  }
  0x27   :  { %v94_v25 = vld [vmem:[%s13841_s1 + $0xb0] sm:$0xff]  ;;  %v95_v26 = vld [vmem:[%s13841_s1 + $0xb8] sm:$0xff]  ;;  %v96_v27 = vld [vmem:[%s13841_s1 + $0xc0] sm:$0xff] }
  0x28   :  { %v97_v28 = vld [vmem:[%s13841_s1 + $0xc8] sm:$0xff]  ;;  %v98_v29 = vld [vmem:[%s13841_s1 + $0xd0] sm:$0xff]  ;;  %v99_v30 = vld [vmem:[%s13841_s1 + $0xd8] sm:$0xff] }
  0x29   :  { %9229 = vmatmul.mubr.msk.f32.gmra.mrb[10].mxu0 %vm138_vm3, %v83_v14  ;;  %v100_v31 = vld [vmem:[%s13841_s1 + $0xe0] sm:$0xff]  ;;  %v101_v32 = vld [vmem:[%s13841_s1 + $0xe8] sm:$0xff]  ;;  %v102_v33 = vld [vmem:[%s13841_s1 + $0xf0] sm:$0xff] }
  0x2a   :  { %9231 = vmatprep.mubr.msk.f32.mxu0 %vm138_vm3, %v84_v15  ;;  %v103_v34 = vld [vmem:[%s13841_s1 + $0xf8] sm:$0xff]  ;;  %v104_v35 = vld [vmem:[%s13841_s1 + $0x100] sm:$0xff]  ;;  %v105_v36 = vld [vmem:[%s13841_s1 + $0x108] sm:$0xff] }
  0x2b   :  { %v106_v37 = vld [vmem:[%s13841_s1 + $0x110] sm:$0xff]  ;;  %v107_v38 = vld [vmem:[%s13841_s1 + $0x118] sm:$0xff]  ;;  %v108_v39 = vld [vmem:[%s13841_s1 + $0x120] sm:$0xff] }
  0x2c   :  { %v109_v40 = vld [vmem:[%s13841_s1 + $0x128] sm:$0xff]  ;;  %v110_v41 = vld [vmem:[%s13841_s1 + $0x130] sm:$0xff]  ;;  %v111_v42 = vld [vmem:[%s13841_s1 + $0x138] sm:$0xff] }
  0x2d   :  { %9232 = vmatmul.mubr.msk.f32.gmra.mrb[12].mxu0 %vm138_vm3, %v85_v16  ;;  %v112_v43 = vld [vmem:[%s13841_s1 + $0x140] sm:$0xff]  ;;  %v113_v44 = vld [vmem:[%s13841_s1 + $0x148] sm:$0xff]  ;;  %v114_v45 = vld [vmem:[%s13841_s1 + $0x150] sm:$0xff] }
  0x2e   :  { %9234 = vmatprep.mubr.msk.f32.mxu0 %vm138_vm3, %v86_v17  ;;  %v115_v46 = vld [vmem:[%s13841_s1 + $0x158] sm:$0xff]  ;;  %v116_v47 = vld [vmem:[%s13841_s1 + $0x160] sm:$0xff]  ;;  %v117_v48 = vld [vmem:[%s13841_s1 + $0x168] sm:$0xff] }
  0x2f   :  { %v118_v49 = vld [vmem:[%s13841_s1 + $0x170] sm:$0xff]  ;;  %v119_v50 = vld [vmem:[%s13841_s1 + $0x178] sm:$0xff]  ;;  %v120_v51 = vld [vmem:[%s13841_s1 + $0x180] sm:$0xff] }
  0x30   :  { %v121_v52 = vld [vmem:[%s13841_s1 + $0x188] sm:$0xff]  ;;  %v122_v53 = vld [vmem:[%s13841_s1 + $0x190] sm:$0xff]  ;;  %v123_v54 = vld [vmem:[%s13841_s1 + $0x198] sm:$0xff] }
  0x31   :  { %9235 = vmatmul.mubr.msk.f32.gmra.mrb[14].mxu0 %vm138_vm3, %v87_v18  ;;  %v124_v55 = vld [vmem:[%s13841_s1 + $0x1a0] sm:$0xff]  ;;  %v125_v56 = vld [vmem:[%s13841_s1 + $0x1a8] sm:$0xff]  ;;  %v126_v57 = vld [vmem:[%s13841_s1 + $0x1b0] sm:$0xff] }
  0x32   :  { %9237 = vmatprep.mubr.msk.f32.mxu0 %vm138_vm3, %v88_v19  ;;  %v127_v58 = vld [vmem:[%s13841_s1 + $0x1b8] sm:$0xff]  ;;  %v128_v59 = vld [vmem:[%s13841_s1 + $0x1c0] sm:$0xff]  ;;  %v129_v60 = vld [vmem:[%s13841_s1 + $0x1c8] sm:$0xff] }
  0x33   :  { %v130_v61 = vld [vmem:[%s13841_s1 + $0x1d0] sm:$0xff]  ;;  %v131_v62 = vld [vmem:[%s13841_s1 + $0x1d8] sm:$0xff]  ;;  %v132_v63 = vld [vmem:[%s13841_s1 + $0x1e0] sm:$0xff] }
  0x34   :  { %v133_v0 = vld [vmem:[%s13841_s1 + $0x1e8] sm:$0xff]  ;;  %v134_v1 = vld [vmem:[%s13841_s1 + $0x1f0] sm:$0xff]  ;;  %v135_v2 = vld [vmem:[%s13841_s1 + $0x1f8] sm:$0xff] }
  0x35   :  { %9238 = vmatmul.mubr.msk.f32.gmra.mrb[16].mxu0 %vm138_vm3, %v89_v20 }
  0x36   :  { %9240 = vmatprep.mubr.msk.f32.mxu0 %vm138_vm3, %v90_v21 }
  0x39   :  { %9241 = vmatmul.mubr.msk.f32.gmra.mrb[18].mxu0 %vm138_vm3, %v91_v22 }
  0x3a   :  { %9243 = vmatprep.mubr.msk.f32.mxu0 %vm138_vm3, %v92_v23 }
  0x3d   :  { %9244 = vmatmul.mubr.msk.f32.gmra.mrb[20].mxu0 %vm138_vm3, %v93_v24 }
  0x3e   :  { %9246 = vmatprep.mubr.msk.f32.mxu0 %vm138_vm3, %v94_v25 }
  0x41   :  { %9247 = vmatmul.mubr.msk.f32.gmra.mrb[22].mxu0 %vm138_vm3, %v95_v26 }
  0x42   :  { %9249 = vmatprep.mubr.msk.f32.mxu0 %vm138_vm3, %v96_v27 }
  0x45   :  { %9250 = vmatmul.mubr.msk.f32.gmra.mrb[24].mxu0 %vm138_vm3, %v97_v28 }
  0x46   :  { %9252 = vmatprep.mubr.msk.f32.mxu0 %vm138_vm3, %v98_v29 }
  0x49   :  { %9253 = vmatmul.mubr.msk.f32.gmra.mrb[26].mxu0 %vm138_vm3, %v99_v30 }
  0x4a   :  { %9255 = vmatprep.mubr.msk.f32.mxu0 %vm138_vm3, %v100_v31 }
  0x4d   :  { %9256 = vmatmul.mubr.msk.f32.gmra.mrb[28].mxu0 %vm138_vm3, %v101_v32 }
  0x4e   :  { %9258 = vmatprep.mubr.msk.f32.mxu0 %vm138_vm3, %v102_v33 }
  0x51   :  { %9259 = vmatmul.mubr.msk.f32.gmra.mrb[30].mxu0 %vm138_vm3, %v103_v34 }
  0x52   :  { %9261 = vmatprep.mubr.msk.f32.mxu0 %vm138_vm3, %v104_v35 }
  0x55   :  { %9262 = vmatmul.mubr.msk.f32.gmra.mrb[32].mxu0 %vm138_vm3, %v105_v36 }
  0x56   :  { %9264 = vmatprep.mubr.msk.f32.mxu0 %vm138_vm3, %v106_v37 }
  0x59   :  { %9265 = vmatmul.mubr.msk.f32.gmra.mrb[34].mxu0 %vm138_vm3, %v107_v38 }
  0x5a   :  { %9267 = vmatprep.mubr.msk.f32.mxu0 %vm138_vm3, %v108_v39 }
  0x5d   :  { %9268 = vmatmul.mubr.msk.f32.gmra.mrb[36].mxu0 %vm138_vm3, %v109_v40 }
  0x5e   :  { %9270 = vmatprep.mubr.msk.f32.mxu0 %vm138_vm3, %v110_v41 }
  0x61   :  { %9271 = vmatmul.mubr.msk.f32.gmra.mrb[38].mxu0 %vm138_vm3, %v111_v42 }
  0x62   :  { %9273 = vmatprep.mubr.msk.f32.mxu0 %vm138_vm3, %v112_v43 }
  0x65   :  { %9274 = vmatmul.mubr.msk.f32.gmra.mrb[40].mxu0 %vm138_vm3, %v113_v44 }
  0x66   :  { %9276 = vmatprep.mubr.msk.f32.mxu0 %vm138_vm3, %v114_v45 }
  0x69   :  { %9277 = vmatmul.mubr.msk.f32.gmra.mrb[42].mxu0 %vm138_vm3, %v115_v46 }
  0x6a   :  { %9279 = vmatprep.mubr.msk.f32.mxu0 %vm138_vm3, %v116_v47 }
  0x6d   :  { %9280 = vmatmul.mubr.msk.f32.gmra.mrb[44].mxu0 %vm138_vm3, %v117_v48  ;;  %v11796_v48 = vld [vmem:[%s13843_s27] ss:$0 sm:$0xff] }
  0x6e   :  { %9282 = vmatprep.mubr.msk.f32.mxu0 %vm138_vm3, %v118_v49 }
  0x71   :  { %9283 = vmatmul.mubr.msk.f32.gmra.mrb[46].mxu0 %vm138_vm3, %v119_v50 }
  0x72   :  { %9285 = vmatprep.mubr.msk.f32.mxu0 %vm138_vm3, %v120_v51 }
  0x75   :  { %9286 = vmatmul.mubr.msk.f32.gmra.mrb[48].mxu0 %vm138_vm3, %v121_v52 }
  0x76   :  { %9288 = vmatprep.mubr.msk.f32.mxu0 %vm138_vm3, %v122_v53 }
  0x79   :  { %9289 = vmatmul.mubr.msk.f32.gmra.mrb[50].mxu0 %vm138_vm3, %v123_v54 }
  0x7a   :  { %9291 = vmatprep.mubr.msk.f32.mxu0 %vm138_vm3, %v124_v55 }
  0x7d   :  { %9292 = vmatmul.mubr.msk.f32.gmra.mrb[52].mxu0 %vm138_vm3, %v125_v56 }
  0x7e   :  { %9294 = vmatprep.mubr.msk.f32.mxu0 %vm138_vm3, %v126_v57 }
  0x81   :  { %9295 = vmatmul.mubr.msk.f32.gmra.mrb[54].mxu0 %vm138_vm3, %v127_v58 }
  0x82   :  { %9297 = vmatprep.mubr.msk.f32.mxu0 %vm138_vm3, %v128_v59 }
  0x85   :  { %9298 = vmatmul.mubr.msk.f32.gmra.mrb[56].mxu0 %vm138_vm3, %v129_v60 }
  0x86   :  { %9300 = vmatprep.mubr.msk.f32.mxu0 %vm138_vm3, %v130_v61 }
  0x89   :  { %9301 = vmatmul.mubr.msk.f32.gmra.mrb[58].mxu0 %vm138_vm3, %v131_v62 }
  0x8a   :  { %9303 = vmatprep.mubr.msk.f32.mxu0 %vm138_vm3, %v132_v63 }
  0x8d   :  { %9304 = vmatmul.mubr.msk.f32.gmra.mrb[60].mxu0 %vm138_vm3, %v133_v0 }
  0x8e   :  { %9306 = vmatprep.mubr.msk.f32.mxu0 %vm138_vm3, %v134_v1 }
  0x91   :  { %9307 = vmatmul.mubr.msk.f32.gmra.mrb[62].mxu0 %vm138_vm3, %v135_v2  ;;  %v984_v2 = vld [vmem:[%s13842_s24] sm:$0xff] }
  0x92   :  { %9341 = vmatprep.mubr.f32.mxu1 %v984_v2 }
  0xe8   :  { %v11677_v3 = vpop.f32.mrb[0].mxu0 }
  0xe9   :  { %v11679_v4 = vpop.f32.mrb[1].mxu0 }
  0xec   :  { %v11681_v5 = vpop.f32.mrb[2].mxu0 }
  0xed   :  { %v11683_v6 = vpop.f32.mrb[3].mxu0 }
  0xf0   :  { %v11685_v7 = vpop.f32.mrb[4].mxu0 }
  0xf1   :  { %v11687_v8 = vpop.f32.mrb[5].mxu0 }
  0xf4   :  { %v11689_v9 = vpop.f32.mrb[6].mxu0 }
  0xf5   :  { %v11691_v10 = vpop.f32.mrb[7].mxu0 }
  0xf8   :  { %v11693_v11 = vpop.f32.mrb[8].mxu0 }
  0xf9   :  { %v11695_v12 = vpop.f32.mrb[9].mxu0 }
  0xfc   :  { %v11697_v13 = vpop.f32.mrb[10].mxu0 }
  0xfd   :  { %v11699_v14 = vpop.f32.mrb[11].mxu0 }
 0x100   :  { %v11701_v15 = vpop.f32.mrb[12].mxu0 }
 0x101   :  { %v11703_v16 = vpop.f32.mrb[13].mxu0 }
 0x104   :  { %v11705_v17 = vpop.f32.mrb[14].mxu0 }
 0x105   :  { %v11707_v18 = vpop.f32.mrb[15].mxu0 }
 0x108   :  { %v9239_v19 = vpop.f32.mrb[16].mxu0 }
 0x109   :  { %v724_v20 = vmax.f32 %v11677_v3, %v9239_v19  ;;  %v481_v21 = vpop.f32.mrb[17].mxu0 }
 0x10a   :  { %v723_v22 = vmax.f32 %v11679_v4, %v481_v21  ;;  %v8006_v4 = vld [vmem:[%s13842_s24 + $0x100] sm:$0xff] }
 0x10b   :  { %9517 = vmatprep.mubr.f32.mxu0 %v8006_v4 }
 0x10c   :  { %v11711_v23 = vpop.f32.mrb[18].mxu0 }
 0x10d   :  { %v726_v24 = vmax.f32 %v11681_v5, %v11711_v23  ;;  %v11715_v25 = vpop.f32.mrb[19].mxu0 }
 0x10e   :  { %v725_v26 = vmax.f32 %v11683_v6, %v11715_v25 }
 0x110   :  { %v11719_v27 = vpop.f32.mrb[20].mxu0 }
 0x111   :  { %v728_v28 = vmax.f32 %v11685_v7, %v11719_v27  ;;  %v11723_v29 = vpop.f32.mrb[21].mxu0 }
 0x112   :  { %v727_v30 = vmax.f32 %v11687_v8, %v11723_v29 }
 0x114   :  { %v11727_v31 = vpop.f32.mrb[22].mxu0 }
 0x115   :  { %v730_v32 = vmax.f32 %v11689_v9, %v11727_v31  ;;  %v11731_v33 = vpop.f32.mrb[23].mxu0 }
 0x118   :  { %v11735_v35 = vpop.f32.mrb[24].mxu0 }
 0x119   :  { %v11739_v37 = vpop.f32.mrb[25].mxu0 }
 0x11c   :  { %v11743_v39 = vpop.f32.mrb[26].mxu0 }
 0x11d   :  { %v11747_v41 = vpop.f32.mrb[27].mxu0 }
 0x120   :  { %v11751_v43 = vpop.f32.mrb[28].mxu0 }
 0x121   :  { %v11755_v45 = vpop.f32.mrb[29].mxu0 }
 0x124   :  { %v11759_v47 = vpop.f32.mrb[30].mxu0 }
 0x125   :  { %v11763_v49 = vpop.f32.mrb[31].mxu0 }
 0x128   :  { %v9263_v51 = vpop.f32.mrb[32].mxu0 }
 0x129   :  { %v561_v52 = vpop.f32.mrb[33].mxu0 }
 0x12c   :  { %v9266_v53 = vpop.f32.mrb[34].mxu0 }
 0x12d   :  { %v571_v54 = vpop.f32.mrb[35].mxu0 }
 0x130   :  { %v9269_v55 = vpop.f32.mrb[36].mxu0 }
 0x131   :  { %v581_v56 = vpop.f32.mrb[37].mxu0 }
 0x134   :  { %v11767_v57 = vpop.f32.mrb[38].mxu0 }
 0x135   :  { %v11769_v58 = vpop.f32.mrb[39].mxu0 }
 0x138   :  { %v11771_v59 = vpop.f32.mrb[40].mxu0 }
 0x139   :  { %v11773_v60 = vpop.f32.mrb[41].mxu0 }
 0x13c   :  { %v11775_v61 = vpop.f32.mrb[42].mxu0 }
 0x13d   :  { %v11777_v62 = vpop.f32.mrb[43].mxu0 }
 0x140   :  { %v11779_v63 = vpop.f32.mrb[44].mxu0 }
 0x141   :  { %v11781_v0 = vpop.f32.mrb[45].mxu0 }
 0x144   :  { %v11783_v1 = vpop.f32.mrb[46].mxu0 }
 0x145   :  { %v11788_v3 = vpop.f32.mrb[47].mxu0 }
 0x148   :  { %v9287_v19 = vpop.f32.mrb[48].mxu0 }
 0x149   :  { %v740_v21 = vmax.f32 %v9263_v51, %v9287_v19  ;;  %v641_v50 = vpop.f32.mrb[49].mxu0 }
 0x14a   :  { %v739_v46 = vmax.f32 %v561_v52, %v641_v50 }
 0x14b   :  { %v756_v44 = vmax.f32 %v724_v20, %v740_v21 }
 0x14c   :  { %v755_v42 = vmax.f32 %v723_v22, %v739_v46  ;;  %v9290_v40 = vpop.f32.mrb[50].mxu0 }
 0x14d   :  { %v11799_v2 = vadd.f32 %v11796_v48, %v756_v44  ;;  %v742_v38 = vmax.f32 %v9266_v53, %v9290_v40  ;;  %v651_v36 = vpop.f32.mrb[51].mxu0 }
 0x14e   :  { %v11802_v4 = vadd.f32 %v11796_v48, %v755_v42  ;;  %v741_v51 = vmax.f32 %v571_v54, %v651_v36 }
 0x14f   :  { %v795_v19 = vsel %vm793_vm4, %v11799_v2, 0.0  ;;  %v834_v34 = vmul.f32 %v11799_v2, %v11799_v2  ;;  %v758_v20 = vmax.f32 %v726_v24, %v742_v38 }
 0x150   :  { %v794_v22 = vsel %vm793_vm4, %v11802_v4, 0.0  ;;  %v833_v40 = vmul.f32 %v11802_v4, %v11802_v4  ;;  %v757_v36 = vmax.f32 %v725_v26, %v741_v51  ;;  %v9293_v42 = vpop.f32.mrb[52].mxu0 }
 0x151   :  { %v850_v44 = vsel %vm793_vm4, %v834_v34, 0.0  ;;  %v796_v46 = vadd.f32 %v795_v19, %v794_v22  ;;  %v11820_v50 = vadd.f32 %v11796_v48, %v758_v20  ;;  %v744_v52 = vmax.f32 %v9269_v55, %v9293_v42  ;;  %v661_v5 = vpop.f32.mrb[53].mxu0 }
 0x152   :  { %v849_v23 = vsel %vm793_vm4, %v833_v40, 0.0  ;;  %v11824_v24 = vadd.f32 %v11796_v48, %v757_v36  ;;  %v743_v38 = vmax.f32 %v581_v56, %v661_v5 }
 0x153   :  { %v851_v53 = vadd.f32 %v850_v44, %v849_v23  ;;  %v836_v6 = vmul.f32 %v11820_v50, %v11820_v50  ;;  %v760_v25 = vmax.f32 %v728_v28, %v744_v52  ;;  %v799_v7 = vsel %vm793_vm4, %v11820_v50, 0.0 }
 0x154   :  { %v797_v26 = vsel %vm793_vm4, %v11824_v24, 0.0  ;;  %v835_v34 = vmul.f32 %v11824_v24, %v11824_v24  ;;  %v759_v54 = vmax.f32 %v727_v30, %v743_v38  ;;  %v9296_v55 = vpop.f32.mrb[54].mxu0 }
 0x155   :  { %v798_v56 = vadd.f32 %v797_v26, %v796_v46  ;;  %v11839_v21 = vadd.f32 %v11796_v48, %v760_v25  ;;  %v746_v51 = vmax.f32 %v11767_v57, %v9296_v55  ;;  %v671_v19 = vpop.f32.mrb[55].mxu0  ;;  %v854_v8 = vsel %vm793_vm4, %v836_v6, 0.0 }
 0x156   :  { %v852_v27 = vsel %vm793_vm4, %v835_v34, 0.0  ;;  %v11846_v28 = vadd.f32 %v11796_v48, %v759_v54  ;;  %v745_v20 = vmax.f32 %v11769_v58, %v671_v19  ;;  %v13844_v58 = vmax.f32 %v11691_v10, %v11731_v33 }
 0x157   :  { %v853_v29 = vadd.f32 %v852_v27, %v851_v53  ;;  %v838_v30 = vmul.f32 %v11839_v21, %v11839_v21  ;;  %v800_v22 = vadd.f32 %v799_v7, %v798_v56  ;;  %v762_v36 = vmax.f32 %v730_v32, %v746_v51 }
 0x158   :  { %v801_v57 = vsel %vm793_vm4, %v11846_v28, 0.0  ;;  %v837_v40 = vmul.f32 %v11846_v28, %v11846_v28  ;;  %v761_v42 = vmax.f32 %v13844_v58, %v745_v20  ;;  %v9299_v44 = vpop.f32.mrb[56].mxu0  ;;  %v803_v46 = vsel %vm793_vm4, %v11839_v21, 0.0 }
 0x159   :  { %v802_v52 = vadd.f32 %v801_v57, %v800_v22  ;;  %v855_v5 = vadd.f32 %v854_v8, %v853_v29  ;;  %v748_v23 = vmax.f32 %v11771_v59, %v9299_v44  ;;  %v681_v38 = vpop.f32.mrb[57].mxu0  ;;  %v11867_v6 = vadd.f32 %v11796_v48, %v762_v36 }
 0x15a   :  { %v856_v53 = vsel %vm793_vm4, %v837_v40, 0.0  ;;  %v11870_v9 = vadd.f32 %v11796_v48, %v761_v42  ;;  %v747_v10 = vmax.f32 %v11773_v60, %v681_v38  ;;  %v13845_v33 = vmax.f32 %v11693_v11, %v11735_v35 }
 0x15b   :  { %v857_v31 = vadd.f32 %v856_v53, %v855_v5  ;;  %v804_v32 = vadd.f32 %v803_v46, %v802_v52  ;;  %v858_v26 = vsel %vm793_vm4, %v838_v30, 0.0  ;;  %v840_v59 = vmul.f32 %v11867_v6, %v11867_v6 }
 0x15c   :  { %v764_v25 = vmax.f32 %v13845_v33, %v748_v23  ;;  %v805_v34 = vsel %vm793_vm4, %v11870_v9, 0.0  ;;  %v839_v54 = vmul.f32 %v11870_v9, %v11870_v9  ;;  %v9302_v55 = vpop.f32.mrb[58].mxu0  ;;  %v13846_v11 = vmax.f32 %v11695_v12, %v11739_v37 }
 0x15d   :  { %v806_v56 = vadd.f32 %v805_v34, %v804_v32  ;;  %v859_v60 = vadd.f32 %v858_v26, %v857_v31  ;;  %v691_v19 = vpop.f32.mrb[59].mxu0  ;;  %v750_v27 = vmax.f32 %v11775_v61, %v9302_v55  ;;  %v807_v8 = vsel %vm793_vm4, %v11867_v6, 0.0 }
 0x15e   :  { %v11884_v51 = vadd.f32 %v11796_v48, %v764_v25  ;;  %v763_v35 = vmax.f32 %v13846_v11, %v747_v10  ;;  %v860_v7 = vsel %vm793_vm4, %v839_v54, 0.0  ;;  %v749_v20 = vmax.f32 %v11777_v62, %v691_v19 }
 0x15f   :  { %v862_v29 = vsel %vm793_vm4, %v840_v59, 0.0  ;;  %v861_v30 = vadd.f32 %v860_v7, %v859_v60  ;;  %v808_v37 = vadd.f32 %v807_v8, %v806_v56  ;;  %v13847_v57 = vmax.f32 %v11697_v13, %v11743_v39 }
 0x160   :  { %v11896_v22 = vadd.f32 %v11796_v48, %v763_v35  ;;  %v842_v12 = vmul.f32 %v11884_v51, %v11884_v51  ;;  %v13848_v61 = vmax.f32 %v11699_v14, %v11747_v41  ;;  %v9305_v36 = vpop.f32.mrb[60].mxu0  ;;  %v811_v14 = vsel %vm793_vm4, %v11884_v51, 0.0 }
 0x161   :  { %v766_v40 = vmax.f32 %v13847_v57, %v750_v27  ;;  %v863_v44 = vadd.f32 %v862_v29, %v861_v30  ;;  %v701_v46 = vpop.f32.mrb[61].mxu0  ;;  %v752_v39 = vmax.f32 %v11779_v63, %v9305_v36  ;;  %v13849_v25 = vmax.f32 %v11701_v15, %v11751_v43 }
 0x162   :  { %v765_v62 = vmax.f32 %v13848_v61, %v749_v20  ;;  %v809_v58 = vsel %vm793_vm4, %v11896_v22, 0.0  ;;  %v841_v42 = vmul.f32 %v11896_v22, %v11896_v22  ;;  %v751_v23 = vmax.f32 %v11781_v0, %v701_v46 }
 0x163   :  { %v810_v52 = vadd.f32 %v809_v58, %v808_v37  ;;  %v11911_v5 = vadd.f32 %v11796_v48, %v766_v40  ;;  %v866_v38 = vsel %vm793_vm4, %v842_v12, 0.0  ;;  %v768_v26 = vmax.f32 %v13849_v25, %v752_v39 }
 0x164   :  { %v11914_v13 = vadd.f32 %v11796_v48, %v765_v62  ;;  %v864_v41 = vsel %vm793_vm4, %v841_v42, 0.0  ;;  %v9308_v32 = vpop.f32.mrb[62].mxu0  ;;  %v13850_v0 = vmax.f32 %v11703_v16, %v11755_v45  ;;  %v13851_v19 = vmax.f32 %v11705_v17, %v11759_v47 }
 0x165   :  { %v865_v53 = vadd.f32 %v864_v41, %v863_v44  ;;  %v844_v10 = vmul.f32 %v11911_v5, %v11911_v5  ;;  %v812_v31 = vadd.f32 %v811_v14, %v810_v52  ;;  %v711_v34 = vpop.f32.mrb[63].mxu0  ;;  %v815_v54 = vsel %vm793_vm4, %v11911_v5, 0.0 }
 0x166   :  { %v813_v33 = vsel %vm793_vm4, %v11914_v13, 0.0  ;;  %v843_v63 = vmul.f32 %v11914_v13, %v11914_v13  ;;  %v767_v59 = vmax.f32 %v13850_v0, %v751_v23  ;;  %v754_v60 = vmax.f32 %v11783_v1, %v9308_v32 }
 0x167   :  { %v814_v55 = vadd.f32 %v813_v33, %v812_v31  ;;  %v867_v56 = vadd.f32 %v866_v38, %v865_v53  ;;  %v11939_v35 = vadd.f32 %v11796_v48, %v768_v26  ;;  %v753_v43 = vmax.f32 %v11788_v3, %v711_v34 }
 0x168   :  { %v868_v11 = vsel %vm793_vm4, %v843_v63, 0.0  ;;  %v11942_v15 = vadd.f32 %v11796_v48, %v767_v59  ;;  %v770_v7 = vmax.f32 %v13851_v19, %v754_v60  ;;  %v870_v27 = vsel %vm793_vm4, %v844_v10, 0.0 }
 0x169   :  { %v869_v16 = vadd.f32 %v868_v11, %v867_v56  ;;  %v816_v45 = vadd.f32 %v815_v54, %v814_v55  ;;  %v846_v1 = vmul.f32 %v11939_v35, %v11939_v35  ;;  %v13852_v17 = vmax.f32 %v11707_v18, %v11763_v49 }
 0x16a   :  { %v817_v20 = vsel %vm793_vm4, %v11942_v15, 0.0  ;;  %v845_v8 = vmul.f32 %v11942_v15, %v11942_v15  ;;  %v11956_v3 = vadd.f32 %v11796_v48, %v770_v7  ;;  %v819_v37 = vsel %vm793_vm4, %v11939_v35, 0.0 }
 0x16b   :  { %v818_v29 = vadd.f32 %v817_v20, %v816_v45  ;;  %v871_v30 = vadd.f32 %v870_v27, %v869_v16  ;;  %v769_v47 = vmax.f32 %v13852_v17, %v753_v43  ;;  %v874_v61 = vsel %vm793_vm4, %v846_v1, 0.0 }
 0x16c   :  { %v872_v12 = vsel %vm793_vm4, %v845_v8, 0.0  ;;  %v848_v36 = vmul.f32 %v11956_v3, %v11956_v3  ;;  %v823_v44 = vsel %vm793_vm4, %v11956_v3, 0.0 }
 0x16d   :  { %v873_v57 = vadd.f32 %v872_v12, %v871_v30  ;;  %v11965_v40 = vadd.f32 %v11796_v48, %v769_v47  ;;  %v820_v62 = vadd.f32 %v819_v37, %v818_v29 }
 0x16e   :  { %v878_v39 = vsel %vm793_vm4, %v848_v36, 0.0 }
 0x16f   :  { %v821_v58 = vsel %vm793_vm4, %v11965_v40, 0.0  ;;  %v847_v18 = vmul.f32 %v11965_v40, %v11965_v40  ;;  %v875_v49 = vadd.f32 %v874_v61, %v873_v57 }
 0x170   :  { %v822_v42 = vadd.f32 %v821_v58, %v820_v62 }
 0x171   :  { %v876_v48 = vsel %vm793_vm4, %v847_v18, 0.0 }
 0x172   :  { %v824_v46 = vadd.f32 %v823_v44, %v822_v42  ;;  %v877_v52 = vadd.f32 %v876_v48, %v875_v49  ;;  %v7953_v49 = vld [vmem:[%s13854_s0] ss:$0 sm:$0xff] }
 0x174   :  { %v825_v14 = vrot.slane %v824_v46, 4  ;;  %v879_v41 = vadd.f32 %v878_v39, %v877_v52 }
 0x176   :  { %v826_v23 = vadd.f32 %v825_v14, %v824_v46  ;;  %v880_v38 = vrot.slane %v879_v41, 4 }
 0x178   :  { %v827_v53 = vrot.slane %v826_v23, 2  ;;  %v881_v10 = vadd.f32 %v880_v38, %v879_v41 }
 0x17a   :  { %v828_v31 = vadd.f32 %v827_v53, %v826_v23  ;;  %v882_v32 = vrot.slane %v881_v10, 2 }
 0x17c   :  { %v829_v33 = vrot.slane %v828_v31, 1  ;;  %v883_v63 = vadd.f32 %v882_v32, %v881_v10 }
 0x17e   :  { %v830_v25 = vadd.f32 %v829_v33, %v828_v31  ;;  %v884_v26 = vrot.slane %v883_v63, 1 }
 0x180   :  { %v832_v0 = vmul.f32 0.0078125, %v830_v25  ;;  %v885_v59 = vadd.f32 %v884_v26, %v883_v63 }
 0x182   :  { %v886_v34 = vmul.f32 0.0078125, %v885_v59  ;;  %v887_v54 = vmul.f32 %v832_v0, %v832_v0  ;;  %v890_v55 = vsub.f32 %v11802_v4, %v832_v0  ;;  %v891_v56 = vsub.f32 %v11799_v2, %v832_v0 }
 0x183   :  { %v892_v60 = vsub.f32 %v11824_v24, %v832_v0  ;;  %v893_v11 = vsub.f32 %v11820_v50, %v832_v0  ;;  %v894_v43 = vsub.f32 %v11846_v28, %v832_v0  ;;  %v895_v16 = vsub.f32 %v11839_v21, %v832_v0 }
 0x184   :  { %v888_v45 = vsub.f32 %v886_v34, %v887_v54  ;;  %v896_v19 = vsub.f32 %v11870_v9, %v832_v0  ;;  %v897_v7 = vsub.f32 %v11867_v6, %v832_v0  ;;  %v898_v27 = vsub.f32 %v11896_v22, %v832_v0 }
 0x185   :  { %v899_v1 = vsub.f32 %v11884_v51, %v832_v0  ;;  %v900_v4 = vsub.f32 %v11914_v13, %v832_v0  ;;  %v901_v2 = vsub.f32 %v11911_v5, %v832_v0  ;;  %v902_v24 = vsub.f32 %v11942_v15, %v832_v0  ;;  %v7952_v5 = vld [vmem:[%s13853_s29] ss:$0 sm:$0xff]  ;;  %s13855_s29 = sld [smem:[#allocation11_spill]] }
 0x186   :  { %v889_v50 = vmax.f32 %v888_v45, 0.0  ;;  %v903_v28 = vsub.f32 %v11939_v35, %v832_v0  ;;  %v904_v21 = vsub.f32 %v11965_v40, %v832_v0  ;;  %v905_v20 = vsub.f32 %v11956_v3, %v832_v0 }
 0x188   :  { %v906_v9 = vadd.f32 1e-05, %v889_v50 }
 0x18a   :  { %11263 = vrsqrt.f32 %v906_v9 }
 0x194   :  { %v11264_v6 = vpop.eup %11263 }
 0x195   :  { %v908_v8 = vmul.f32 %v11264_v6, %v890_v55  ;;  %v909_v22 = vmul.f32 %v11264_v6, %v891_v56  ;;  %v910_v29 = vmul.f32 %v11264_v6, %v892_v60  ;;  %v911_v51 = vmul.f32 %v11264_v6, %v893_v11 }
 0x196   :  { %v912_v13 = vmul.f32 %v11264_v6, %v894_v43  ;;  %v913_v15 = vmul.f32 %v11264_v6, %v895_v16  ;;  %v914_v30 = vmul.f32 %v11264_v6, %v896_v19  ;;  %v915_v17 = vmul.f32 %v11264_v6, %v897_v7 }
 0x197   :  { %v916_v35 = vmul.f32 %v11264_v6, %v898_v27  ;;  %v917_v47 = vmul.f32 %v11264_v6, %v899_v1  ;;  %v918_v12 = vmul.f32 %v11264_v6, %v900_v4  ;;  %v919_v37 = vmul.f32 %v11264_v6, %v901_v2 }
 0x198   :  { %v920_v3 = vmul.f32 %v11264_v6, %v902_v24  ;;  %v921_v57 = vmul.f32 %v11264_v6, %v903_v28  ;;  %v922_v40 = vmul.f32 %v11264_v6, %v904_v21  ;;  %v923_v61 = vmul.f32 %v11264_v6, %v905_v20 }
 0x199   :  { %v930_v62 = vmul.f32 %v7952_v5, %v908_v8  ;;  %v931_v36 = vmul.f32 %v7952_v5, %v909_v22  ;;  %v932_v58 = vmul.f32 %v7952_v5, %v910_v29  ;;  %v933_v18 = vmul.f32 %v7952_v5, %v911_v51 }
 0x19a   :  { %v934_v42 = vmul.f32 %v7952_v5, %v912_v13  ;;  %v935_v44 = vmul.f32 %v7952_v5, %v913_v15  ;;  %v936_v48 = vmul.f32 %v7952_v5, %v914_v30  ;;  %v937_v46 = vmul.f32 %v7952_v5, %v915_v17 }
 0x19b   :  { %v938_v52 = vmul.f32 %v7952_v5, %v916_v35  ;;  %v939_v39 = vmul.f32 %v7952_v5, %v917_v47  ;;  %v940_v14 = vmul.f32 %v7952_v5, %v918_v12  ;;  %v941_v41 = vmul.f32 %v7952_v5, %v919_v37  ;;  %v985_v47 = vld [vmem:[%s13842_s24 + $0x8] sm:$0xff]  ;;  %v986_v37 = vld [vmem:[%s13842_s24 + $0x10] sm:$0xff] }
 0x19c   :  { %v942_v23 = vmul.f32 %v7952_v5, %v920_v3  ;;  %v943_v38 = vmul.f32 %v7952_v5, %v921_v57  ;;  %v944_v53 = vmul.f32 %v7952_v5, %v922_v40  ;;  %v945_v10 = vmul.f32 %v7952_v5, %v923_v61  ;;  %v8007_v12 = vld [vmem:[%s13842_s24 + $0x108] sm:$0xff]  ;;  %v8008_v3 = vld [vmem:[%s13842_s24 + $0x110] sm:$0xff]  ;;  %v987_v57 = vld [vmem:[%s13842_s24 + $0x18] sm:$0xff] }
 0x19d   :  { %v952_v31 = vadd.f32 %v7953_v49, %v930_v62  ;;  %v953_v32 = vadd.f32 %v7953_v49, %v931_v36  ;;  %v954_v33 = vadd.f32 %v7953_v49, %v932_v58  ;;  %v955_v63 = vadd.f32 %v7953_v49, %v933_v18  ;;  %v8009_v40 = vld [vmem:[%s13842_s24 + $0x118] sm:$0xff]  ;;  %v988_v61 = vld [vmem:[%s13842_s24 + $0x20] sm:$0xff]  ;;  %v989_v36 = vld [vmem:[%s13842_s24 + $0x28] sm:$0xff] }
 0x19e   :  { %v956_v25 = vadd.f32 %v7953_v49, %v934_v42  ;;  %v957_v26 = vadd.f32 %v7953_v49, %v935_v44  ;;  %v958_v0 = vadd.f32 %v7953_v49, %v936_v48  ;;  %v959_v59 = vadd.f32 %v7953_v49, %v937_v46  ;;  %v8010_v62 = vld [vmem:[%s13842_s24 + $0x120] sm:$0xff]  ;;  %v8011_v58 = vld [vmem:[%s13842_s24 + $0x128] sm:$0xff]  ;;  %v990_v18 = vld [vmem:[%s13842_s24 + $0x30] sm:$0xff] }
 0x19f   :  { %v960_v34 = vadd.f32 %v7953_v49, %v938_v52  ;;  %v961_v54 = vadd.f32 %v7953_v49, %v939_v39  ;;  %v962_v55 = vadd.f32 %v7953_v49, %v940_v14  ;;  %v963_v56 = vadd.f32 %v7953_v49, %v941_v41  ;;  %v991_v42 = vld [vmem:[%s13842_s24 + $0x38] sm:$0xff]  ;;  %v992_v48 = vld [vmem:[%s13842_s24 + $0x40] sm:$0xff]  ;;  %v993_v52 = vld [vmem:[%s13842_s24 + $0x48] sm:$0xff] }
 0x1a0   :  { %v964_v60 = vadd.f32 %v7953_v49, %v942_v23  ;;  %v965_v11 = vadd.f32 %v7953_v49, %v943_v38  ;;  %v966_v43 = vadd.f32 %v7953_v49, %v944_v53  ;;  %v967_v16 = vadd.f32 %v7953_v49, %v945_v10  ;;  %v8012_v49 = vld [vmem:[%s13842_s24 + $0x130] sm:$0xff]  ;;  %v8013_v44 = vld [vmem:[%s13842_s24 + $0x138] sm:$0xff]  ;;  %v8014_v46 = vld [vmem:[%s13842_s24 + $0x140] sm:$0xff] }
 0x1a1   :  { %v968_v45 = vmax.f32 %v952_v31, 0.0  ;;  %v969_v19 = vmax.f32 %v953_v32, 0.0  ;;  %v970_v7 = vmax.f32 %v954_v33, 0.0  ;;  %v971_v27 = vmax.f32 %v955_v63, 0.0  ;;  %v8015_v39 = vld [vmem:[%s13842_s24 + $0x148] sm:$0xff]  ;;  %v994_v14 = vld [vmem:[%s13842_s24 + $0x50] sm:$0xff] }
 0x1a2   :  { %v972_v1 = vmax.f32 %v956_v25, 0.0  ;;  %v973_v4 = vmax.f32 %v957_v26, 0.0  ;;  %v974_v2 = vmax.f32 %v958_v0, 0.0  ;;  %v975_v24 = vmax.f32 %v959_v59, 0.0  ;;  %v8016_v41 = vld [vmem:[%s13842_s24 + $0x150] sm:$0xff]  ;;  %v995_v23 = vld [vmem:[%s13842_s24 + $0x58] sm:$0xff] }
 0x1a3   :  { %v976_v50 = vmax.f32 %v960_v34, 0.0  ;;  %v977_v28 = vmax.f32 %v961_v54, 0.0  ;;  %v978_v21 = vmax.f32 %v962_v55, 0.0  ;;  %v979_v20 = vmax.f32 %v963_v56, 0.0  ;;  %v8017_v38 = vld [vmem:[%s13842_s24 + $0x158] sm:$0xff]  ;;  %v996_v53 = vld [vmem:[%s13842_s24 + $0x60] sm:$0xff] }
 0x1a4   :  { %v980_v9 = vmax.f32 %v964_v60, 0.0  ;;  %v981_v6 = vmax.f32 %v965_v11, 0.0  ;;  %v982_v8 = vmax.f32 %v966_v43, 0.0  ;;  %v983_v22 = vmax.f32 %v967_v16, 0.0  ;;  %v8018_v10 = vld [vmem:[%s13842_s24 + $0x160] sm:$0xff]  ;;  %v997_v31 = vld [vmem:[%s13842_s24 + $0x68] sm:$0xff] }
 0x1a5   :  { %v12000_v29 = vpack.c.bf16 %v969_v19, %v968_v45  ;;  %v12002_v51 = vpack.c.bf16 %v971_v27, %v970_v7  ;;  %v12004_v5 = vpack.c.bf16 %v973_v4, %v972_v1  ;;  %v12006_v13 = vpack.c.bf16 %v975_v24, %v974_v2  ;;  %v8019_v32 = vld [vmem:[%s13842_s24 + $0x168] sm:$0xff]  ;;  %v998_v33 = vld [vmem:[%s13842_s24 + $0x70] sm:$0xff]  ;;  %v999_v25 = vld [vmem:[%s13842_s24 + $0x78] sm:$0xff] }
 0x1a6   :  { %v12008_v15 = vpack.c.bf16 %v977_v28, %v976_v50  ;;  %v12010_v30 = vpack.c.bf16 %v979_v20, %v978_v21  ;;  %v12012_v17 = vpack.c.bf16 %v981_v6, %v980_v9  ;;  %v12014_v35 = vpack.c.bf16 %v983_v22, %v982_v8  ;;  %v8020_v63 = vld [vmem:[%s13842_s24 + $0x170] sm:$0xff]  ;;  %v8021_v26 = vld [vmem:[%s13842_s24 + $0x178] sm:$0xff]  ;;  %v7954_v0 = vld [vmem:[%s13842_s24 + $0x80] sm:$0xff] }
 0x1a7   :  { %10515 = vmatprep.subr.bf16.mxu1 %v12000_v29  ;;  %10595 = vmatprep.subr.bf16.mxu0 %v12000_v29  ;;  %v8042_v59 = vld [vmem:[%s13842_s24 + $0x180] sm:$0xff]  ;;  %v7955_v34 = vld [vmem:[%s13842_s24 + $0x88] sm:$0xff]  ;;  %v7956_v55 = vld [vmem:[%s13842_s24 + $0x90] sm:$0xff] }
 0x1a8   :  { %10517 = vmatpush3.bf16.msra.mxu1 %v12000_v29  ;;  %10597 = vmatpush3.bf16.msra.mxu0 %v12000_v29  ;;  %v8043_v54 = vld [vmem:[%s13842_s24 + $0x188] sm:$0xff]  ;;  %v8044_v56 = vld [vmem:[%s13842_s24 + $0x190] sm:$0xff]  ;;  %v7957_v60 = vld [vmem:[%s13842_s24 + $0x98] sm:$0xff] }
 0x1a9   :  { %10519 = vmatprep.subr.bf16.mxu1 %v12002_v51  ;;  %10599 = vmatprep.subr.bf16.mxu0 %v12002_v51  ;;  %v8045_v11 = vld [vmem:[%s13842_s24 + $0x198] sm:$0xff]  ;;  %v7958_v43 = vld [vmem:[%s13842_s24 + $0xa0] sm:$0xff]  ;;  %v7959_v45 = vld [vmem:[%s13842_s24 + $0xa8] sm:$0xff] }
 0x1aa   :  { %v8046_v16 = vld [vmem:[%s13842_s24 + $0x1a0] sm:$0xff]  ;;  %v8047_v19 = vld [vmem:[%s13842_s24 + $0x1a8] sm:$0xff]  ;;  %v7960_v7 = vld [vmem:[%s13842_s24 + $0xb0] sm:$0xff] }
 0x1ab   :  { %v8048_v27 = vld [vmem:[%s13842_s24 + $0x1b0] sm:$0xff]  ;;  %v7961_v1 = vld [vmem:[%s13842_s24 + $0xb8] sm:$0xff]  ;;  %v7962_v2 = vld [vmem:[%s13842_s24 + $0xc0] sm:$0xff] }
 0x1ac   :  { %10521 = vmatpush3.bf16.msra.mxu1 %v12002_v51  ;;  %10601 = vmatpush3.bf16.msra.mxu0 %v12002_v51  ;;  %v8049_v4 = vld [vmem:[%s13842_s24 + $0x1b8] sm:$0xff]  ;;  %v8050_v24 = vld [vmem:[%s13842_s24 + $0x1c0] sm:$0xff]  ;;  %v7963_v50 = vld [vmem:[%s13842_s24 + $0xc8] sm:$0xff] }
 0x1ad   :  { %10523 = vmatprep.subr.bf16.mxu1 %v12004_v5  ;;  %10603 = vmatprep.subr.bf16.mxu0 %v12004_v5  ;;  %v8051_v28 = vld [vmem:[%s13842_s24 + $0x1c8] sm:$0xff]  ;;  %v7964_v21 = vld [vmem:[%s13842_s24 + $0xd0] sm:$0xff]  ;;  %v7965_v9 = vld [vmem:[%s13842_s24 + $0xd8] sm:$0xff] }
 0x1ae   :  { %v8052_v20 = vld [vmem:[%s13842_s24 + $0x1d0] sm:$0xff]  ;;  %v8053_v6 = vld [vmem:[%s13842_s24 + $0x1d8] sm:$0xff]  ;;  %v7966_v8 = vld [vmem:[%s13842_s24 + $0xe0] sm:$0xff] }
 0x1af   :  { %v8054_v22 = vld [vmem:[%s13842_s24 + $0x1e0] sm:$0xff] }
 0x1b0   :  { %10525 = vmatpush3.bf16.msra.mxu1 %v12004_v5  ;;  %10605 = vmatpush3.bf16.msra.mxu0 %v12004_v5 }
 0x1b1   :  { %10527 = vmatprep.subr.bf16.mxu1 %v12006_v13  ;;  %10607 = vmatprep.subr.bf16.mxu0 %v12006_v13 }
 0x1b4   :  { %10529 = vmatpush3.bf16.msra.mxu1 %v12006_v13  ;;  %10609 = vmatpush3.bf16.msra.mxu0 %v12006_v13 }
 0x1b5   :  { %10531 = vmatprep.subr.bf16.mxu1 %v12008_v15  ;;  %10611 = vmatprep.subr.bf16.mxu0 %v12008_v15 }
 0x1b8   :  { %10533 = vmatpush3.bf16.msra.mxu1 %v12008_v15  ;;  %10613 = vmatpush3.bf16.msra.mxu0 %v12008_v15 }
 0x1b9   :  { %10535 = vmatprep.subr.bf16.mxu1 %v12010_v30  ;;  %10615 = vmatprep.subr.bf16.mxu0 %v12010_v30 }
 0x1bc   :  { %10537 = vmatpush3.bf16.msra.mxu1 %v12010_v30  ;;  %10617 = vmatpush3.bf16.msra.mxu0 %v12010_v30 }
 0x1bd   :  { %10539 = vmatprep.subr.bf16.mxu1 %v12012_v17  ;;  %10619 = vmatprep.subr.bf16.mxu0 %v12012_v17 }
 0x1c0   :  { %10541 = vmatpush3.bf16.msra.mxu1 %v12012_v17  ;;  %10621 = vmatpush3.bf16.msra.mxu0 %v12012_v17 }
 0x1c1   :  { %10543 = vmatprep.subr.bf16.mxu1 %v12014_v35  ;;  %10623 = vmatprep.subr.bf16.mxu0 %v12014_v35 }
 0x1c4   :  { %10545 = vmatpush3.bf16.msra.mxu1 %v12014_v35  ;;  %10625 = vmatpush3.bf16.msra.mxu0 %v12014_v35 }
 0x1c5   :  { %10547 = vmatprep.subr.bf16.mxu1 %v12000_v29  ;;  %10635 = vmatprep.subr.bf16.mxu0 %v12000_v29 }
 0x1c7   :  { %9342 = vmatmul.mubr.f32.vlgmr.msra.gmra.mrb[0].mxu1 %v985_v47  ;;  %9518 = vmatmul.mubr.f32.vlgmr.msra.gmra.mrb[64].mxu0 %v8007_v12  ;;  %v7967_v47 = vld [vmem:[%s13842_s24 + $0xe8] sm:$0xff] }
 0x1c8   :  { %10549 = vmatpush3.bf16.msra.mxu1 %v12000_v29  ;;  %10637 = vmatpush3.bf16.msra.mxu0 %v12000_v29  ;;  %v8055_v12 = vld [vmem:[%s13842_s24 + $0x1e8] sm:$0xff] }
 0x1c9   :  { %10551 = vmatprep.subr.bf16.mxu1 %v12002_v51  ;;  %10639 = vmatprep.subr.bf16.mxu0 %v12002_v51 }
 0x1ca   :  { %9344 = vmatprep.mubr.f32.mxu1 %v986_v37  ;;  %9520 = vmatprep.mubr.f32.mxu0 %v8008_v3  ;;  %v7968_v37 = vld [vmem:[%s13842_s24 + $0xf0] sm:$0xff] }
 0x1cb   :  { %9345 = vmatmul.mubr.f32.gmra.mrb[2].mxu1 %v987_v57  ;;  %9521 = vmatmul.mubr.f32.gmra.mrb[66].mxu0 %v8009_v40  ;;  %v8056_v3 = vld [vmem:[%s13842_s24 + $0x1f0] sm:$0xff]  ;;  %v7969_v57 = vld [vmem:[%s13842_s24 + $0xf8] sm:$0xff] }
 0x1cc   :  { %10553 = vmatpush3.bf16.msra.mxu1 %v12002_v51  ;;  %10641 = vmatpush3.bf16.msra.mxu0 %v12002_v51  ;;  %v8057_v40 = vld [vmem:[%s13842_s24 + $0x1f8] sm:$0xff] }
 0x1cd   :  { %10555 = vmatprep.subr.bf16.mxu1 %v12004_v5  ;;  %10643 = vmatprep.subr.bf16.mxu0 %v12004_v5 }
 0x1ce   :  { %9347 = vmatprep.mubr.f32.mxu1 %v988_v61  ;;  %9523 = vmatprep.mubr.f32.mxu0 %v8010_v62  ;;  %v8078_v61 = vld [vmem:[%s13842_s24 + $0x200] sm:$0xff]  ;;  %v8079_v62 = vld [vmem:[%s13842_s24 + $0x208] sm:$0xff] }
 0x1cf   :  { %9348 = vmatmul.mubr.f32.gmra.mrb[4].mxu1 %v989_v36  ;;  %9524 = vmatmul.mubr.f32.gmra.mrb[68].mxu0 %v8011_v58  ;;  %v8080_v36 = vld [vmem:[%s13842_s24 + $0x210] sm:$0xff]  ;;  %v8081_v58 = vld [vmem:[%s13842_s24 + $0x218] sm:$0xff] }
 0x1d0   :  { %10557 = vmatpush3.bf16.msra.mxu1 %v12004_v5  ;;  %10645 = vmatpush3.bf16.msra.mxu0 %v12004_v5 }
 0x1d1   :  { %10559 = vmatprep.subr.bf16.mxu1 %v12006_v13  ;;  %10647 = vmatprep.subr.bf16.mxu0 %v12006_v13 }
 0x1d2   :  { %9350 = vmatprep.mubr.f32.mxu1 %v990_v18  ;;  %9526 = vmatprep.mubr.f32.mxu0 %v8012_v49  ;;  %v8082_v18 = vld [vmem:[%s13842_s24 + $0x220] sm:$0xff]  ;;  %v8083_v49 = vld [vmem:[%s13842_s24 + $0x228] sm:$0xff] }
 0x1d3   :  { %9351 = vmatmul.mubr.f32.gmra.mrb[6].mxu1 %v991_v42  ;;  %9527 = vmatmul.mubr.f32.gmra.mrb[70].mxu0 %v8013_v44  ;;  %v8084_v42 = vld [vmem:[%s13842_s24 + $0x230] sm:$0xff]  ;;  %v8085_v44 = vld [vmem:[%s13842_s24 + $0x238] sm:$0xff] }
 0x1d4   :  { %10561 = vmatpush3.bf16.msra.mxu1 %v12006_v13  ;;  %10649 = vmatpush3.bf16.msra.mxu0 %v12006_v13 }
 0x1d5   :  { %10563 = vmatprep.subr.bf16.mxu1 %v12008_v15  ;;  %10651 = vmatprep.subr.bf16.mxu0 %v12008_v15 }
 0x1d6   :  { %9353 = vmatprep.mubr.f32.mxu1 %v992_v48  ;;  %9529 = vmatprep.mubr.f32.mxu0 %v8014_v46  ;;  %v8086_v48 = vld [vmem:[%s13842_s24 + $0x240] sm:$0xff]  ;;  %v8087_v46 = vld [vmem:[%s13842_s24 + $0x248] sm:$0xff] }
 0x1d7   :  { %9354 = vmatmul.mubr.f32.gmra.mrb[8].mxu1 %v993_v52  ;;  %9530 = vmatmul.mubr.f32.gmra.mrb[72].mxu0 %v8015_v39  ;;  %v8088_v52 = vld [vmem:[%s13842_s24 + $0x250] sm:$0xff]  ;;  %v8089_v39 = vld [vmem:[%s13842_s24 + $0x258] sm:$0xff] }
 0x1d8   :  { %10565 = vmatpush3.bf16.msra.mxu1 %v12008_v15  ;;  %10653 = vmatpush3.bf16.msra.mxu0 %v12008_v15 }
 0x1d9   :  { %10567 = vmatprep.subr.bf16.mxu1 %v12010_v30  ;;  %10655 = vmatprep.subr.bf16.mxu0 %v12010_v30 }
 0x1da   :  { %9356 = vmatprep.mubr.f32.mxu1 %v994_v14  ;;  %9532 = vmatprep.mubr.f32.mxu0 %v8016_v41  ;;  %v8090_v14 = vld [vmem:[%s13842_s24 + $0x260] sm:$0xff]  ;;  %v8091_v41 = vld [vmem:[%s13842_s24 + $0x268] sm:$0xff] }
 0x1db   :  { %9357 = vmatmul.mubr.f32.gmra.mrb[10].mxu1 %v995_v23  ;;  %9533 = vmatmul.mubr.f32.gmra.mrb[74].mxu0 %v8017_v38  ;;  %v8092_v23 = vld [vmem:[%s13842_s24 + $0x270] sm:$0xff]  ;;  %v8093_v38 = vld [vmem:[%s13842_s24 + $0x278] sm:$0xff] }
 0x1dc   :  { %10569 = vmatpush3.bf16.msra.mxu1 %v12010_v30  ;;  %10657 = vmatpush3.bf16.msra.mxu0 %v12010_v30 }
 0x1dd   :  { %10571 = vmatprep.subr.bf16.mxu1 %v12012_v17  ;;  %10659 = vmatprep.subr.bf16.mxu0 %v12012_v17 }
 0x1de   :  { %9359 = vmatprep.mubr.f32.mxu1 %v996_v53  ;;  %9535 = vmatprep.mubr.f32.mxu0 %v8018_v10  ;;  %v8114_v53 = vld [vmem:[%s13842_s24 + $0x280] sm:$0xff]  ;;  %v8115_v10 = vld [vmem:[%s13842_s24 + $0x288] sm:$0xff] }
 0x1df   :  { %9360 = vmatmul.mubr.f32.gmra.mrb[12].mxu1 %v997_v31  ;;  %9536 = vmatmul.mubr.f32.gmra.mrb[76].mxu0 %v8019_v32  ;;  %v8116_v31 = vld [vmem:[%s13842_s24 + $0x290] sm:$0xff]  ;;  %v7970_v32 = vld [vmem:[%s13855_s29 + $0x20] sm:$0xff] }
 0x1e0   :  { %10573 = vmatpush3.bf16.msra.mxu1 %v12012_v17  ;;  %10661 = vmatpush3.bf16.msra.mxu0 %v12012_v17 }
 0x1e1   :  { %10575 = vmatprep.subr.bf16.mxu1 %v12014_v35  ;;  %10663 = vmatprep.subr.bf16.mxu0 %v12014_v35 }
 0x1e2   :  { %9362 = vmatprep.mubr.f32.mxu1 %v998_v33  ;;  %9538 = vmatprep.mubr.f32.mxu0 %v8020_v63  ;;  %v7971_v33 = vld [vmem:[%s13855_s29 + $0x28] sm:$0xff] }
 0x1e3   :  { %9363 = vmatmul.mubr.f32.gmra.mrb[14].mxu1 %v999_v25  ;;  %9539 = vmatmul.mubr.f32.gmra.mrb[78].mxu0 %v8021_v26  ;;  %v10578_v63 = vpack.c.bf16 %v7971_v33, %v7970_v32  ;;  %v8117_v25 = vld [vmem:[%s13842_s24 + $0x298] sm:$0xff]  ;;  %v8118_v26 = vld [vmem:[%s13842_s24 + $0x2a0] sm:$0xff]  ;;  %v8232_v32 = vld [vmem:[%s13842_s24 + $0x450] sm:$0xff] }
 0x1e4   :  { %10577 = vmatpush3.bf16.msra.mxu1 %v12014_v35  ;;  %10665 = vmatpush3.bf16.msra.mxu0 %v12014_v35  ;;  %v8233_v33 = vld [vmem:[%s13842_s24 + $0x458] sm:$0xff] }
 0x1e5   :  { %10675 = vmatprep.subr.bf16.mxu0 %v12000_v29  ;;  %9397 = vmatprep.mubr.f32.mxu1 %v7954_v0  ;;  %v8119_v0 = vld [vmem:[%s13842_s24 + $0x2a8] sm:$0xff] }
 0x1e6   :  { %9605 = vmatprep.mubr.f32.mxu0 %v8042_v59  ;;  %10579 = vmatprep.subr.bf16.mxu1 %v10578_v63  ;;  %v8120_v59 = vld [vmem:[%s13842_s24 + $0x2b0] sm:$0xff] }
 0x1e7   :  { %9398 = vmatmul.mubr.f32.vlgmr.msra.gmra.mrb[16].mxu1 %v7955_v34  ;;  %9606 = vmatmul.mubr.f32.vlgmr.msra.gmra.mrb[80].mxu0 %v8043_v54  ;;  %v8121_v34 = vld [vmem:[%s13842_s24 + $0x2b8] sm:$0xff]  ;;  %v8122_v54 = vld [vmem:[%s13842_s24 + $0x2c0] sm:$0xff] }
 0x1e8   :  { %10677 = vmatpush3.bf16.msra.mxu0 %v12000_v29  ;;  %9400 = vmatprep.mubr.f32.mxu1 %v7956_v55  ;;  %v8123_v55 = vld [vmem:[%s13842_s24 + $0x2c8] sm:$0xff] }
 0x1e9   :  { %10679 = vmatprep.subr.bf16.mxu0 %v12002_v51  ;;  %9608 = vmatprep.mubr.f32.mxu0 %v8044_v56  ;;  %v8124_v56 = vld [vmem:[%s13842_s24 + $0x2d0] sm:$0xff] }
 0x1ea   :  { %10581 = vmatpush3.bf16.msra.mxu1 %v10578_v63  ;;  %v8234_v63 = vld [vmem:[%s13842_s24 + $0x460] sm:$0xff] }
 0x1eb   :  { %9401 = vmatmul.mubr.f32.gmra.mrb[18].mxu1 %v7957_v60  ;;  %9609 = vmatmul.mubr.f32.gmra.mrb[82].mxu0 %v8045_v11  ;;  %v7972_v60 = vld [vmem:[%s13855_s29 + $0x30] sm:$0xff]  ;;  %v7973_v11 = vld [vmem:[%s13855_s29 + $0x38] sm:$0xff] }
 0x1ec   :  { %10681 = vmatpush3.bf16.msra.mxu0 %v12002_v51  ;;  %9403 = vmatprep.mubr.f32.mxu1 %v7958_v43  ;;  %v8125_v43 = vld [vmem:[%s13842_s24 + $0x2d8] sm:$0xff] }
 0x1ed   :  { %10683 = vmatprep.subr.bf16.mxu0 %v12004_v5  ;;  %9611 = vmatprep.mubr.f32.mxu0 %v8046_v16  ;;  %v10582_v16 = vpack.c.bf16 %v7973_v11, %v7972_v60 }
 0x1ef   :  { %9404 = vmatmul.mubr.f32.gmra.mrb[20].mxu1 %v7959_v45  ;;  %9612 = vmatmul.mubr.f32.gmra.mrb[84].mxu0 %v8047_v19  ;;  %v8126_v45 = vld [vmem:[%s13842_s24 + $0x2e0] sm:$0xff]  ;;  %v8127_v19 = vld [vmem:[%s13842_s24 + $0x2e8] sm:$0xff] }
 0x1f0   :  { %10685 = vmatpush3.bf16.msra.mxu0 %v12004_v5  ;;  %9406 = vmatprep.mubr.f32.mxu1 %v7960_v7  ;;  %v8128_v7 = vld [vmem:[%s13842_s24 + $0x2f0] sm:$0xff] }
 0x1f1   :  { %10687 = vmatprep.subr.bf16.mxu0 %v12006_v13  ;;  %9614 = vmatprep.mubr.f32.mxu0 %v8048_v27  ;;  %v8129_v27 = vld [vmem:[%s13842_s24 + $0x2f8] sm:$0xff] }
 0x1f2   :  { %10583 = vmatprep.subr.bf16.mxu1 %v10582_v16 }
 0x1f3   :  { %9407 = vmatmul.mubr.f32.gmra.mrb[22].mxu1 %v7961_v1  ;;  %9615 = vmatmul.mubr.f32.gmra.mrb[86].mxu0 %v8049_v4  ;;  %v8150_v1 = vld [vmem:[%s13842_s24 + $0x300] sm:$0xff]  ;;  %v8151_v4 = vld [vmem:[%s13842_s24 + $0x308] sm:$0xff] }
 0x1f4   :  { %10689 = vmatpush3.bf16.msra.mxu0 %v12006_v13  ;;  %9409 = vmatprep.mubr.f32.mxu1 %v7962_v2  ;;  %v8152_v2 = vld [vmem:[%s13842_s24 + $0x310] sm:$0xff] }
 0x1f5   :  { %10691 = vmatprep.subr.bf16.mxu0 %v12008_v15  ;;  %9617 = vmatprep.mubr.f32.mxu0 %v8050_v24  ;;  %v8153_v24 = vld [vmem:[%s13842_s24 + $0x318] sm:$0xff] }
 0x1f6   :  { %10585 = vmatpush3.bf16.msra.mxu1 %v10582_v16 }
 0x1f7   :  { %9410 = vmatmul.mubr.f32.gmra.mrb[24].mxu1 %v7963_v50  ;;  %9618 = vmatmul.mubr.f32.gmra.mrb[88].mxu0 %v8051_v28  ;;  %v8154_v50 = vld [vmem:[%s13842_s24 + $0x320] sm:$0xff]  ;;  %v8155_v28 = vld [vmem:[%s13842_s24 + $0x328] sm:$0xff] }
 0x1f8   :  { %10693 = vmatpush3.bf16.msra.mxu0 %v12008_v15  ;;  %9412 = vmatprep.mubr.f32.mxu1 %v7964_v21  ;;  %v8156_v21 = vld [vmem:[%s13842_s24 + $0x330] sm:$0xff] }
 0x1f9   :  { %10695 = vmatprep.subr.bf16.mxu0 %v12010_v30  ;;  %9620 = vmatprep.mubr.f32.mxu0 %v8052_v20  ;;  %v1145_v20 = vld [vmem:[%s13855_s29] sm:$0xff] }
 0x1fb   :  { %9413 = vmatmul.mubr.f32.gmra.mrb[26].mxu1 %v7965_v9  ;;  %9621 = vmatmul.mubr.f32.gmra.mrb[90].mxu0 %v8053_v6  ;;  %v1146_v9 = vld [vmem:[%s13855_s29 + $0x8] sm:$0xff] }
 0x1fc   :  { %10697 = vmatpush3.bf16.msra.mxu0 %v12010_v30  ;;  %9415 = vmatprep.mubr.f32.mxu1 %v7966_v8  ;;  %v12454_v6 = vpack.c.bf16 %v1146_v9, %v1145_v20  ;;  %v8157_v8 = vld [vmem:[%s13842_s24 + $0x338] sm:$0xff] }
 0x1fd   :  { %10699 = vmatprep.subr.bf16.mxu0 %v12012_v17  ;;  %9623 = vmatprep.mubr.f32.mxu0 %v8054_v22  ;;  %v8158_v22 = vld [vmem:[%s13842_s24 + $0x340] sm:$0xff] }
 0x1fe   :  { %10587 = vmatprep.subr.bf16.mxu1 %v12454_v6 }
 0x1ff   :  { %9416 = vmatmul.mubr.f32.gmra.mrb[28].mxu1 %v7967_v47  ;;  %9624 = vmatmul.mubr.f32.gmra.mrb[92].mxu0 %v8055_v12  ;;  %v8159_v47 = vld [vmem:[%s13842_s24 + $0x348] sm:$0xff]  ;;  %v8160_v12 = vld [vmem:[%s13842_s24 + $0x350] sm:$0xff] }
 0x200   :  { %10701 = vmatpush3.bf16.msra.mxu0 %v12012_v17  ;;  %9418 = vmatprep.mubr.f32.mxu1 %v7968_v37  ;;  %v8161_v37 = vld [vmem:[%s13842_s24 + $0x358] sm:$0xff] }
 0x201   :  { %10703 = vmatprep.subr.bf16.mxu0 %v12014_v35  ;;  %9626 = vmatprep.mubr.f32.mxu0 %v8056_v3  ;;  %v8162_v3 = vld [vmem:[%s13842_s24 + $0x360] sm:$0xff] }
 0x203   :  { %9419 = vmatmul.mubr.f32.gmra.mrb[30].mxu1 %v7969_v57  ;;  %9627 = vmatmul.mubr.f32.gmra.mrb[94].mxu0 %v8057_v40  ;;  %v8163_v57 = vld [vmem:[%s13842_s24 + $0x368] sm:$0xff]  ;;  %v8164_v40 = vld [vmem:[%s13842_s24 + $0x370] sm:$0xff] }
 0x204   :  { %10705 = vmatpush3.bf16.msra.mxu0 %v12014_v35  ;;  %9693 = vmatprep.mubr.f32.mxu0 %v8078_v61  ;;  %v8165_v61 = vld [vmem:[%s13842_s24 + $0x378] sm:$0xff] }
 0x205   :  { %10715 = vmatprep.subr.bf16.mxu0 %v12000_v29 }
 0x207   :  { %9694 = vmatmul.mubr.f32.vlgmr.msra.gmra.mrb[96].mxu0 %v8079_v62  ;;  %v8186_v62 = vld [vmem:[%s13842_s24 + $0x380] sm:$0xff] }
 0x208   :  { %10717 = vmatpush3.bf16.msra.mxu0 %v12000_v29  ;;  %9696 = vmatprep.mubr.f32.mxu0 %v8080_v36  ;;  %v8187_v36 = vld [vmem:[%s13842_s24 + $0x388] sm:$0xff] }
 0x209   :  { %10719 = vmatprep.subr.bf16.mxu0 %v12002_v51 }
 0x20b   :  { %9697 = vmatmul.mubr.f32.gmra.mrb[98].mxu0 %v8081_v58  ;;  %v8188_v58 = vld [vmem:[%s13842_s24 + $0x390] sm:$0xff] }
 0x20c   :  { %10721 = vmatpush3.bf16.msra.mxu0 %v12002_v51  ;;  %9699 = vmatprep.mubr.f32.mxu0 %v8082_v18  ;;  %v8189_v18 = vld [vmem:[%s13842_s24 + $0x398] sm:$0xff] }
 0x20d   :  { %10723 = vmatprep.subr.bf16.mxu0 %v12004_v5 }
 0x20f   :  { %9700 = vmatmul.mubr.f32.gmra.mrb[100].mxu0 %v8083_v49  ;;  %v8190_v49 = vld [vmem:[%s13842_s24 + $0x3a0] sm:$0xff] }
 0x210   :  { %10725 = vmatpush3.bf16.msra.mxu0 %v12004_v5  ;;  %9702 = vmatprep.mubr.f32.mxu0 %v8084_v42  ;;  %v8191_v42 = vld [vmem:[%s13842_s24 + $0x3a8] sm:$0xff] }
 0x211   :  { %10727 = vmatprep.subr.bf16.mxu0 %v12006_v13 }
 0x213   :  { %9703 = vmatmul.mubr.f32.gmra.mrb[102].mxu0 %v8085_v44  ;;  %v8193_v44 = vld [vmem:[%s13842_s24 + $0x3b8] sm:$0xff] }
 0x214   :  { %10729 = vmatpush3.bf16.msra.mxu0 %v12006_v13  ;;  %9705 = vmatprep.mubr.f32.mxu0 %v8086_v48  ;;  %v8195_v48 = vld [vmem:[%s13842_s24 + $0x3c8] sm:$0xff] }
 0x215   :  { %10731 = vmatprep.subr.bf16.mxu0 %v12008_v15 }
 0x217   :  { %9706 = vmatmul.mubr.f32.gmra.mrb[104].mxu0 %v8087_v46  ;;  %v8197_v46 = vld [vmem:[%s13842_s24 + $0x3d8] sm:$0xff] }
 0x218   :  { %10733 = vmatpush3.bf16.msra.mxu0 %v12008_v15  ;;  %9708 = vmatprep.mubr.f32.mxu0 %v8088_v52  ;;  %v8199_v52 = vld [vmem:[%s13842_s24 + $0x3e8] sm:$0xff] }
 0x219   :  { %10735 = vmatprep.subr.bf16.mxu0 %v12010_v30 }
 0x21b   :  { %9709 = vmatmul.mubr.f32.gmra.mrb[106].mxu0 %v8089_v39  ;;  %v8201_v39 = vld [vmem:[%s13842_s24 + $0x3f8] sm:$0xff] }
 0x21c   :  { %10737 = vmatpush3.bf16.msra.mxu0 %v12010_v30  ;;  %9711 = vmatprep.mubr.f32.mxu0 %v8090_v14  ;;  %v8223_v14 = vld [vmem:[%s13842_s24 + $0x408] sm:$0xff] }
 0x21d   :  { %10739 = vmatprep.subr.bf16.mxu0 %v12012_v17 }
 0x21f   :  { %9712 = vmatmul.mubr.f32.gmra.mrb[108].mxu0 %v8091_v41  ;;  %v8225_v41 = vld [vmem:[%s13842_s24 + $0x418] sm:$0xff] }
 0x220   :  { %10741 = vmatpush3.bf16.msra.mxu0 %v12012_v17  ;;  %9714 = vmatprep.mubr.f32.mxu0 %v8092_v23  ;;  %v8226_v23 = vld [vmem:[%s13842_s24 + $0x420] sm:$0xff] }
 0x221   :  { %10743 = vmatprep.subr.bf16.mxu0 %v12014_v35 }
 0x223   :  { %9715 = vmatmul.mubr.f32.gmra.mrb[110].mxu0 %v8093_v38  ;;  %v8228_v38 = vld [vmem:[%s13842_s24 + $0x430] sm:$0xff] }
 0x224   :  { %10745 = vmatpush3.bf16.msra.mxu0 %v12014_v35  ;;  %9781 = vmatprep.mubr.f32.mxu0 %v8114_v53  ;;  %v8229_v53 = vld [vmem:[%s13842_s24 + $0x438] sm:$0xff] }
 0x225   :  { %10755 = vmatprep.subr.bf16.mxu0 %v12000_v29 }
 0x227   :  { %9782 = vmatmul.mubr.f32.vlgmr.msra.gmra.mrb[112].mxu0 %v8115_v10  ;;  %v8230_v10 = vld [vmem:[%s13842_s24 + $0x440] sm:$0xff] }
 0x228   :  { %10757 = vmatpush3.bf16.msra.mxu0 %v12000_v29  ;;  %9784 = vmatprep.mubr.f32.mxu0 %v8116_v31  ;;  %v8231_v31 = vld [vmem:[%s13842_s24 + $0x448] sm:$0xff] }
 0x229   :  { %10759 = vmatprep.subr.bf16.mxu0 %v12002_v51 }
 0x22b   :  { %9785 = vmatmul.mubr.f32.gmra.mrb[114].mxu0 %v8117_v25 }
 0x22c   :  { %10761 = vmatpush3.bf16.msra.mxu0 %v12002_v51  ;;  %9787 = vmatprep.mubr.f32.mxu0 %v8118_v26 }
 0x22d   :  { %10763 = vmatprep.subr.bf16.mxu0 %v12004_v5 }
 0x22f   :  { %9788 = vmatmul.mubr.f32.gmra.mrb[116].mxu0 %v8119_v0 }
 0x230   :  { %10765 = vmatpush3.bf16.msra.mxu0 %v12004_v5  ;;  %9790 = vmatprep.mubr.f32.mxu0 %v8120_v59 }
 0x231   :  { %10767 = vmatprep.subr.bf16.mxu0 %v12006_v13 }
 0x233   :  { %9791 = vmatmul.mubr.f32.gmra.mrb[118].mxu0 %v8121_v34  ;;  %v8235_v34 = vld [vmem:[%s13842_s24 + $0x468] sm:$0xff] }
 0x234   :  { %10769 = vmatpush3.bf16.msra.mxu0 %v12006_v13  ;;  %9793 = vmatprep.mubr.f32.mxu0 %v8122_v54  ;;  %v8236_v54 = vld [vmem:[%s13842_s24 + $0x470] sm:$0xff] }
 0x235   :  { %10771 = vmatprep.subr.bf16.mxu0 %v12008_v15 }
 0x237   :  { %9794 = vmatmul.mubr.f32.gmra.mrb[120].mxu0 %v8123_v55 }
 0x238   :  { %10773 = vmatpush3.bf16.msra.mxu0 %v12008_v15  ;;  %9796 = vmatprep.mubr.f32.mxu0 %v8124_v56 }
 0x239   :  { %10775 = vmatprep.subr.bf16.mxu0 %v12010_v30 }
 0x23b   :  { %9797 = vmatmul.mubr.f32.gmra.mrb[122].mxu0 %v8125_v43  ;;  %v8237_v43 = vld [vmem:[%s13842_s24 + $0x478] sm:$0xff] }
 0x23c   :  { %10777 = vmatpush3.bf16.msra.mxu0 %v12010_v30  ;;  %9799 = vmatprep.mubr.f32.mxu0 %v8126_v45 }
 0x23d   :  { %10779 = vmatprep.subr.bf16.mxu0 %v12012_v17 }
 0x23f   :  { %9800 = vmatmul.mubr.f32.gmra.mrb[124].mxu0 %v8127_v19 }
 0x240   :  { %10781 = vmatpush3.bf16.msra.mxu0 %v12012_v17  ;;  %9802 = vmatprep.mubr.f32.mxu0 %v8128_v7 }
 0x241   :  { %10783 = vmatprep.subr.bf16.mxu0 %v12014_v35 }
 0x243   :  { %9803 = vmatmul.mubr.f32.gmra.mrb[126].mxu0 %v8129_v27 }
 0x244   :  { %10785 = vmatpush3.bf16.msra.mxu0 %v12014_v35  ;;  %9869 = vmatprep.mubr.f32.mxu0 %v8150_v1 }
 0x245   :  { %10795 = vmatprep.subr.bf16.mxu0 %v12000_v29 }
 0x247   :  { %9870 = vmatmul.mubr.f32.vlgmr.msra.gmra.mrb[128].mxu0 %v8151_v4 }
 0x248   :  { %10797 = vmatpush3.bf16.msra.mxu0 %v12000_v29  ;;  %9872 = vmatprep.mubr.f32.mxu0 %v8152_v2 }
 0x249   :  { %10799 = vmatprep.subr.bf16.mxu0 %v12002_v51 }
 0x24b   :  { %9873 = vmatmul.mubr.f32.gmra.mrb[130].mxu0 %v8153_v24 }
 0x24c   :  { %10801 = vmatpush3.bf16.msra.mxu0 %v12002_v51  ;;  %9875 = vmatprep.mubr.f32.mxu0 %v8154_v50 }
 0x24d   :  { %10803 = vmatprep.subr.bf16.mxu0 %v12004_v5 }
 0x24f   :  { %9876 = vmatmul.mubr.f32.gmra.mrb[132].mxu0 %v8155_v28 }
 0x250   :  { %10805 = vmatpush3.bf16.msra.mxu0 %v12004_v5  ;;  %9878 = vmatprep.mubr.f32.mxu0 %v8156_v21 }
 0x251   :  { %10807 = vmatprep.subr.bf16.mxu0 %v12006_v13 }
 0x253   :  { %9879 = vmatmul.mubr.f32.gmra.mrb[134].mxu0 %v8157_v8 }
 0x254   :  { %10809 = vmatpush3.bf16.msra.mxu0 %v12006_v13  ;;  %9881 = vmatprep.mubr.f32.mxu0 %v8158_v22 }
 0x255   :  { %10811 = vmatprep.subr.bf16.mxu0 %v12008_v15 }
 0x257   :  { %9882 = vmatmul.mubr.f32.gmra.mrb[136].mxu0 %v8159_v47 }
 0x258   :  { %10813 = vmatpush3.bf16.msra.mxu0 %v12008_v15  ;;  %9884 = vmatprep.mubr.f32.mxu0 %v8160_v12 }
 0x259   :  { %10815 = vmatprep.subr.bf16.mxu0 %v12010_v30 }
 0x25b   :  { %9885 = vmatmul.mubr.f32.gmra.mrb[138].mxu0 %v8161_v37 }
 0x25c   :  { %10817 = vmatpush3.bf16.msra.mxu0 %v12010_v30  ;;  %9887 = vmatprep.mubr.f32.mxu0 %v8162_v3 }
 0x25d   :  { %10819 = vmatprep.subr.bf16.mxu0 %v12012_v17 }
 0x25f   :  { %9888 = vmatmul.mubr.f32.gmra.mrb[140].mxu0 %v8163_v57 }
 0x260   :  { %10821 = vmatpush3.bf16.msra.mxu0 %v12012_v17  ;;  %9890 = vmatprep.mubr.f32.mxu0 %v8164_v40 }
 0x261   :  { %10823 = vmatprep.subr.bf16.mxu0 %v12014_v35 }
 0x263   :  { %9891 = vmatmul.mubr.f32.gmra.mrb[142].mxu0 %v8165_v61 }
 0x264   :  { %10825 = vmatpush3.bf16.msra.mxu0 %v12014_v35  ;;  %9957 = vmatprep.mubr.f32.mxu0 %v8186_v62 }
 0x265   :  { %10835 = vmatprep.subr.bf16.mxu0 %v12000_v29 }
 0x267   :  { %9958 = vmatmul.mubr.f32.vlgmr.msra.gmra.mrb[144].mxu0 %v8187_v36  ;;  %v1147_v36 = vld [vmem:[%s13855_s29 + $0x10] sm:$0xff] }
 0x268   :  { %10837 = vmatpush3.bf16.msra.mxu0 %v12000_v29  ;;  %9960 = vmatprep.mubr.f32.mxu0 %v8188_v58  ;;  %v8192_v29 = vld [vmem:[%s13842_s24 + $0x3b0] sm:$0xff]  ;;  %v1148_v58 = vld [vmem:[%s13855_s29 + $0x18] sm:$0xff] }
 0x269   :  { %10839 = vmatprep.subr.bf16.mxu0 %v12002_v51 }
 0x26b   :  { %9961 = vmatmul.mubr.f32.gmra.mrb[146].mxu0 %v8189_v18 }
 0x26c   :  { %10841 = vmatpush3.bf16.msra.mxu0 %v12002_v51  ;;  %9963 = vmatprep.mubr.f32.mxu0 %v8190_v49  ;;  %v8194_v51 = vld [vmem:[%s13842_s24 + $0x3c0] sm:$0xff] }
 0x26d   :  { %10843 = vmatprep.subr.bf16.mxu0 %v12004_v5 }
 0x26f   :  { %9964 = vmatmul.mubr.f32.gmra.mrb[148].mxu0 %v8191_v42 }
 0x270   :  { %10845 = vmatpush3.bf16.msra.mxu0 %v12004_v5  ;;  %9966 = vmatprep.mubr.f32.mxu0 %v8192_v29  ;;  %v8196_v5 = vld [vmem:[%s13842_s24 + $0x3d0] sm:$0xff]  ;;  %v10590_v29 = vpack.c.bf16 %v1148_v58, %v1147_v36 }
 0x271   :  { %10847 = vmatprep.subr.bf16.mxu0 %v12006_v13 }
 0x273   :  { %9967 = vmatmul.mubr.f32.gmra.mrb[150].mxu0 %v8193_v44 }
 0x274   :  { %10849 = vmatpush3.bf16.msra.mxu0 %v12006_v13  ;;  %9969 = vmatprep.mubr.f32.mxu0 %v8194_v51  ;;  %v8198_v13 = vld [vmem:[%s13842_s24 + $0x3e0] sm:$0xff] }
 0x275   :  { %10851 = vmatprep.subr.bf16.mxu0 %v12008_v15  ;;  %v8022_v51 = vld [vmem:[%s13855_s29 + $0x40] sm:$0xff] }
 0x277   :  { %9970 = vmatmul.mubr.f32.gmra.mrb[152].mxu0 %v8195_v48  ;;  %v8023_v48 = vld [vmem:[%s13855_s29 + $0x48] sm:$0xff] }
 0x278   :  { %10853 = vmatpush3.bf16.msra.mxu0 %v12008_v15  ;;  %9972 = vmatprep.mubr.f32.mxu0 %v8196_v5  ;;  %v8200_v15 = vld [vmem:[%s13842_s24 + $0x3f0] sm:$0xff] }
 0x279   :  { %10855 = vmatprep.subr.bf16.mxu0 %v12010_v30 }
 0x27b   :  { %9973 = vmatmul.mubr.f32.gmra.mrb[154].mxu0 %v8197_v46 }
 0x27c   :  { %10857 = vmatpush3.bf16.msra.mxu0 %v12010_v30  ;;  %9975 = vmatprep.mubr.f32.mxu0 %v8198_v13  ;;  %v8222_v30 = vld [vmem:[%s13842_s24 + $0x400] sm:$0xff] }
 0x27d   :  { %10859 = vmatprep.subr.bf16.mxu0 %v12012_v17 }
 0x27f   :  { %9976 = vmatmul.mubr.f32.gmra.mrb[156].mxu0 %v8199_v52  ;;  %v10626_v52 = vpack.c.bf16 %v8023_v48, %v8022_v51  ;;  %v8024_v48 = vld [vmem:[%s13855_s29 + $0x50] sm:$0xff] }
 0x280   :  { %10861 = vmatpush3.bf16.msra.mxu0 %v12012_v17  ;;  %9978 = vmatprep.mubr.f32.mxu0 %v8200_v15  ;;  %v8224_v17 = vld [vmem:[%s13842_s24 + $0x410] sm:$0xff] }
 0x281   :  { %10863 = vmatprep.subr.bf16.mxu0 %v12014_v35 }
 0x283   :  { %9979 = vmatmul.mubr.f32.gmra.mrb[158].mxu0 %v8201_v39 }
 0x284   :  { %10865 = vmatpush3.bf16.msra.mxu0 %v12014_v35  ;;  %10045 = vmatprep.mubr.f32.mxu0 %v8222_v30  ;;  %v8227_v35 = vld [vmem:[%s13842_s24 + $0x428] sm:$0xff] }
 0x287   :  { %10046 = vmatmul.mubr.f32.vlgmr.msra.gmra.mrb[160].mxu0 %v8223_v14 }
 0x288   :  { %10048 = vmatprep.mubr.f32.mxu0 %v8224_v17 }
 0x28b   :  { %10049 = vmatmul.mubr.f32.gmra.mrb[162].mxu0 %v8225_v41 }
 0x28c   :  { %10051 = vmatprep.mubr.f32.mxu0 %v8226_v23 }
 0x28f   :  { %10052 = vmatmul.mubr.f32.gmra.mrb[164].mxu0 %v8227_v35 }
 0x290   :  { %10054 = vmatprep.mubr.f32.mxu0 %v8228_v38 }
 0x293   :  { %10055 = vmatmul.mubr.f32.gmra.mrb[166].mxu0 %v8229_v53 }
 0x294   :  { %10057 = vmatprep.mubr.f32.mxu0 %v8230_v10 }
 0x297   :  { %10058 = vmatmul.mubr.f32.gmra.mrb[168].mxu0 %v8231_v31 }
 0x298   :  { %10060 = vmatprep.mubr.f32.mxu0 %v8232_v32 }
 0x29a   :  { %v12598_v25 = vpop.f32.mrb[0].mxu1  ;;  %v12600_v26 = vpop.f32.mrb[64].mxu0 }
 0x29b   :  { %v12602_v0 = vpop.f32.mrb[1].mxu1  ;;  %10061 = vmatmul.mubr.f32.gmra.mrb[170].mxu0 %v8233_v33  ;;  %v12604_v59 = vpop.f32.mrb[65].mxu0 }
 0x29c   :  { %10063 = vmatprep.mubr.f32.mxu0 %v8234_v63 }
 0x29e   :  { %v12612_v55 = vpop.f32.mrb[2].mxu1  ;;  %v12614_v56 = vpop.f32.mrb[66].mxu0 }
 0x29f   :  { %v12616_v60 = vpop.f32.mrb[3].mxu1  ;;  %10064 = vmatmul.mubr.f32.gmra.mrb[172].mxu0 %v8235_v34  ;;  %v12618_v11 = vpop.f32.mrb[67].mxu0 }
 0x2a0   :  { %10066 = vmatprep.mubr.f32.mxu0 %v8236_v54 }
 0x2a2   :  { %v12623_v16 = vpop.f32.mrb[4].mxu1  ;;  %v12625_v45 = vpop.f32.mrb[68].mxu0 }
 0x2a3   :  { %v12627_v19 = vpop.f32.mrb[5].mxu1  ;;  %10067 = vmatmul.mubr.f32.gmra.mrb[174].mxu0 %v8237_v43  ;;  %v12629_v7 = vpop.f32.mrb[69].mxu0 }
 0x2a6   :  { %v12631_v27 = vpop.f32.mrb[6].mxu1  ;;  %v12633_v1 = vpop.f32.mrb[70].mxu0 }
 0x2a7   :  { %v12635_v4 = vpop.f32.mrb[7].mxu1  ;;  %v12637_v2 = vpop.f32.mrb[71].mxu0 }
 0x2aa   :  { %v12639_v24 = vpop.f32.mrb[8].mxu1  ;;  %v12641_v50 = vpop.f32.mrb[72].mxu0 }
 0x2ab   :  { %v12643_v28 = vpop.f32.mrb[9].mxu1  ;;  %v12645_v21 = vpop.f32.mrb[73].mxu0 }
 0x2ae   :  { %v12647_v20 = vpop.f32.mrb[10].mxu1  ;;  %v12649_v9 = vpop.f32.mrb[74].mxu0 }
 0x2af   :  { %v12651_v8 = vpop.f32.mrb[11].mxu1  ;;  %v12653_v22 = vpop.f32.mrb[75].mxu0 }
 0x2b2   :  { %v12655_v47 = vpop.f32.mrb[12].mxu1  ;;  %v12657_v12 = vpop.f32.mrb[76].mxu0 }
 0x2b3   :  { %v12659_v37 = vpop.f32.mrb[13].mxu1  ;;  %v12661_v3 = vpop.f32.mrb[77].mxu0 }
 0x2b6   :  { %v12663_v57 = vpop.f32.mrb[14].mxu1  ;;  %v12665_v40 = vpop.f32.mrb[78].mxu0 }
 0x2b7   :  { %v12667_v61 = vpop.f32.mrb[15].mxu1  ;;  %v12669_v62 = vpop.f32.mrb[79].mxu0 }
 0x2ba   :  { %v9399_v18 = vpop.f32.mrb[16].mxu1  ;;  %v12677_v49 = vpop.f32.mrb[80].mxu0 }
 0x2bb   :  { %v1232_v42 = vpop.f32.mrb[17].mxu1  ;;  %v12679_v44 = vpop.f32.mrb[81].mxu0 }
 0x2bc   :  { %9429 = vmatprep.mubr.msk.f32.mxu1 %vm793_vm4, %v1232_v42 }
 0x2bd   :  { %9430 = vmatmul.mubr.msk.f32.vlgmr.msra.gmra.mrb[32].mxu1 %vm793_vm4, %v9399_v18 }
 0x2be   :  { %v9402_v5 = vpop.f32.mrb[18].mxu1  ;;  %10589 = vmatpush3.bf16.msra.mxu1 %v12454_v6  ;;  %v12690_v46 = vpop.f32.mrb[82].mxu0 }
 0x2bf   :  { %v1242_v13 = vpop.f32.mrb[19].mxu1  ;;  %10591 = vmatprep.subr.bf16.mxu1 %v10590_v29  ;;  %v12692_v15 = vpop.f32.mrb[83].mxu0 }
 0x2c0   :  { %9432 = vmatprep.mubr.msk.f32.mxu1 %vm793_vm4, %v1242_v13 }
 0x2c1   :  { %9433 = vmatmul.mubr.msk.f32.gmra.mrb[34].mxu1 %vm793_vm4, %v9402_v5  ;;  %v8025_v5 = vld [vmem:[%s13855_s29 + $0x58] sm:$0xff] }
 0x2c2   :  { %v9405_v39 = vpop.f32.mrb[20].mxu1  ;;  %10593 = vmatpush3.bf16.msra.mxu1 %v10590_v29  ;;  %v12696_v30 = vpop.f32.mrb[84].mxu0 }
 0x2c3   :  { %v1252_v14 = vpop.f32.mrb[21].mxu1  ;;  %10627 = vmatprep.subr.bf16.mxu1 %v10626_v52  ;;  %v12698_v17 = vpop.f32.mrb[85].mxu0 }
 0x2c4   :  { %9435 = vmatprep.mubr.msk.f32.mxu1 %vm793_vm4, %v1252_v14 }
 0x2c5   :  { %9436 = vmatmul.mubr.msk.f32.gmra.mrb[36].mxu1 %vm793_vm4, %v9405_v39  ;;  %v10630_v39 = vpack.c.bf16 %v8025_v5, %v8024_v48 }
 0x2c6   :  { %v9408_v6 = vpop.f32.mrb[22].mxu1  ;;  %v12702_v41 = vpop.f32.mrb[86].mxu0 }
 0x2c7   :  { %v1262_v23 = vpop.f32.mrb[23].mxu1  ;;  %v12704_v35 = vpop.f32.mrb[87].mxu0 }
 0x2c8   :  { %9438 = vmatprep.mubr.msk.f32.mxu1 %vm793_vm4, %v1262_v23  ;;  %v8059_v23 = vld [vmem:[%s13855_s29 + $0x68] sm:$0xff] }
 0x2c9   :  { %9439 = vmatmul.mubr.msk.f32.gmra.mrb[38].mxu1 %vm793_vm4, %v9408_v6  ;;  %v8058_v6 = vld [vmem:[%s13855_s29 + $0x60] sm:$0xff] }
 0x2ca   :  { %v9411_v38 = vpop.f32.mrb[24].mxu1  ;;  %v12708_v53 = vpop.f32.mrb[88].mxu0 }
 0x2cb   :  { %v1272_v10 = vpop.f32.mrb[25].mxu1  ;;  %v12710_v31 = vpop.f32.mrb[89].mxu0 }
 0x2cc   :  { %9441 = vmatprep.mubr.msk.f32.mxu1 %vm793_vm4, %v1272_v10 }
 0x2cd   :  { %9442 = vmatmul.mubr.msk.f32.gmra.mrb[40].mxu1 %vm793_vm4, %v9411_v38  ;;  %v10666_v38 = vpack.c.bf16 %v8059_v23, %v8058_v6  ;;  %v8096_v6 = vld [vmem:[%s13855_s29 + $0x90] sm:$0xff] }
 0x2ce   :  { %v9414_v32 = vpop.f32.mrb[26].mxu1  ;;  %v12714_v33 = vpop.f32.mrb[90].mxu0 }
 0x2cf   :  { %v1282_v63 = vpop.f32.mrb[27].mxu1  ;;  %v12716_v34 = vpop.f32.mrb[91].mxu0 }
 0x2d0   :  { %9444 = vmatprep.mubr.msk.f32.mxu1 %vm793_vm4, %v1282_v63 }
 0x2d1   :  { %9445 = vmatmul.mubr.msk.f32.gmra.mrb[42].mxu1 %vm793_vm4, %v9414_v32 }
 0x2d2   :  { %v9417_v54 = vpop.f32.mrb[28].mxu1  ;;  %v12720_v43 = vpop.f32.mrb[92].mxu0 }
 0x2d3   :  { %v1292_v36 = vpop.f32.mrb[29].mxu1  ;;  %v12722_v58 = vpop.f32.mrb[93].mxu0 }
 0x2d4   :  { %9447 = vmatprep.mubr.msk.f32.mxu1 %vm793_vm4, %v1292_v36  ;;  %v8095_v36 = vld [vmem:[%s13855_s29 + $0x88] sm:$0xff] }
 0x2d5   :  { %9448 = vmatmul.mubr.msk.f32.gmra.mrb[44].mxu1 %vm793_vm4, %v9417_v54  ;;  %v8094_v54 = vld [vmem:[%s13855_s29 + $0x80] sm:$0xff] }
 0x2d6   :  { %v9420_v18 = vpop.f32.mrb[30].mxu1  ;;  %v12726_v42 = vpop.f32.mrb[94].mxu0 }
 0x2d7   :  { %v1302_v29 = vpop.f32.mrb[31].mxu1  ;;  %v12728_v51 = vpop.f32.mrb[95].mxu0 }
 0x2d8   :  { %9450 = vmatprep.mubr.msk.f32.mxu1 %vm793_vm4, %v1302_v29 }
 0x2d9   :  { %9451 = vmatmul.mubr.msk.f32.gmra.mrb[46].mxu1 %vm793_vm4, %v9420_v18 }
 0x2da   :  { %9461 = vmatprep.mubr.msk.f32.mxu1 %vm793_vm4, %v12602_v0  ;;  %v12740_v13 = vpop.f32.mrb[96].mxu0 }
 0x2db   :  { %v12742_v14 = vpop.f32.mrb[97].mxu0 }
 0x2dd   :  { %9462 = vmatmul.mubr.msk.f32.vlgmr.msra.gmra.mrb[32].mxu1 %vm793_vm4, %v12598_v25 }
 0x2de   :  { %9464 = vmatprep.mubr.msk.f32.mxu1 %vm793_vm4, %v12616_v60  ;;  %10629 = vmatpush3.bf16.msra.mxu1 %v10626_v52  ;;  %v12754_v0 = vpop.f32.mrb[98].mxu0 }
 0x2df   :  { %10631 = vmatprep.subr.bf16.mxu1 %v10630_v39  ;;  %v12756_v10 = vpop.f32.mrb[99].mxu0 }
 0x2e1   :  { %9465 = vmatmul.mubr.msk.f32.gmra.mrb[34].mxu1 %vm793_vm4, %v12612_v55 }
 0x2e2   :  { %9467 = vmatprep.mubr.msk.f32.mxu1 %vm793_vm4, %v12627_v19  ;;  %10633 = vmatpush3.bf16.msra.mxu1 %v10630_v39  ;;  %v12762_v32 = vpop.f32.mrb[100].mxu0  ;;  %v8240_v39 = vld [vmem:[%s13855_s29 + $0x110] sm:$0xff] }
 0x2e3   :  { %10667 = vmatprep.subr.bf16.mxu1 %v10666_v38  ;;  %v12764_v25 = vpop.f32.mrb[101].mxu0 }
 0x2e5   :  { %9468 = vmatmul.mubr.msk.f32.gmra.mrb[36].mxu1 %vm793_vm4, %v12623_v16 }
 0x2e6   :  { %9470 = vmatprep.mubr.msk.f32.mxu1 %vm793_vm4, %v12635_v4  ;;  %v12770_v60 = vpop.f32.mrb[102].mxu0 }
 0x2e7   :  { %v12772_v52 = vpop.f32.mrb[103].mxu0 }
 0x2e9   :  { %9471 = vmatmul.mubr.msk.f32.gmra.mrb[38].mxu1 %vm793_vm4, %v12631_v27 }
 0x2ea   :  { %9473 = vmatprep.mubr.msk.f32.mxu1 %vm793_vm4, %v12643_v28  ;;  %v12778_v55 = vpop.f32.mrb[104].mxu0 }
 0x2eb   :  { %v12780_v19 = vpop.f32.mrb[105].mxu0 }
 0x2ed   :  { %9474 = vmatmul.mubr.msk.f32.gmra.mrb[40].mxu1 %vm793_vm4, %v12639_v24 }
 0x2ee   :  { %9476 = vmatprep.mubr.msk.f32.mxu1 %vm793_vm4, %v12651_v8  ;;  %v12786_v16 = vpop.f32.mrb[106].mxu0 }
 0x2ef   :  { %v12788_v4 = vpop.f32.mrb[107].mxu0 }
 0x2f1   :  { %9477 = vmatmul.mubr.msk.f32.gmra.mrb[42].mxu1 %vm793_vm4, %v12647_v20  ;;  %v8060_v20 = vld [vmem:[%s13855_s29 + $0x70] sm:$0xff] }
 0x2f2   :  { %9479 = vmatprep.mubr.msk.f32.mxu1 %vm793_vm4, %v12659_v37  ;;  %v12794_v27 = vpop.f32.mrb[108].mxu0  ;;  %v8061_v37 = vld [vmem:[%s13855_s29 + $0x78] sm:$0xff] }
 0x2f3   :  { %v12796_v28 = vpop.f32.mrb[109].mxu0 }
 0x2f5   :  { %9480 = vmatmul.mubr.msk.f32.gmra.mrb[44].mxu1 %vm793_vm4, %v12655_v47 }
 0x2f6   :  { %9482 = vmatprep.mubr.msk.f32.mxu1 %vm793_vm4, %v12667_v61  ;;  %v12802_v24 = vpop.f32.mrb[110].mxu0  ;;  %v10670_v61 = vpack.c.bf16 %v8061_v37, %v8060_v20 }
 0x2f7   :  { %v12804_v8 = vpop.f32.mrb[111].mxu0 }
 0x2f9   :  { %9483 = vmatmul.mubr.msk.f32.gmra.mrb[46].mxu1 %vm793_vm4, %v12663_v57  ;;  %v10706_v57 = vpack.c.bf16 %v8095_v36, %v8094_v54 }
 0x2fa   :  { %9549 = vmatprep.mubr.msk.f32.mxu1 %vm793_vm4, %v12604_v59  ;;  %v12816_v47 = vpop.f32.mrb[112].mxu0 }
 0x2fb   :  { %v12818_v63 = vpop.f32.mrb[113].mxu0 }
 0x2fd   :  { %9550 = vmatmul.mubr.msk.f32.vlgmr.msra.gmra.mrb[32].mxu1 %vm793_vm4, %v12600_v26 }
 0x2fe   :  { %9552 = vmatprep.mubr.msk.f32.mxu1 %vm793_vm4, %v12618_v11  ;;  %10669 = vmatpush3.bf16.msra.mxu1 %v10666_v38  ;;  %v12830_v59 = vpop.f32.mrb[114].mxu0 }
 0x2ff   :  { %10671 = vmatprep.subr.bf16.mxu1 %v10670_v61  ;;  %v12832_v18 = vpop.f32.mrb[115].mxu0 }
 0x301   :  { %9553 = vmatmul.mubr.msk.f32.gmra.mrb[34].mxu1 %vm793_vm4, %v12614_v56 }
 0x302   :  { %9555 = vmatprep.mubr.msk.f32.mxu1 %vm793_vm4, %v12629_v7  ;;  %10673 = vmatpush3.bf16.msra.mxu1 %v10670_v61  ;;  %v12838_v29 = vpop.f32.mrb[116].mxu0  ;;  %v8130_v61 = vld [vmem:[%s13855_s29 + $0xa0] sm:$0xff] }
 0x303   :  { %10707 = vmatprep.subr.bf16.mxu1 %v10706_v57  ;;  %v12840_v26 = vpop.f32.mrb[117].mxu0 }
 0x305   :  { %9556 = vmatmul.mubr.msk.f32.gmra.mrb[36].mxu1 %vm793_vm4, %v12625_v45 }
 0x306   :  { %9558 = vmatprep.mubr.msk.f32.mxu1 %vm793_vm4, %v12637_v2  ;;  %v12846_v11 = vpop.f32.mrb[118].mxu0 }
 0x307   :  { %v12848_v48 = vpop.f32.mrb[119].mxu0 }
 0x309   :  { %9559 = vmatmul.mubr.msk.f32.gmra.mrb[38].mxu1 %vm793_vm4, %v12633_v1 }
 0x30a   :  { %9561 = vmatprep.mubr.msk.f32.mxu1 %vm793_vm4, %v12645_v21  ;;  %v12854_v56 = vpop.f32.mrb[120].mxu0 }
 0x30b   :  { %v12856_v7 = vpop.f32.mrb[121].mxu0 }
 0x30d   :  { %9562 = vmatmul.mubr.msk.f32.gmra.mrb[40].mxu1 %vm793_vm4, %v12641_v50  ;;  %v8238_v50 = vld [vmem:[%s13855_s29 + $0x100] sm:$0xff] }
 0x30e   :  { %9564 = vmatprep.mubr.msk.f32.mxu1 %vm793_vm4, %v12653_v22  ;;  %v12862_v45 = vpop.f32.mrb[122].mxu0  ;;  %v8239_v22 = vld [vmem:[%s13855_s29 + $0x108] sm:$0xff] }
 0x30f   :  { %v12864_v2 = vpop.f32.mrb[123].mxu0  ;;  %v12880_v5 = vpack.c.bf16 %v8239_v22, %v8238_v50 }
 0x311   :  { %9565 = vmatmul.mubr.msk.f32.gmra.mrb[42].mxu1 %vm793_vm4, %v12649_v9  ;;  %10867 = vmatprep.subr.bf16.mxu0 %v12880_v5 }
 0x312   :  { %9567 = vmatprep.mubr.msk.f32.mxu1 %vm793_vm4, %v12661_v3  ;;  %v12870_v1 = vpop.f32.mrb[124].mxu0  ;;  %10869 = vmatpush3.bf16.msra.mxu0 %v12880_v5 }
 0x313   :  { %v12872_v21 = vpop.f32.mrb[125].mxu0 }
 0x315   :  { %9568 = vmatmul.mubr.msk.f32.gmra.mrb[44].mxu1 %vm793_vm4, %v12657_v12  ;;  %v8097_v12 = vld [vmem:[%s13855_s29 + $0x98] sm:$0xff] }
 0x316   :  { %9570 = vmatprep.mubr.msk.f32.mxu1 %vm793_vm4, %v12669_v62  ;;  %v12886_v9 = vpop.f32.mrb[126].mxu0  ;;  %v8241_v62 = vld [vmem:[%s13855_s29 + $0x118] sm:$0xff]  ;;  %v10710_v20 = vpack.c.bf16 %v8097_v12, %v8096_v6  ;;  %v8167_v6 = vld [vmem:[%s13855_s29 + $0xc8] sm:$0xff] }
 0x317   :  { %v12889_v3 = vpop.f32.mrb[127].mxu0  ;;  %v12906_v23 = vpack.c.bf16 %v8241_v62, %v8240_v39  ;;  %v8166_v39 = vld [vmem:[%s13855_s29 + $0xc0] sm:$0xff] }
 0x319   :  { %9571 = vmatmul.mubr.msk.f32.gmra.mrb[46].mxu1 %vm793_vm4, %v12665_v40  ;;  %10871 = vmatprep.subr.bf16.mxu0 %v12906_v23  ;;  %v8131_v40 = vld [vmem:[%s13855_s29 + $0xa8] sm:$0xff] }
 0x31a   :  { %9637 = vmatprep.mubr.msk.f32.mxu1 %vm793_vm4, %v12679_v44  ;;  %v12910_v38 = vpop.f32.mrb[128].mxu0  ;;  %10873 = vmatpush3.bf16.msra.mxu0 %v12906_v23  ;;  %v10746_v54 = vpack.c.bf16 %v8131_v40, %v8130_v61  ;;  %v8202_v40 = vld [vmem:[%s13855_s29 + $0xe0] sm:$0xff] }
 0x31b   :  { %v12912_v37 = vpop.f32.mrb[129].mxu0 }
 0x31d   :  { %9638 = vmatmul.mubr.msk.f32.vlgmr.msra.gmra.mrb[32].mxu1 %vm793_vm4, %v12677_v49 }
 0x31e   :  { %9640 = vmatprep.mubr.msk.f32.mxu1 %vm793_vm4, %v12692_v15  ;;  %10709 = vmatpush3.bf16.msra.mxu1 %v10706_v57  ;;  %v12926_v44 = vpop.f32.mrb[130].mxu0 }
 0x31f   :  { %10711 = vmatprep.subr.bf16.mxu1 %v10710_v20  ;;  %v12928_v36 = vpop.f32.mrb[131].mxu0 }
 0x321   :  { %9641 = vmatmul.mubr.msk.f32.gmra.mrb[34].mxu1 %vm793_vm4, %v12690_v46 }
 0x322   :  { %9643 = vmatprep.mubr.msk.f32.mxu1 %vm793_vm4, %v12698_v17  ;;  %10713 = vmatpush3.bf16.msra.mxu1 %v10710_v20  ;;  %v12934_v50 = vpop.f32.mrb[132].mxu0 }
 0x323   :  { %10747 = vmatprep.subr.bf16.mxu1 %v10746_v54  ;;  %v12936_v49 = vpop.f32.mrb[133].mxu0 }
 0x325   :  { %9644 = vmatmul.mubr.msk.f32.gmra.mrb[36].mxu1 %vm793_vm4, %v12696_v30 }
 0x326   :  { %9646 = vmatprep.mubr.msk.f32.mxu1 %vm793_vm4, %v12704_v35  ;;  %v12942_v15 = vpop.f32.mrb[134].mxu0 }
 0x327   :  { %v12944_v57 = vpop.f32.mrb[135].mxu0 }
 0x329   :  { %9647 = vmatmul.mubr.msk.f32.gmra.mrb[38].mxu1 %vm793_vm4, %v12702_v41 }
 0x32a   :  { %9649 = vmatprep.mubr.msk.f32.mxu1 %vm793_vm4, %v12710_v31  ;;  %v12950_v46 = vpop.f32.mrb[136].mxu0 }
 0x32b   :  { %v12952_v17 = vpop.f32.mrb[137].mxu0 }
 0x32d   :  { %9650 = vmatmul.mubr.msk.f32.gmra.mrb[40].mxu1 %vm793_vm4, %v12708_v53 }
 0x32e   :  { %9652 = vmatprep.mubr.msk.f32.mxu1 %vm793_vm4, %v12716_v34  ;;  %v12958_v30 = vpop.f32.mrb[138].mxu0 }
 0x32f   :  { %v12960_v35 = vpop.f32.mrb[139].mxu0 }
 0x331   :  { %9653 = vmatmul.mubr.msk.f32.gmra.mrb[42].mxu1 %vm793_vm4, %v12714_v33  ;;  %v8132_v33 = vld [vmem:[%s13855_s29 + $0xb0] sm:$0xff] }
 0x332   :  { %9655 = vmatprep.mubr.msk.f32.mxu1 %vm793_vm4, %v12722_v58  ;;  %v12966_v41 = vpop.f32.mrb[140].mxu0  ;;  %v8133_v58 = vld [vmem:[%s13855_s29 + $0xb8] sm:$0xff] }
 0x333   :  { %v12968_v31 = vpop.f32.mrb[141].mxu0 }
 0x335   :  { %9656 = vmatmul.mubr.msk.f32.gmra.mrb[44].mxu1 %vm793_vm4, %v12720_v43 }
 0x336   :  { %9658 = vmatprep.mubr.msk.f32.mxu1 %vm793_vm4, %v12728_v51  ;;  %v12974_v53 = vpop.f32.mrb[142].mxu0  ;;  %v10750_v51 = vpack.c.bf16 %v8133_v58, %v8132_v33 }
 0x337   :  { %v12976_v34 = vpop.f32.mrb[143].mxu0 }
 0x339   :  { %9659 = vmatmul.mubr.msk.f32.gmra.mrb[46].mxu1 %vm793_vm4, %v12726_v42 }
 0x33a   :  { %9725 = vmatprep.mubr.msk.f32.mxu1 %vm793_vm4, %v12742_v14  ;;  %v12988_v43 = vpop.f32.mrb[144].mxu0  ;;  %v10786_v14 = vpack.c.bf16 %v8167_v6, %v8166_v39 }
 0x33b   :  { %v12990_v22 = vpop.f32.mrb[145].mxu0 }
 0x33d   :  { %9726 = vmatmul.mubr.msk.f32.vlgmr.msra.gmra.mrb[32].mxu1 %vm793_vm4, %v12740_v13 }
 0x33e   :  { %9728 = vmatprep.mubr.msk.f32.mxu1 %vm793_vm4, %v12756_v10  ;;  %10749 = vmatpush3.bf16.msra.mxu1 %v10746_v54  ;;  %v13002_v42 = vpop.f32.mrb[146].mxu0  ;;  %v8203_v54 = vld [vmem:[%s13855_s29 + $0xe8] sm:$0xff] }
 0x33f   :  { %10751 = vmatprep.subr.bf16.mxu1 %v10750_v51  ;;  %v13004_v12 = vpop.f32.mrb[147].mxu0 }
 0x341   :  { %9729 = vmatmul.mubr.msk.f32.gmra.mrb[34].mxu1 %vm793_vm4, %v12754_v0 }
 0x342   :  { %9731 = vmatprep.mubr.msk.f32.mxu1 %vm793_vm4, %v12764_v25  ;;  %10753 = vmatpush3.bf16.msra.mxu1 %v10750_v51  ;;  %v13010_v62 = vpop.f32.mrb[148].mxu0 }
 0x343   :  { %10787 = vmatprep.subr.bf16.mxu1 %v10786_v14  ;;  %v13012_v13 = vpop.f32.mrb[149].mxu0 }
 0x345   :  { %9732 = vmatmul.mubr.msk.f32.gmra.mrb[36].mxu1 %vm793_vm4, %v12762_v32 }
 0x346   :  { %9734 = vmatprep.mubr.msk.f32.mxu1 %vm793_vm4, %v12772_v52  ;;  %v13018_v10 = vpop.f32.mrb[150].mxu0 }
 0x347   :  { %v13020_v20 = vpop.f32.mrb[151].mxu0 }
 0x349   :  { %9735 = vmatmul.mubr.msk.f32.gmra.mrb[38].mxu1 %vm793_vm4, %v12770_v60 }
 0x34a   :  { %9737 = vmatprep.mubr.msk.f32.mxu1 %vm793_vm4, %v12780_v19  ;;  %v13026_v0 = vpop.f32.mrb[152].mxu0 }
 0x34b   :  { %v13028_v25 = vpop.f32.mrb[153].mxu0 }
 0x34d   :  { %9738 = vmatmul.mubr.msk.f32.gmra.mrb[40].mxu1 %vm793_vm4, %v12778_v55 }
 0x34e   :  { %9740 = vmatprep.mubr.msk.f32.mxu1 %vm793_vm4, %v12788_v4  ;;  %v13034_v32 = vpop.f32.mrb[154].mxu0 }
 0x34f   :  { %v13036_v52 = vpop.f32.mrb[155].mxu0 }
 0x351   :  { %9741 = vmatmul.mubr.msk.f32.gmra.mrb[42].mxu1 %vm793_vm4, %v12786_v16  ;;  %v8168_v16 = vld [vmem:[%s13855_s29 + $0xd0] sm:$0xff] }
 0x352   :  { %9743 = vmatprep.mubr.msk.f32.mxu1 %vm793_vm4, %v12796_v28  ;;  %v13042_v60 = vpop.f32.mrb[156].mxu0  ;;  %v8169_v28 = vld [vmem:[%s13855_s29 + $0xd8] sm:$0xff] }
 0x353   :  { %v13044_v19 = vpop.f32.mrb[157].mxu0 }
 0x355   :  { %9744 = vmatmul.mubr.msk.f32.gmra.mrb[44].mxu1 %vm793_vm4, %v12794_v27 }
 0x356   :  { %9746 = vmatprep.mubr.msk.f32.mxu1 %vm793_vm4, %v12804_v8  ;;  %v13050_v55 = vpop.f32.mrb[158].mxu0  ;;  %v10790_v8 = vpack.c.bf16 %v8169_v28, %v8168_v16 }
 0x357   :  { %v13052_v4 = vpop.f32.mrb[159].mxu0 }
 0x359   :  { %9747 = vmatmul.mubr.msk.f32.gmra.mrb[46].mxu1 %vm793_vm4, %v12802_v24 }
 0x35a   :  { %9813 = vmatprep.mubr.msk.f32.mxu1 %vm793_vm4, %v12818_v63  ;;  %v10047_v27 = vpop.f32.mrb[160].mxu0  ;;  %v10826_v63 = vpack.c.bf16 %v8203_v54, %v8202_v40 }
 0x35b   :  { %v4041_v61 = vpop.f32.mrb[161].mxu0 }
 0x35c   :  { %10077 = vmatprep.mubr.msk.f32.mxu0 %vm793_vm4, %v4041_v61 }
 0x35d   :  { %9814 = vmatmul.mubr.msk.f32.vlgmr.msra.gmra.mrb[32].mxu1 %vm793_vm4, %v12816_v47  ;;  %10078 = vmatmul.mubr.msk.f32.vlgmr.msra.gmra.mrb[176].mxu0 %vm793_vm4, %v10047_v27 }
 0x35e   :  { %9816 = vmatprep.mubr.msk.f32.mxu1 %vm793_vm4, %v12832_v18  ;;  %10789 = vmatpush3.bf16.msra.mxu1 %v10786_v14  ;;  %v10050_v24 = vpop.f32.mrb[162].mxu0 }
 0x35f   :  { %10791 = vmatprep.subr.bf16.mxu1 %v10790_v8  ;;  %v4051_v33 = vpop.f32.mrb[163].mxu0 }
 0x360   :  { %10080 = vmatprep.mubr.msk.f32.mxu0 %vm793_vm4, %v4051_v33 }
 0x361   :  { %9817 = vmatmul.mubr.msk.f32.gmra.mrb[34].mxu1 %vm793_vm4, %v12830_v59  ;;  %10081 = vmatmul.mubr.msk.f32.gmra.mrb[178].mxu0 %vm793_vm4, %v10050_v24 }
 0x362   :  { %9819 = vmatprep.mubr.msk.f32.mxu1 %vm793_vm4, %v12840_v26  ;;  %10793 = vmatpush3.bf16.msra.mxu1 %v10790_v8  ;;  %v10053_v47 = vpop.f32.mrb[164].mxu0 }
 0x363   :  { %10827 = vmatprep.subr.bf16.mxu1 %v10826_v63  ;;  %v4061_v58 = vpop.f32.mrb[165].mxu0 }
 0x364   :  { %10083 = vmatprep.mubr.msk.f32.mxu0 %vm793_vm4, %v4061_v58 }
 0x365   :  { %9820 = vmatmul.mubr.msk.f32.gmra.mrb[36].mxu1 %vm793_vm4, %v12838_v29  ;;  %10084 = vmatmul.mubr.msk.f32.gmra.mrb[180].mxu0 %vm793_vm4, %v10053_v47 }
 0x366   :  { %9822 = vmatprep.mubr.msk.f32.mxu1 %vm793_vm4, %v12848_v48  ;;  %v10056_v59 = vpop.f32.mrb[166].mxu0 }
 0x367   :  { %v4071_v18 = vpop.f32.mrb[167].mxu0 }
 0x368   :  { %10086 = vmatprep.mubr.msk.f32.mxu0 %vm793_vm4, %v4071_v18 }
 0x369   :  { %9823 = vmatmul.mubr.msk.f32.gmra.mrb[38].mxu1 %vm793_vm4, %v12846_v11  ;;  %10087 = vmatmul.mubr.msk.f32.gmra.mrb[182].mxu0 %vm793_vm4, %v10056_v59 }
 0x36a   :  { %9825 = vmatprep.mubr.msk.f32.mxu1 %vm793_vm4, %v12856_v7  ;;  %v10059_v26 = vpop.f32.mrb[168].mxu0 }
 0x36b   :  { %v4081_v51 = vpop.f32.mrb[169].mxu0 }
 0x36d   :  { %9826 = vmatmul.mubr.msk.f32.gmra.mrb[40].mxu1 %vm793_vm4, %v12854_v56 }
 0x36e   :  { %9828 = vmatprep.mubr.msk.f32.mxu1 %vm793_vm4, %v12864_v2  ;;  %v10062_v29 = vpop.f32.mrb[170].mxu0  ;;  %v8204_v2 = vld [vmem:[%s13855_s29 + $0xf0] sm:$0xff] }
 0x36f   :  { %v4091_v48 = vpop.f32.mrb[171].mxu0 }
 0x371   :  { %9829 = vmatmul.mubr.msk.f32.gmra.mrb[42].mxu1 %vm793_vm4, %v12862_v45  ;;  %v8205_v45 = vld [vmem:[%s13855_s29 + $0xf8] sm:$0xff] }
 0x372   :  { %9831 = vmatprep.mubr.msk.f32.mxu1 %vm793_vm4, %v12872_v21  ;;  %v10065_v11 = vpop.f32.mrb[172].mxu0 }
 0x373   :  { %v4101_v39 = vpop.f32.mrb[173].mxu0 }
 0x375   :  { %9832 = vmatmul.mubr.msk.f32.gmra.mrb[44].mxu1 %vm793_vm4, %v12870_v1  ;;  %v10830_v1 = vpack.c.bf16 %v8205_v45, %v8204_v2 }
 0x376   :  { %9834 = vmatprep.mubr.msk.f32.mxu1 %vm793_vm4, %v12889_v3  ;;  %v10068_v56 = vpop.f32.mrb[174].mxu0 }
 0x377   :  { %v4111_v7 = vpop.f32.mrb[175].mxu0 }
 0x379   :  { %9835 = vmatmul.mubr.msk.f32.gmra.mrb[46].mxu1 %vm793_vm4, %v12886_v9 }
 0x37a   :  { %9901 = vmatprep.mubr.msk.f32.mxu1 %vm793_vm4, %v12912_v37 }
 0x37d   :  { %9902 = vmatmul.mubr.msk.f32.vlgmr.msra.gmra.mrb[32].mxu1 %vm793_vm4, %v12910_v38 }
 0x37e   :  { %9904 = vmatprep.mubr.msk.f32.mxu1 %vm793_vm4, %v12928_v36  ;;  %10829 = vmatpush3.bf16.msra.mxu1 %v10826_v63  ;;  %v4429_v36 = vld [vmem:[%s13816_s10] sm:$0xff] }
 0x37f   :  { %10831 = vmatprep.subr.bf16.mxu1 %v10830_v1  ;;  %10109 = vmatprep.mubr.msk.f32.mxu0 %vm793_vm4, %v4429_v36 }
 0x381   :  { %9905 = vmatmul.mubr.msk.f32.gmra.mrb[34].mxu1 %vm793_vm4, %v12926_v44 }
 0x382   :  { %9907 = vmatprep.mubr.msk.f32.mxu1 %vm793_vm4, %v12936_v49  ;;  %10833 = vmatpush3.bf16.msra.mxu1 %v10830_v1 }
 0x383   :  { %11078 = vmatprep.subr.bf16.mxu1 %v12880_v5 }
 0x385   :  { %9908 = vmatmul.mubr.msk.f32.gmra.mrb[36].mxu1 %vm793_vm4, %v12934_v50  ;;  %v8285_v50 = vld [vmem:[%s13816_s10 + $0x40] sm:$0xff] }
 0x386   :  { %9910 = vmatprep.mubr.msk.f32.mxu1 %vm793_vm4, %v12944_v57 }
 0x389   :  { %9911 = vmatmul.mubr.msk.f32.gmra.mrb[38].mxu1 %vm793_vm4, %v12942_v15 }
 0x38a   :  { %9913 = vmatprep.mubr.msk.f32.mxu1 %vm793_vm4, %v12952_v17 }
 0x38d   :  { %9914 = vmatmul.mubr.msk.f32.gmra.mrb[40].mxu1 %vm793_vm4, %v12950_v46 }
 0x38e   :  { %9916 = vmatprep.mubr.msk.f32.mxu1 %vm793_vm4, %v12960_v35 }
 0x391   :  { %9917 = vmatmul.mubr.msk.f32.gmra.mrb[42].mxu1 %vm793_vm4, %v12958_v30 }
 0x392   :  { %9919 = vmatprep.mubr.msk.f32.mxu1 %vm793_vm4, %v12968_v31 }
 0x395   :  { %9920 = vmatmul.mubr.msk.f32.gmra.mrb[44].mxu1 %vm793_vm4, %v12966_v41 }
 0x396   :  { %9922 = vmatprep.mubr.msk.f32.mxu1 %vm793_vm4, %v12976_v34 }
 0x399   :  { %9923 = vmatmul.mubr.msk.f32.gmra.mrb[46].mxu1 %vm793_vm4, %v12974_v53 }
 0x39a   :  { %9989 = vmatprep.mubr.msk.f32.mxu1 %vm793_vm4, %v12990_v22 }
 0x39d   :  { %9990 = vmatmul.mubr.msk.f32.vlgmr.msra.gmra.mrb[32].mxu1 %vm793_vm4, %v12988_v43 }
 0x39e   :  { %9992 = vmatprep.mubr.msk.f32.mxu1 %vm793_vm4, %v13004_v12  ;;  %11080 = vmatpush3.bf16.msra.mxu1 %v12880_v5 }
 0x39f   :  { %11079 = vmatprep.subr.bf16.mxu1 %v12906_v23 }
 0x3a1   :  { %9993 = vmatmul.mubr.msk.f32.gmra.mrb[34].mxu1 %vm793_vm4, %v13002_v42 }
 0x3a2   :  { %9995 = vmatprep.mubr.msk.f32.mxu1 %vm793_vm4, %v13012_v13  ;;  %11081 = vmatpush3.bf16.msra.mxu1 %v12906_v23 }
 0x3a5   :  { %9996 = vmatmul.mubr.msk.f32.gmra.mrb[36].mxu1 %vm793_vm4, %v13010_v62 }
 0x3a6   :  { %9998 = vmatprep.mubr.msk.f32.mxu1 %vm793_vm4, %v13020_v20 }
 0x3a9   :  { %9999 = vmatmul.mubr.msk.f32.gmra.mrb[38].mxu1 %vm793_vm4, %v13018_v10 }
 0x3aa   :  { %10001 = vmatprep.mubr.msk.f32.mxu1 %vm793_vm4, %v13028_v25 }
 0x3ad   :  { %10002 = vmatmul.mubr.msk.f32.gmra.mrb[40].mxu1 %vm793_vm4, %v13026_v0 }
 0x3ae   :  { %10004 = vmatprep.mubr.msk.f32.mxu1 %vm793_vm4, %v13036_v52 }
 0x3b1   :  { %10005 = vmatmul.mubr.msk.f32.gmra.mrb[42].mxu1 %vm793_vm4, %v13034_v32 }
 0x3b2   :  { %10007 = vmatprep.mubr.msk.f32.mxu1 %vm793_vm4, %v13044_v19 }
 0x3b5   :  { %10008 = vmatmul.mubr.msk.f32.gmra.mrb[44].mxu1 %vm793_vm4, %v13042_v60 }
 0x3b6   :  { %10010 = vmatprep.mubr.msk.f32.mxu1 %vm793_vm4, %v13052_v4 }
 0x3b9   :  { %10011 = vmatmul.mubr.msk.f32.gmra.mrb[46].mxu1 %vm793_vm4, %v13050_v55  ;;  %v8258_v55 = vld [vmem:[%s13813_s7] ss:$0 sm:$0xff] }
 0x3ba   :  { %10089 = vmatprep.mubr.msk.f32.mxu1 %vm793_vm4, %v4081_v51 }
 0x3bd   :  { %10090 = vmatmul.mubr.msk.f32.vlgmr.msra.gmra.mrb[40].mxu1 %vm793_vm4, %v10059_v26 }
 0x3be   :  { %10092 = vmatprep.mubr.msk.f32.mxu1 %vm793_vm4, %v4091_v48 }
 0x3c1   :  { %10093 = vmatmul.mubr.msk.f32.gmra.mrb[42].mxu1 %vm793_vm4, %v10062_v29 }
 0x3c2   :  { %10095 = vmatprep.mubr.msk.f32.mxu1 %vm793_vm4, %v4101_v39 }
 0x3c5   :  { %10096 = vmatmul.mubr.msk.f32.gmra.mrb[44].mxu1 %vm793_vm4, %v10065_v11 }
 0x3c6   :  { %10098 = vmatprep.mubr.msk.f32.mxu1 %vm793_vm4, %v4111_v7 }
 0x3c9   :  { %10099 = vmatmul.mubr.msk.f32.gmra.mrb[46].mxu1 %vm793_vm4, %v10068_v56 }
 0x3ca   :  { %10165 = vmatprep.mubr.msk.f32.mxu1 %vm793_vm4, %v8285_v50 }
 0x430   :  { %v10079_v21 = vpop.f32.mrb[176].mxu0 }
 0x431   :  { %v4239_v5 = vpop.f32.mrb[177].mxu0 }
 0x434   :  { %v10082_v9 = vpop.f32.mrb[178].mxu0 }
 0x435   :  { %v4249_v3 = vpop.f32.mrb[179].mxu0 }
 0x438   :  { %v10085_v23 = vpop.f32.mrb[180].mxu0 }
 0x439   :  { %v4259_v38 = vpop.f32.mrb[181].mxu0 }
 0x43c   :  { %v10088_v37 = vpop.f32.mrb[182].mxu0 }
 0x43d   :  { %v4269_v44 = vpop.f32.mrb[183].mxu0 }
 0x470   :  { %v9991_v49 = vpop.f32.mrb[32].mxu1 }
 0x471   :  { %v11082_v15 = vadd.f32 %v10079_v21, %v9991_v49  ;;  %v3863_v57 = vpop.f32.mrb[33].mxu1 }
 0x472   :  { %v11083_v46 = vadd.f32 %v4239_v5, %v3863_v57 }
 0x474   :  { %v9994_v17 = vpop.f32.mrb[34].mxu1 }
 0x475   :  { %v11084_v30 = vadd.f32 %v10082_v9, %v9994_v17  ;;  %v3873_v35 = vpop.f32.mrb[35].mxu1 }
 0x476   :  { %v11085_v41 = vadd.f32 %v4249_v3, %v3873_v35 }
 0x478   :  { %v9997_v31 = vpop.f32.mrb[36].mxu1 }
 0x479   :  { %v11086_v53 = vadd.f32 %v10085_v23, %v9997_v31  ;;  %v3883_v34 = vpop.f32.mrb[37].mxu1 }
 0x47a   :  { %v11087_v43 = vadd.f32 %v4259_v38, %v3883_v34 }
 0x47b   :  { %v4338_v22 = vmax.f32 %v11082_v15, %v11086_v53 }
 0x47c   :  { %v4337_v6 = vmax.f32 %v11083_v46, %v11087_v43  ;;  %v10000_v42 = vpop.f32.mrb[38].mxu1 }
 0x47d   :  { %v11088_v14 = vadd.f32 %v10088_v37, %v10000_v42  ;;  %v3893_v12 = vpop.f32.mrb[39].mxu1 }
 0x47e   :  { %v11089_v62 = vadd.f32 %v4269_v44, %v3893_v12 }
 0x47f   :  { %v4340_v13 = vmax.f32 %v11084_v30, %v11088_v14 }
 0x480   :  { %v4339_v10 = vmax.f32 %v11085_v41, %v11089_v62 }
 0x490   :  { %v10091_v20 = vpop.f32.mrb[40].mxu1 }
 0x491   :  { %v4279_v0 = vpop.f32.mrb[41].mxu1 }
 0x494   :  { %v10094_v25 = vpop.f32.mrb[42].mxu1 }
 0x495   :  { %v4289_v32 = vpop.f32.mrb[43].mxu1 }
 0x498   :  { %v10097_v52 = vpop.f32.mrb[44].mxu1 }
 0x499   :  { %v4342_v60 = vmax.f32 %v10091_v20, %v10097_v52  ;;  %v4299_v19 = vpop.f32.mrb[45].mxu1 }
 0x49a   :  { %v4341_v4 = vmax.f32 %v4279_v0, %v4299_v19 }
 0x49b   :  { %v4346_v16 = vmax.f32 %v4338_v22, %v4342_v60 }
 0x49c   :  { %v4345_v28 = vmax.f32 %v4337_v6, %v4341_v4  ;;  %v10100_v27 = vpop.f32.mrb[46].mxu1 }
 0x49d   :  { %v4356_v8 = vadd.f32 %v8258_v55, %v4346_v16  ;;  %v4344_v61 = vmax.f32 %v10094_v25, %v10100_v27  ;;  %v4309_v40 = vpop.f32.mrb[47].mxu1 }
 0x49e   :  { %v4355_v54 = vadd.f32 %v8258_v55, %v4345_v28  ;;  %v4343_v24 = vmax.f32 %v4289_v32, %v4309_v40  ;;  %v8260_v32 = vld [vmem:[%s13815_s9] ss:$0 sm:$0xff] }
 0x49f   :  { %v4360_v63 = vsel %vm793_vm4, %v4356_v8, 0.0  ;;  %v4375_v33 = vmul.f32 %v4356_v8, %v4356_v8  ;;  %v4348_v47 = vmax.f32 %v4340_v13, %v4344_v61  ;;  %v8259_v13 = vld [vmem:[%s13814_s8] ss:$0 sm:$0xff] }
 0x4a0   :  { %v4359_v58 = vsel %vm793_vm4, %v4355_v54, 0.0  ;;  %v4374_v59 = vmul.f32 %v4355_v54, %v4355_v54  ;;  %v4347_v18 = vmax.f32 %v4339_v10, %v4343_v24 }
 0x4a1   :  { %v4379_v26 = vsel %vm793_vm4, %v4375_v33, 0.0  ;;  %v4361_v51 = vadd.f32 %v4360_v63, %v4359_v58  ;;  %v4358_v29 = vadd.f32 %v8258_v55, %v4348_v47  ;;  %v4430_v33 = vld [vmem:[%s13816_s10 + $0x8] sm:$0xff]  ;;  %v4431_v58 = vld [vmem:[%s13816_s10 + $0x10] sm:$0xff] }
 0x4a2   :  { %v4378_v48 = vsel %vm793_vm4, %v4374_v59, 0.0  ;;  %v4357_v11 = vadd.f32 %v8258_v55, %v4347_v18  ;;  %v8286_v47 = vld [vmem:[%s13816_s10 + $0x48] sm:$0xff]  ;;  %v8287_v59 = vld [vmem:[%s13816_s10 + $0x50] sm:$0xff]  ;;  %v8273_v18 = vld [vmem:[%s13817_s11 + $0x20] sm:$0xff] }
 0x4a3   :  { %v4380_v39 = vadd.f32 %v4379_v26, %v4378_v48  ;;  %v4377_v56 = vmul.f32 %v4358_v29, %v4358_v29  ;;  %v4364_v1 = vsel %vm793_vm4, %v4358_v29, 0.0  ;;  %v8274_v26 = vld [vmem:[%s13817_s11 + $0x28] sm:$0xff]  ;;  %v8265_v48 = vld [vmem:[%s13816_s10 + $0x20] sm:$0xff] }
 0x4a4   :  { %v4362_v7 = vsel %vm793_vm4, %v4357_v11, 0.0  ;;  %v4376_v2 = vmul.f32 %v4357_v11, %v4357_v11 }
 0x4a5   :  { %v4363_v45 = vadd.f32 %v4362_v7, %v4361_v51  ;;  %v4383_v3 = vsel %vm793_vm4, %v4377_v56, 0.0  ;;  %v4432_v51 = vld [vmem:[%s13816_s10 + $0x18] sm:$0xff]  ;;  %v8266_v56 = vld [vmem:[%s13816_s10 + $0x28] sm:$0xff] }
 0x4a6   :  { %v4381_v21 = vsel %vm793_vm4, %v4376_v2, 0.0  ;;  %v8302_v7 = vld [vmem:[%s13816_s10 + $0x68] sm:$0xff]  ;;  %v8267_v2 = vld [vmem:[%s13816_s10 + $0x30] sm:$0xff] }
 0x4a7   :  { %v4365_v5 = vadd.f32 %v4364_v1, %v4363_v45  ;;  %v4382_v9 = vadd.f32 %v4381_v21, %v4380_v39  ;;  %v8301_v39 = vld [vmem:[%s13816_s10 + $0x60] sm:$0xff]  ;;  %v8303_v45 = vld [vmem:[%s13816_s10 + $0x70] sm:$0xff]  ;;  %v8268_v1 = vld [vmem:[%s13816_s10 + $0x38] sm:$0xff] }
 0x4a8   :  { %v8304_v21 = vld [vmem:[%s13816_s10 + $0x78] sm:$0xff] }
 0x4a9   :  { %v4366_v23 = vrot.slane %v4365_v5, 4  ;;  %v4384_v38 = vadd.f32 %v4383_v3, %v4382_v9  ;;  %v8318_v9 = vld [vmem:[%s13816_s10 + $0x88] sm:$0xff]  ;;  %v8319_v3 = vld [vmem:[%s13816_s10 + $0x90] sm:$0xff] }
 0x4ab   :  { %v4367_v37 = vadd.f32 %v4366_v23, %v4365_v5  ;;  %v4385_v44 = vrot.slane %v4384_v38, 4  ;;  %v8317_v5 = vld [vmem:[%s13816_s10 + $0x80] sm:$0xff]  ;;  %v8320_v23 = vld [vmem:[%s13816_s10 + $0x98] sm:$0xff] }
 0x4ad   :  { %v4368_v36 = vrot.slane %v4367_v37, 2  ;;  %v4386_v50 = vadd.f32 %v4385_v44, %v4384_v38  ;;  %v8333_v38 = vld [vmem:[%s13816_s10 + $0xa0] sm:$0xff]  ;;  %v8335_v44 = vld [vmem:[%s13816_s10 + $0xb0] sm:$0xff] }
 0x4af   :  { %v4369_v49 = vadd.f32 %v4368_v36, %v4367_v37  ;;  %v4387_v15 = vrot.slane %v4386_v50, 2  ;;  %v8334_v37 = vld [vmem:[%s13816_s10 + $0xa8] sm:$0xff]  ;;  %v8336_v36 = vld [vmem:[%s13816_s10 + $0xb8] sm:$0xff] }
 0x4b1   :  { %v4370_v57 = vrot.slane %v4369_v49, 1  ;;  %v4388_v46 = vadd.f32 %v4387_v15, %v4386_v50  ;;  %v8349_v50 = vld [vmem:[%s13816_s10 + $0xc0] sm:$0xff]  ;;  %v8351_v15 = vld [vmem:[%s13816_s10 + $0xd0] sm:$0xff] }
 0x4b3   :  { %v4371_v17 = vadd.f32 %v4370_v57, %v4369_v49  ;;  %v4389_v30 = vrot.slane %v4388_v46, 1  ;;  %v8350_v49 = vld [vmem:[%s13816_s10 + $0xc8] sm:$0xff]  ;;  %v8352_v57 = vld [vmem:[%s13816_s10 + $0xd8] sm:$0xff] }
 0x4b5   :  { %v4373_v35 = vmul.f32 0.03125, %v4371_v17  ;;  %v4390_v41 = vadd.f32 %v4389_v30, %v4388_v46  ;;  %v8365_v46 = vld [vmem:[%s13816_s10 + $0xe0] sm:$0xff]  ;;  %v8366_v17 = vld [vmem:[%s13816_s10 + $0xe8] sm:$0xff]  ;;  %v8367_v30 = vld [vmem:[%s13816_s10 + $0xf0] sm:$0xff] }
 0x4b7   :  { %v4391_v31 = vmul.f32 0.03125, %v4390_v41  ;;  %v4392_v53 = vmul.f32 %v4373_v35, %v4373_v35  ;;  %v4395_v34 = vsub.f32 %v4355_v54, %v4373_v35  ;;  %v4396_v43 = vsub.f32 %v4356_v8, %v4373_v35  ;;  %v8381_v41 = vld [vmem:[%s13816_s10 + $0x100] sm:$0xff] }
 0x4b8   :  { %v4397_v22 = vsub.f32 %v4357_v11, %v4373_v35  ;;  %v4398_v6 = vsub.f32 %v4358_v29, %v4373_v35  ;;  %v8288_v29 = vld [vmem:[%s13816_s10 + $0x58] sm:$0xff]  ;;  %v10890_v11 = vpack.c.bf16 %v8274_v26, %v8273_v18 }
 0x4b9   :  { %v4393_v42 = vsub.f32 %v4391_v31, %v4392_v53  ;;  %v8368_v35 = vld [vmem:[%s13816_s10 + $0xf8] sm:$0xff]  ;;  %v8382_v31 = vld [vmem:[%s13816_s10 + $0x108] sm:$0xff]  ;;  %v8383_v53 = vld [vmem:[%s13816_s10 + $0x110] sm:$0xff] }
 0x4bb   :  { %v4394_v14 = vmax.f32 %v4393_v42, 0.0  ;;  %v4530_v42 = vld [vmem:[%s13817_s11] sm:$0xff] }
 0x4bd   :  { %v4399_v12 = vadd.f32 1e-05, %v4394_v14  ;;  %v4531_v14 = vld [vmem:[%s13817_s11 + $0x8] sm:$0xff] }
 0x4bf   :  { %11265 = vrsqrt.f32 %v4399_v12  ;;  %v10898_v12 = vpack.c.bf16 %v4531_v14, %v4530_v42  ;;  %v8359_v14 = vld [vmem:[%s13817_s11 + $0xd0] sm:$0xff] }
 0x4c9   :  { %v11266_v62 = vpop.eup %11265 }
 0x4ca   :  { %v4401_v10 = vmul.f32 %v11266_v62, %v4395_v34  ;;  %v4402_v20 = vmul.f32 %v11266_v62, %v4396_v43  ;;  %v4403_v0 = vmul.f32 %v11266_v62, %v4397_v22  ;;  %v4404_v25 = vmul.f32 %v11266_v62, %v4398_v6  ;;  %v8384_v34 = vld [vmem:[%s13816_s10 + $0x118] sm:$0xff]  ;;  %v8275_v43 = vld [vmem:[%s13817_s11 + $0x30] sm:$0xff] }
 0x4cb   :  { %v8276_v22 = vld [vmem:[%s13817_s11 + $0x38] sm:$0xff] }
 0x4cc   :  { %v4411_v52 = vmul.f32 %v8259_v13, %v4401_v10  ;;  %v4412_v60 = vmul.f32 %v8259_v13, %v4402_v20  ;;  %v4413_v19 = vmul.f32 %v8259_v13, %v4403_v0  ;;  %v4414_v55 = vmul.f32 %v8259_v13, %v4404_v25 }
 0x4cd   :  { %v10894_v6 = vpack.c.bf16 %v8276_v22, %v8275_v43  ;;  %v8358_v43 = vld [vmem:[%s13817_s11 + $0xc8] sm:$0xff] }
 0x4ce   :  { %v4421_v4 = vadd.f32 %v8260_v32, %v4411_v52  ;;  %v4422_v16 = vadd.f32 %v8260_v32, %v4412_v60  ;;  %v4423_v28 = vadd.f32 %v8260_v32, %v4413_v19  ;;  %v4424_v27 = vadd.f32 %v8260_v32, %v4414_v55  ;;  %v4532_v60 = vld [vmem:[%s13817_s11 + $0x10] sm:$0xff]  ;;  %v4533_v19 = vld [vmem:[%s13817_s11 + $0x18] sm:$0xff] }
 0x4d0   :  { %v4425_v8 = vmax.f32 %v4421_v4, 0.0  ;;  %v4426_v61 = vmax.f32 %v4422_v16, 0.0  ;;  %v4427_v40 = vmax.f32 %v4423_v28, 0.0  ;;  %v4428_v54 = vmax.f32 %v4424_v27, 0.0 }
 0x4d1   :  { %v10902_v28 = vpack.c.bf16 %v4533_v19, %v4532_v60  ;;  %v8375_v60 = vld [vmem:[%s13817_s11 + $0xf0] sm:$0xff]  ;;  %v8376_v19 = vld [vmem:[%s13817_s11 + $0xf8] sm:$0xff] }
 0x4d2   :  { %v13215_v24 = vpack.c.bf16 %v4426_v61, %v4425_v8  ;;  %v13217_v63 = vpack.c.bf16 %v4428_v54, %v4427_v40  ;;  %v8293_v8 = vld [vmem:[%s13817_s11 + $0x40] sm:$0xff]  ;;  %v8294_v61 = vld [vmem:[%s13817_s11 + $0x48] sm:$0xff] }
 0x4d4   :  { %10875 = vmatprep.subr.bf16.mxu0 %v13215_v24  ;;  %10907 = vmatprep.subr.bf16.mxu1 %v13215_v24 }
 0x4d5   :  { %10877 = vmatpush3.bf16.msra.mxu0 %v13215_v24  ;;  %10909 = vmatpush3.bf16.msra.mxu1 %v13215_v24 }
 0x4d6   :  { %10879 = vmatprep.subr.bf16.mxu0 %v13217_v63  ;;  %10911 = vmatprep.subr.bf16.mxu1 %v13217_v63 }
 0x4d9   :  { %10881 = vmatpush3.bf16.msra.mxu0 %v13217_v63  ;;  %10913 = vmatpush3.bf16.msra.mxu1 %v13217_v63 }
 0x4da   :  { %10883 = vmatprep.subr.bf16.mxu0 %v13215_v24  ;;  %10923 = vmatprep.subr.bf16.mxu1 %v13215_v24 }
 0x4dc   :  { %10110 = vmatmul.mubr.msk.f32.vlgmr.msra.gmra.mrb[184].mxu0 %vm793_vm4, %v4430_v33  ;;  %10166 = vmatmul.mubr.msk.f32.vlgmr.msra.gmra.mrb[48].mxu1 %vm793_vm4, %v8286_v47  ;;  %v8295_v47 = vld [vmem:[%s13817_s11 + $0x50] sm:$0xff] }
 0x4dd   :  { %10885 = vmatpush3.bf16.msra.mxu0 %v13215_v24  ;;  %10925 = vmatpush3.bf16.msra.mxu1 %v13215_v24 }
 0x4de   :  { %10887 = vmatprep.subr.bf16.mxu0 %v13217_v63  ;;  %10927 = vmatprep.subr.bf16.mxu1 %v13217_v63 }
 0x4df   :  { %10112 = vmatprep.mubr.msk.f32.mxu0 %vm793_vm4, %v4431_v58  ;;  %10168 = vmatprep.mubr.msk.f32.mxu1 %vm793_vm4, %v8287_v59  ;;  %v8296_v58 = vld [vmem:[%s13817_s11 + $0x58] sm:$0xff] }
 0x4e0   :  { %10113 = vmatmul.mubr.msk.f32.gmra.mrb[186].mxu0 %vm793_vm4, %v4432_v51  ;;  %10169 = vmatmul.mubr.msk.f32.gmra.mrb[50].mxu1 %vm793_vm4, %v8288_v29  ;;  %v10918_v18 = vpack.c.bf16 %v8296_v58, %v8295_v47  ;;  %v8309_v51 = vld [vmem:[%s13817_s11 + $0x60] sm:$0xff]  ;;  %v8310_v29 = vld [vmem:[%s13817_s11 + $0x68] sm:$0xff] }
 0x4e1   :  { %10889 = vmatpush3.bf16.msra.mxu0 %v13217_v63  ;;  %10929 = vmatpush3.bf16.msra.mxu1 %v13217_v63 }
 0x4e2   :  { %10939 = vmatprep.subr.bf16.mxu1 %v13215_v24  ;;  %10123 = vmatprep.mubr.msk.f32.mxu0 %vm793_vm4, %v8265_v48 }
 0x4e3   :  { %10193 = vmatprep.mubr.msk.f32.mxu1 %vm793_vm4, %v8301_v39  ;;  %10891 = vmatprep.subr.bf16.mxu0 %v10890_v11 }
 0x4e4   :  { %10124 = vmatmul.mubr.msk.f32.vlgmr.msra.gmra.mrb[188].mxu0 %vm793_vm4, %v8266_v56  ;;  %10194 = vmatmul.mubr.msk.f32.vlgmr.msra.gmra.mrb[52].mxu1 %vm793_vm4, %v8302_v7  ;;  %v8311_v56 = vld [vmem:[%s13817_s11 + $0x70] sm:$0xff]  ;;  %v8312_v7 = vld [vmem:[%s13817_s11 + $0x78] sm:$0xff] }
 0x4e5   :  { %10941 = vmatpush3.bf16.msra.mxu1 %v13215_v24  ;;  %10126 = vmatprep.mubr.msk.f32.mxu0 %vm793_vm4, %v8267_v2 }
 0x4e6   :  { %10943 = vmatprep.subr.bf16.mxu1 %v13217_v63  ;;  %10196 = vmatprep.mubr.msk.f32.mxu1 %vm793_vm4, %v8303_v45  ;;  %v10934_v45 = vpack.c.bf16 %v8312_v7, %v8311_v56 }
 0x4e7   :  { %10893 = vmatpush3.bf16.msra.mxu0 %v10890_v11  ;;  %v10930_v11 = vpack.c.bf16 %v8310_v29, %v8309_v51 }
 0x4e8   :  { %10127 = vmatmul.mubr.msk.f32.gmra.mrb[190].mxu0 %vm793_vm4, %v8268_v1  ;;  %10197 = vmatmul.mubr.msk.f32.gmra.mrb[54].mxu1 %vm793_vm4, %v8304_v21  ;;  %v8325_v21 = vld [vmem:[%s13817_s11 + $0x80] sm:$0xff] }
 0x4e9   :  { %10945 = vmatpush3.bf16.msra.mxu1 %v13217_v63  ;;  %10221 = vmatprep.mubr.msk.f32.mxu1 %vm793_vm4, %v8317_v5  ;;  %v8326_v5 = vld [vmem:[%s13817_s11 + $0x88] sm:$0xff] }
 0x4ea   :  { %10955 = vmatprep.subr.bf16.mxu1 %v13215_v24  ;;  %10895 = vmatprep.subr.bf16.mxu0 %v10894_v6 }
 0x4eb   :  { %10897 = vmatpush3.bf16.msra.mxu0 %v10894_v6 }
 0x4ec   :  { %10222 = vmatmul.mubr.msk.f32.vlgmr.msra.gmra.mrb[56].mxu1 %vm793_vm4, %v8318_v9  ;;  %10899 = vmatprep.subr.bf16.mxu0 %v10898_v12 }
 0x4ed   :  { %10957 = vmatpush3.bf16.msra.mxu1 %v13215_v24  ;;  %10224 = vmatprep.mubr.msk.f32.mxu1 %vm793_vm4, %v8319_v3  ;;  %v10946_v3 = vpack.c.bf16 %v8326_v5, %v8325_v21 }
 0x4ee   :  { %10959 = vmatprep.subr.bf16.mxu1 %v13217_v63 }
 0x4f0   :  { %10225 = vmatmul.mubr.msk.f32.gmra.mrb[58].mxu1 %vm793_vm4, %v8320_v23 }
 0x4f1   :  { %10961 = vmatpush3.bf16.msra.mxu1 %v13217_v63  ;;  %10249 = vmatprep.mubr.msk.f32.mxu1 %vm793_vm4, %v8333_v38  ;;  %v8327_v38 = vld [vmem:[%s13817_s11 + $0x90] sm:$0xff] }
 0x4f2   :  { %10971 = vmatprep.subr.bf16.mxu1 %v13215_v24 }
 0x4f4   :  { %10250 = vmatmul.mubr.msk.f32.vlgmr.msra.gmra.mrb[60].mxu1 %vm793_vm4, %v8334_v37  ;;  %v8328_v37 = vld [vmem:[%s13817_s11 + $0x98] sm:$0xff] }
 0x4f5   :  { %10973 = vmatpush3.bf16.msra.mxu1 %v13215_v24  ;;  %10252 = vmatprep.mubr.msk.f32.mxu1 %vm793_vm4, %v8335_v44 }
 0x4f6   :  { %10975 = vmatprep.subr.bf16.mxu1 %v13217_v63 }
 0x4f8   :  { %10253 = vmatmul.mubr.msk.f32.gmra.mrb[62].mxu1 %vm793_vm4, %v8336_v36  ;;  %v10950_v36 = vpack.c.bf16 %v8328_v37, %v8327_v38 }
 0x4f9   :  { %10977 = vmatpush3.bf16.msra.mxu1 %v13217_v63  ;;  %10277 = vmatprep.mubr.msk.f32.mxu1 %vm793_vm4, %v8349_v50 }
 0x4fa   :  { %10987 = vmatprep.subr.bf16.mxu1 %v13215_v24 }
 0x4fc   :  { %10278 = vmatmul.mubr.msk.f32.vlgmr.msra.gmra.mrb[64].mxu1 %vm793_vm4, %v8350_v49  ;;  %v8341_v49 = vld [vmem:[%s13817_s11 + $0xa0] sm:$0xff] }
 0x4fd   :  { %10989 = vmatpush3.bf16.msra.mxu1 %v13215_v24  ;;  %10280 = vmatprep.mubr.msk.f32.mxu1 %vm793_vm4, %v8351_v15  ;;  %v8342_v15 = vld [vmem:[%s13817_s11 + $0xa8] sm:$0xff] }
 0x4fe   :  { %10991 = vmatprep.subr.bf16.mxu1 %v13217_v63 }
 0x500   :  { %10281 = vmatmul.mubr.msk.f32.gmra.mrb[66].mxu1 %vm793_vm4, %v8352_v57 }
 0x501   :  { %10993 = vmatpush3.bf16.msra.mxu1 %v13217_v63  ;;  %10305 = vmatprep.mubr.msk.f32.mxu1 %vm793_vm4, %v8365_v46  ;;  %v10962_v46 = vpack.c.bf16 %v8342_v15, %v8341_v49 }
 0x502   :  { %11003 = vmatprep.subr.bf16.mxu1 %v13215_v24 }
 0x504   :  { %10306 = vmatmul.mubr.msk.f32.vlgmr.msra.gmra.mrb[68].mxu1 %vm793_vm4, %v8366_v17 }
 0x505   :  { %11005 = vmatpush3.bf16.msra.mxu1 %v13215_v24  ;;  %10308 = vmatprep.mubr.msk.f32.mxu1 %vm793_vm4, %v8367_v30  ;;  %v8343_v30 = vld [vmem:[%s13817_s11 + $0xb0] sm:$0xff] }
 0x506   :  { %11007 = vmatprep.subr.bf16.mxu1 %v13217_v63 }
 0x508   :  { %10309 = vmatmul.mubr.msk.f32.gmra.mrb[70].mxu1 %vm793_vm4, %v8368_v35  ;;  %v8344_v35 = vld [vmem:[%s13817_s11 + $0xb8] sm:$0xff] }
 0x509   :  { %11009 = vmatpush3.bf16.msra.mxu1 %v13217_v63  ;;  %10333 = vmatprep.mubr.msk.f32.mxu1 %vm793_vm4, %v8381_v41  ;;  %v10914_v63 = vpack.c.bf16 %v8294_v61, %v8293_v8  ;;  %v8392_v8 = vld [vmem:[%s13817_s11 + $0x118] sm:$0xff] }
 0x50c   :  { %10334 = vmatmul.mubr.msk.f32.vlgmr.msra.gmra.mrb[72].mxu1 %vm793_vm4, %v8382_v31  ;;  %v10966_v31 = vpack.c.bf16 %v8344_v35, %v8343_v30  ;;  %v8399_v30 = vld [vmem:[%s13820_s14] ss:$0 sm:$0xff] }
 0x50d   :  { %10336 = vmatprep.mubr.msk.f32.mxu1 %vm793_vm4, %v8383_v53 }
 0x510   :  { %10337 = vmatmul.mubr.msk.f32.gmra.mrb[74].mxu1 %vm793_vm4, %v8384_v34  ;;  %v8357_v34 = vld [vmem:[%s13817_s11 + $0xc0] sm:$0xff] }
 0x511   :  { %v10978_v6 = vpack.c.bf16 %v8358_v43, %v8357_v34  ;;  %v8403_v34 = vld [vmem:[%s13822_s16 + $0x20] sm:$0xff]  ;;  %v8404_v43 = vld [vmem:[%s13822_s16 + $0x28] sm:$0xff] }
 0x5af   :  { %v10111_v62 = vpop.f32.mrb[184].mxu0  ;;  %v10167_v13 = vpop.f32.mrb[48].mxu1 }
 0x5b0   :  { %v4511_v10 = vpop.f32.mrb[185].mxu0  ;;  %v4918_v20 = vpop.f32.mrb[49].mxu1 }
 0x5b3   :  { %v10114_v0 = vpop.f32.mrb[186].mxu0  ;;  %v10170_v25 = vpop.f32.mrb[50].mxu1 }
 0x5b4   :  { %v4521_v32 = vpop.f32.mrb[187].mxu0  ;;  %v4928_v52 = vpop.f32.mrb[51].mxu1 }
 0x5b7   :  { %v10125_v55 = vpop.f32.mrb[188].mxu0  ;;  %v13415_v4 = vpop.f32.mrb[52].mxu1 }
 0x5b8   :  { %v4617_v16 = vpop.f32.mrb[189].mxu0  ;;  %v5126_v27 = vpop.f32.mrb[53].mxu1 }
 0x5b9   :  { %10137 = vmatprep.mubr.msk.f32.mxu0 %vm793_vm4, %v4617_v16  ;;  %v8390_v16 = vld [vmem:[%s13817_s11 + $0x108] sm:$0xff] }
 0x5ba   :  { %10138 = vmatmul.mubr.msk.f32.vlgmr.msra.gmra.mrb[192].mxu0 %vm793_vm4, %v10125_v55  ;;  %v10998_v55 = vpack.c.bf16 %v8376_v19, %v8375_v60  ;;  %v6419_v60 = vld [vmem:[%s13822_s16] sm:$0xff]  ;;  %v6420_v19 = vld [vmem:[%s13822_s16 + $0x8] sm:$0xff] }
 0x5bb   :  { %v10128_v40 = vpop.f32.mrb[190].mxu0  ;;  %10901 = vmatpush3.bf16.msra.mxu0 %v10898_v12  ;;  %v10198_v54 = vpop.f32.mrb[54].mxu1  ;;  %v8360_v12 = vld [vmem:[%s13817_s11 + $0xd8] sm:$0xff] }
 0x5bc   :  { %v4627_v24 = vpop.f32.mrb[191].mxu0  ;;  %10903 = vmatprep.subr.bf16.mxu0 %v10902_v28  ;;  %v5136_v33 = vpop.f32.mrb[55].mxu1 }
 0x5bd   :  { %10140 = vmatprep.mubr.msk.f32.mxu0 %vm793_vm4, %v4627_v24 }
 0x5be   :  { %10141 = vmatmul.mubr.msk.f32.gmra.mrb[194].mxu0 %vm793_vm4, %v10128_v40  ;;  %v11296_v40 = vmov 0.0  }
 0x5bf   :  { %10905 = vmatpush3.bf16.msra.mxu0 %v10902_v28  ;;  %10151 = vmatprep.mubr.msk.f32.mxu0 %vm793_vm4, %v4511_v10  ;;  %v10223_v59 = vpop.f32.mrb[56].mxu1 }
 0x5c0   :  { %10915 = vmatprep.subr.bf16.mxu0 %v10914_v63  ;;  %v5334_v26 = vpop.f32.mrb[57].mxu1  ;;  %10353 = vmatprep.subr.mxu1 %v11296_v40 }
 0x5c1   :  { %10355 = vmatprep.mubr.msk.f32.mxu1 %vm11297_vm5, %v11296_v40 }
 0x5c2   :  { %10152 = vmatmul.mubr.msk.f32.vlgmr.msra.gmra.mrb[192].mxu0 %vm793_vm4, %v10111_v62 }
 0x5c3   :  { %10154 = vmatprep.mubr.msk.f32.mxu0 %vm793_vm4, %v4521_v32  ;;  %10917 = vmatpush3.bf16.msra.mxu0 %v10914_v63  ;;  %v10226_v48 = vpop.f32.mrb[58].mxu1 }
 0x5c4   :  { %10919 = vmatprep.subr.bf16.mxu0 %v10918_v18  ;;  %v5344_v39 = vpop.f32.mrb[59].mxu1 }
 0x5c6   :  { %10155 = vmatmul.mubr.msk.f32.gmra.mrb[194].mxu0 %vm793_vm4, %v10114_v0  ;;  %v8374_v0 = vld [vmem:[%s13817_s11 + $0xe8] sm:$0xff] }
 0x5c7   :  { %10921 = vmatpush3.bf16.msra.mxu0 %v10918_v18  ;;  %10179 = vmatprep.mubr.msk.f32.mxu0 %vm793_vm4, %v4918_v20  ;;  %v10251_v2 = vpop.f32.mrb[60].mxu1  ;;  %v8373_v20 = vld [vmem:[%s13817_s11 + $0xe0] sm:$0xff] }
 0x5c8   :  { %10931 = vmatprep.subr.bf16.mxu0 %v10930_v11  ;;  %v5542_v1 = vpop.f32.mrb[61].mxu1  ;;  %v10994_v32 = vpack.c.bf16 %v8374_v0, %v8373_v20  ;;  %v8423_v20 = vld [vmem:[%s13821_s15 + $0x20] sm:$0xff]  ;;  %v8430_v0 = vld [vmem:[%s13821_s15 + $0x28] sm:$0xff] }
 0x5ca   :  { %10180 = vmatmul.mubr.msk.f32.vlgmr.msra.gmra.mrb[192].mxu0 %vm793_vm4, %v10167_v13  ;;  %v10982_v13 = vpack.c.bf16 %v8360_v12, %v8359_v14  ;;  %v8405_v14 = vld [vmem:[%s13822_s16 + $0x30] sm:$0xff]  ;;  %v8406_v12 = vld [vmem:[%s13822_s16 + $0x38] sm:$0xff] }
 0x5cb   :  { %10933 = vmatpush3.bf16.msra.mxu0 %v10930_v11  ;;  %10182 = vmatprep.mubr.msk.f32.mxu0 %vm793_vm4, %v4928_v52  ;;  %v10254_v9 = vpop.f32.mrb[62].mxu1 }
 0x5cc   :  { %10935 = vmatprep.subr.bf16.mxu0 %v10934_v45  ;;  %v5552_v23 = vpop.f32.mrb[63].mxu1 }
 0x5ce   :  { %10183 = vmatmul.mubr.msk.f32.gmra.mrb[194].mxu0 %vm793_vm4, %v10170_v25 }
 0x5cf   :  { %10937 = vmatpush3.bf16.msra.mxu0 %v10934_v45  ;;  %10207 = vmatprep.mubr.msk.f32.mxu0 %vm793_vm4, %v5126_v27  ;;  %v10279_v44 = vpop.f32.mrb[64].mxu1  ;;  %v8391_v27 = vld [vmem:[%s13817_s11 + $0x110] sm:$0xff] }
 0x5d0   :  { %10947 = vmatprep.subr.bf16.mxu0 %v10946_v3  ;;  %v5750_v50 = vpop.f32.mrb[65].mxu1  ;;  %v11014_v61 = vpack.c.bf16 %v8392_v8, %v8391_v27 }
 0x5d2   :  { %10208 = vmatmul.mubr.msk.f32.vlgmr.msra.gmra.mrb[192].mxu0 %vm793_vm4, %v13415_v4  ;;  %v8389_v4 = vld [vmem:[%s13817_s11 + $0x100] sm:$0xff] }
 0x5d3   :  { %10949 = vmatpush3.bf16.msra.mxu0 %v10946_v3  ;;  %10210 = vmatprep.mubr.msk.f32.mxu0 %vm793_vm4, %v5136_v33  ;;  %v10282_v57 = vpop.f32.mrb[66].mxu1  ;;  %v11010_v28 = vpack.c.bf16 %v8390_v16, %v8389_v4  ;;  %v6421_v4 = vld [vmem:[%s13822_s16 + $0x10] sm:$0xff]  ;;  %v6422_v16 = vld [vmem:[%s13822_s16 + $0x18] sm:$0xff] }
 0x5d4   :  { %10951 = vmatprep.subr.bf16.mxu0 %v10950_v36  ;;  %v5760_v17 = vpop.f32.mrb[67].mxu1  ;;  %v11028_v8 = vpack.c.bf16 %v6422_v16, %v6421_v4  ;;  %v7786_v16 = vld [vmem:[%s13826_s20] sm:$0xff] }
 0x5d6   :  { %10211 = vmatmul.mubr.msk.f32.gmra.mrb[194].mxu0 %vm793_vm4, %v10198_v54 }
 0x5d7   :  { %10953 = vmatpush3.bf16.msra.mxu0 %v10950_v36  ;;  %10235 = vmatprep.mubr.msk.f32.mxu0 %vm793_vm4, %v5334_v26  ;;  %v10307_v41 = vpop.f32.mrb[68].mxu1 }
 0x5d8   :  { %10963 = vmatprep.subr.bf16.mxu0 %v10962_v46  ;;  %v5958_v53 = vpop.f32.mrb[69].mxu1 }
 0x5da   :  { %10236 = vmatmul.mubr.msk.f32.vlgmr.msra.gmra.mrb[192].mxu0 %vm793_vm4, %v10223_v59  ;;  %v8397_v59 = vld [vmem:[%s13818_s12] ss:$0 sm:$0xff] }
 0x5db   :  { %10965 = vmatpush3.bf16.msra.mxu0 %v10962_v46  ;;  %10238 = vmatprep.mubr.msk.f32.mxu0 %vm793_vm4, %v5344_v39  ;;  %v10310_v22 = vpop.f32.mrb[70].mxu1  ;;  %v8398_v46 = vld [vmem:[%s13819_s13] ss:$0 sm:$0xff] }
 0x5dc   :  { %10967 = vmatprep.subr.bf16.mxu0 %v10966_v31  ;;  %v5968_v42 = vpop.f32.mrb[71].mxu1 }
 0x5de   :  { %10239 = vmatmul.mubr.msk.f32.gmra.mrb[194].mxu0 %vm793_vm4, %v10226_v48 }
 0x5df   :  { %10969 = vmatpush3.bf16.msra.mxu0 %v10966_v31  ;;  %10263 = vmatprep.mubr.msk.f32.mxu0 %vm793_vm4, %v5542_v1  ;;  %v10335_v62 = vpop.f32.mrb[72].mxu1 }
 0x5e0   :  { %10979 = vmatprep.subr.bf16.mxu0 %v10978_v6  ;;  %v6166_v10 = vpop.f32.mrb[73].mxu1 }
 0x5e2   :  { %10264 = vmatmul.mubr.msk.f32.vlgmr.msra.gmra.mrb[192].mxu0 %vm793_vm4, %v10251_v2 }
 0x5e3   :  { %10981 = vmatpush3.bf16.msra.mxu0 %v10978_v6  ;;  %10266 = vmatprep.mubr.msk.f32.mxu0 %vm793_vm4, %v5552_v23  ;;  %v10338_v25 = vpop.f32.mrb[74].mxu1  ;;  %v11019_v6 = vpack.c.bf16 %v8404_v43, %v8403_v34  ;;  %v8439_v34 = vld [vmem:[%s13822_s16 + $0xc0] sm:$0xff]  ;;  %v8440_v43 = vld [vmem:[%s13822_s16 + $0xc8] sm:$0xff] }
 0x5e4   :  { %10983 = vmatprep.subr.bf16.mxu0 %v10982_v13  ;;  %v6176_v52 = vpop.f32.mrb[75].mxu1 }
 0x5e6   :  { %10267 = vmatmul.mubr.msk.f32.gmra.mrb[194].mxu0 %vm793_vm4, %v10254_v9 }
 0x5e7   :  { %10985 = vmatpush3.bf16.msra.mxu0 %v10982_v13  ;;  %10291 = vmatprep.mubr.msk.f32.mxu0 %vm793_vm4, %v5750_v50  ;;  %v11022_v13 = vpack.c.bf16 %v8406_v12, %v8405_v14  ;;  %v8446_v12 = vld [vmem:[%s13822_s16 + $0xe0] sm:$0xff] }
 0x5e8   :  { %10995 = vmatprep.subr.bf16.mxu0 %v10994_v32 }
 0x5ea   :  { %10292 = vmatmul.mubr.msk.f32.vlgmr.msra.gmra.mrb[192].mxu0 %vm793_vm4, %v10279_v44 }
 0x5eb   :  { %10997 = vmatpush3.bf16.msra.mxu0 %v10994_v32  ;;  %10294 = vmatprep.mubr.msk.f32.mxu0 %vm793_vm4, %v5760_v17  ;;  %v8444_v32 = vld [vmem:[%s13821_s15 + $0x38] sm:$0xff] }
 0x5ec   :  { %10999 = vmatprep.subr.bf16.mxu0 %v10998_v55 }
 0x5ee   :  { %10295 = vmatmul.mubr.msk.f32.gmra.mrb[194].mxu0 %vm793_vm4, %v10282_v57 }
 0x5ef   :  { %11001 = vmatpush3.bf16.msra.mxu0 %v10998_v55  ;;  %10319 = vmatprep.mubr.msk.f32.mxu0 %vm793_vm4, %v5958_v53  ;;  %v8401_v53 = vld [vmem:[%s13821_s15 + $0x8] sm:$0xff]  ;;  %v11025_v55 = vpack.c.bf16 %v6420_v19, %v6419_v60  ;;  %v8455_v19 = vld [vmem:[%s13822_s16 + $0x110] sm:$0xff] }
 0x5f0   :  { %11011 = vmatprep.subr.bf16.mxu0 %v11010_v28 }
 0x5f2   :  { %10320 = vmatmul.mubr.msk.f32.vlgmr.msra.gmra.mrb[192].mxu0 %vm793_vm4, %v10307_v41 }
 0x5f3   :  { %11013 = vmatpush3.bf16.msra.mxu0 %v11010_v28  ;;  %10322 = vmatprep.mubr.msk.f32.mxu0 %vm793_vm4, %v5968_v42  ;;  %v8409_v42 = vld [vmem:[%s13821_s15 + $0x10] sm:$0xff] }
 0x5f4   :  { %11015 = vmatprep.subr.bf16.mxu0 %v11014_v61 }
 0x5f6   :  { %10323 = vmatmul.mubr.msk.f32.gmra.mrb[194].mxu0 %vm793_vm4, %v10310_v22  ;;  %v6344_v22 = vld [vmem:[%s13821_s15] sm:$0xff] }
 0x5f7   :  { %11017 = vmatpush3.bf16.msra.mxu0 %v11014_v61  ;;  %10347 = vmatprep.mubr.msk.f32.mxu0 %vm793_vm4, %v6166_v10  ;;  %v8416_v10 = vld [vmem:[%s13821_s15 + $0x18] sm:$0xff] }
 0x5f8   :  { %10358 = vmatprep.subr.mxu0 %v11296_v40 }
 0x5fa   :  { %10348 = vmatmul.mubr.msk.f32.vlgmr.msra.gmra.mrb[192].mxu0 %vm793_vm4, %v10335_v62  ;;  %v11298_v62 = vmov 0.0|0.0  }
 0x5fb   :  { %10350 = vmatprep.mubr.msk.f32.mxu0 %vm793_vm4, %v6176_v52  ;;  %v8451_v52 = vld [vmem:[%s13821_s15 + $0x40] sm:$0xff] }
 0x5fe   :  { %10351 = vmatmul.mubr.msk.f32.gmra.mrb[194].mxu0 %vm793_vm4, %v10338_v25  ;;  %v8437_v25 = vld [vmem:[%s13821_s15 + $0x30] sm:$0xff]  ;;  %s7878_s15 = sshll.u32 %s11299_s30, 4  ;;  %s7879_s15 = int_to_ptr.vmem [resolvable:$true] %s7878_s15 }
 0x5ff   :  { %10360 = vmatprep.mubr.msk.f32.mxu0 %vm11297_vm5, %v11296_v40  ;;  %p11276_p1 = scmp.lt.s32.totalorder %s7879_s15, %s7879_s15 }
 0x6cd   :  { %v10349_v54 = vpop.f32.mrb[192].mxu0 }
 0x6ce   :  { %v6268_v24 = vpop.f32.mrb[193].mxu0 }
 0x6cf   :  { %v6294_v63 = vmax.f32 %v6268_v24, %v10349_v54  ;;  %v8411_v54 = vld [vmem:[%s13822_s16 + $0x40] sm:$0xff]  ;;  %v8412_v24 = vld [vmem:[%s13822_s16 + $0x48] sm:$0xff] }
 0x6d1   :  { %v10352_v33 = vpop.f32.mrb[194].mxu0 }
 0x6d2   :  { %v6278_v47 = vpop.f32.mrb[195].mxu0 }
 0x6d3   :  { %v6295_v58 = vmax.f32 %v6278_v47, %v10352_v33 }
 0x6d5   :  { %v6296_v18 = vmax.f32 %v6294_v63, %v6295_v58  ;;  %v11031_v58 = vpack.c.bf16 %v8412_v24, %v8411_v54 }
 0x6d7   :  { %v6303_v26 = vadd.f32 %v8397_v59, %v6296_v18  ;;  %v8413_v59 = vld [vmem:[%s13822_s16 + $0x50] sm:$0xff]  ;;  %v8414_v18 = vld [vmem:[%s13822_s16 + $0x58] sm:$0xff] }
 0x6d9   :  { %v6304_v51 = vsel %vm793_vm4, %v6303_v26, 0.0  ;;  %v6313_v29 = vmul.f32 %v6303_v26, %v6303_v26 }
 0x6da   :  { %v6305_v48 = vrot.slane %v6304_v51, 4 }
 0x6db   :  { %v6314_v11 = vsel %vm793_vm4, %v6313_v29, 0.0  ;;  %v11034_v29 = vpack.c.bf16 %v8414_v18, %v8413_v59 }
 0x6dc   :  { %v6306_v39 = vadd.f32 %v6305_v48, %v6304_v51  ;;  %v6315_v56 = vrot.slane %v6314_v11, 4  ;;  %v8418_v48 = vld [vmem:[%s13822_s16 + $0x60] sm:$0xff] }
 0x6de   :  { %v6307_v7 = vrot.slane %v6306_v39, 2  ;;  %v6316_v2 = vadd.f32 %v6315_v56, %v6314_v11  ;;  %v8419_v11 = vld [vmem:[%s13822_s16 + $0x68] sm:$0xff] }
 0x6e0   :  { %v6308_v45 = vadd.f32 %v6307_v7, %v6306_v39  ;;  %v6317_v1 = vrot.slane %v6316_v2, 2  ;;  %v11037_v7 = vpack.c.bf16 %v8419_v11, %v8418_v48 }
 0x6e2   :  { %v6309_v21 = vrot.slane %v6308_v45, 1  ;;  %v6318_v5 = vadd.f32 %v6317_v1, %v6316_v2  ;;  %v8420_v2 = vld [vmem:[%s13822_s16 + $0x70] sm:$0xff] }
 0x6e4   :  { %v6310_v9 = vadd.f32 %v6309_v21, %v6308_v45  ;;  %v6319_v3 = vrot.slane %v6318_v5, 1  ;;  %v8421_v45 = vld [vmem:[%s13822_s16 + $0x78] sm:$0xff] }
 0x6e6   :  { %v6312_v23 = vmul.f32 0.125, %v6310_v9  ;;  %v6320_v38 = vadd.f32 %v6319_v3, %v6318_v5  ;;  %v11040_v5 = vpack.c.bf16 %v8421_v45, %v8420_v2  ;;  %v8425_v9 = vld [vmem:[%s13822_s16 + $0x80] sm:$0xff]  ;;  %v8426_v3 = vld [vmem:[%s13822_s16 + $0x88] sm:$0xff] }
 0x6e8   :  { %v6321_v37 = vmul.f32 0.125, %v6320_v38  ;;  %v6322_v44 = vmul.f32 %v6312_v23, %v6312_v23  ;;  %v6325_v15 = vsub.f32 %v6303_v26, %v6312_v23 }
 0x6ea   :  { %v6323_v36 = vsub.f32 %v6321_v37, %v6322_v44  ;;  %v11043_v37 = vpack.c.bf16 %v8426_v3, %v8425_v9  ;;  %v8427_v44 = vld [vmem:[%s13822_s16 + $0x90] sm:$0xff] }
 0x6ec   :  { %v6324_v50 = vmax.f32 %v6323_v36, 0.0  ;;  %v8428_v36 = vld [vmem:[%s13822_s16 + $0x98] sm:$0xff] }
 0x6ee   :  { %v6326_v49 = vadd.f32 1e-05, %v6324_v50 }
 0x6f0   :  { %11267 = vrsqrt.f32 %v6326_v49 }
 0x6fa   :  { %v11268_v57 = vpop.eup %11267 }
 0x6fb   :  { %v6328_v17 = vmul.f32 %v11268_v57, %v6325_v15  ;;  %v11046_v15 = vpack.c.bf16 %v8428_v36, %v8427_v44  ;;  %v8432_v57 = vld [vmem:[%s13822_s16 + $0xa0] sm:$0xff] }
 0x6fd   :  { %v6335_v35 = vmul.f32 %v8398_v46, %v6328_v17  ;;  %v8433_v46 = vld [vmem:[%s13822_s16 + $0xa8] sm:$0xff] }
 0x6ff   :  { %v6342_v41 = vadd.f32 %v8399_v30, %v6335_v35  ;;  %v11049_v35 = vpack.c.bf16 %v8433_v46, %v8432_v57  ;;  %v8460_v46 = vld [vmem:[%s13825_s19] ss:$0 sm:$0xff] }
 0x701   :  { %v6343_v31 = vmax.f32 %v6342_v41, 0.0  ;;  %v8434_v41 = vld [vmem:[%s13822_s16 + $0xb0] sm:$0xff] }
 0x703   :  { %10354 = vmatpush3.msra.mxu1 %v6343_v31  ;;  %10359 = vmatpush3.msra.mxu0 %v6343_v31 }
 0x704   :  { %10361 = vmatmul.mubr.msk.f32.vlgmr.msra.gmra.mrb[196].mxu0 %vm6345_vm6, %v8401_v53  ;;  %10385 = vmatprep.subr.mxu0 %v11296_v40 }
 0x705   :  { %10386 = vmatpush3.msra.mxu0 %v6343_v31  ;;  %10387 = vmatprep.mubr.msk.f32.mxu0 %vm11297_vm5, %v11296_v40 }
 0x706   :  { %10401 = vmatprep.subr.mxu0 %v11296_v40  ;;  %10356 = vmatmul.mubr.msk.f32.vlgmr.msra.gmra.mrb[76].mxu1 %vm6345_vm6, %v6344_v22  ;;  %v11055_v22 = vpack.c.bf16 %v8440_v43, %v8439_v34 }
 0x707   :  { %11018 = vmatprep.subr.bf16.mxu1 %v11298_v62  ;;  %10371 = vmatprep.mubr.msk.f32.mxu1 %vm11297_vm5, %v11296_v40 }
 0x708   :  { %10388 = vmatmul.mubr.msk.f32.vlgmr.msra.gmra.mrb[198].mxu0 %vm6345_vm6, %v8409_v42  ;;  %11020 = vmatpush3.bf16.msra.mxu1 %v11019_v6  ;;  %v8441_v6 = vld [vmem:[%s13822_s16 + $0xd0] sm:$0xff]  ;;  %v8442_v42 = vld [vmem:[%s13822_s16 + $0xd8] sm:$0xff] }
 0x709   :  { %10402 = vmatpush3.msra.mxu0 %v6343_v31  ;;  %10403 = vmatprep.mubr.msk.f32.mxu0 %vm11297_vm5, %v11296_v40  ;;  %v11058_v14 = vpack.c.bf16 %v8442_v42, %v8441_v6 }
 0x70a   :  { %10417 = vmatprep.subr.mxu0 %v11296_v40  ;;  %11021 = vmatprep.subr.bf16.mxu1 %v11298_v62 }
 0x70c   :  { %10404 = vmatmul.mubr.msk.f32.vlgmr.msra.gmra.mrb[200].mxu0 %vm6345_vm6, %v8416_v10  ;;  %11023 = vmatpush3.bf16.msra.mxu1 %v11022_v13  ;;  %v8447_v13 = vld [vmem:[%s13822_s16 + $0xe8] sm:$0xff] }
 0x70d   :  { %10418 = vmatpush3.msra.mxu0 %v6343_v31  ;;  %10419 = vmatprep.mubr.msk.f32.mxu0 %vm11297_vm5, %v11296_v40  ;;  %v11061_v10 = vpack.c.bf16 %v8447_v13, %v8446_v12 }
 0x70e   :  { %10433 = vmatprep.subr.mxu0 %v11296_v40  ;;  %11024 = vmatprep.subr.bf16.mxu1 %v11298_v62 }
 0x710   :  { %10420 = vmatmul.mubr.msk.f32.vlgmr.msra.gmra.mrb[202].mxu0 %vm6345_vm6, %v8423_v20  ;;  %v8448_v20 = vld [vmem:[%s13822_s16 + $0xf0] sm:$0xff] }
 0x711   :  { %10434 = vmatpush3.msra.mxu0 %v6343_v31  ;;  %10435 = vmatprep.mubr.msk.f32.mxu0 %vm11297_vm5, %v11296_v40 }
 0x712   :  { %10449 = vmatprep.subr.mxu0 %v11296_v40 }
 0x714   :  { %10436 = vmatmul.mubr.msk.f32.vlgmr.msra.gmra.mrb[204].mxu0 %vm6345_vm6, %v8430_v0  ;;  %v8449_v0 = vld [vmem:[%s13822_s16 + $0xf8] sm:$0xff] }
 0x715   :  { %10450 = vmatpush3.msra.mxu0 %v6343_v31  ;;  %10451 = vmatprep.mubr.msk.f32.mxu0 %vm11297_vm5, %v11296_v40 }
 0x716   :  { %10465 = vmatprep.subr.mxu0 %v11296_v40 }
 0x718   :  { %10452 = vmatmul.mubr.msk.f32.vlgmr.msra.gmra.mrb[206].mxu0 %vm6345_vm6, %v8437_v25  ;;  %v11064_v25 = vpack.c.bf16 %v8449_v0, %v8448_v20 }
 0x719   :  { %10466 = vmatpush3.msra.mxu0 %v6343_v31  ;;  %10467 = vmatprep.mubr.msk.f32.mxu0 %vm11297_vm5, %v11296_v40 }
 0x71a   :  { %10481 = vmatprep.subr.mxu0 %v11296_v40 }
 0x71c   :  { %10468 = vmatmul.mubr.msk.f32.vlgmr.msra.gmra.mrb[208].mxu0 %vm6345_vm6, %v8444_v32  ;;  %v8453_v32 = vld [vmem:[%s13822_s16 + $0x100] sm:$0xff] }
 0x71d   :  { %10482 = vmatpush3.msra.mxu0 %v6343_v31  ;;  %10483 = vmatprep.mubr.msk.f32.mxu0 %vm11297_vm5, %v11296_v40  ;;  %v8435_v31 = vld [vmem:[%s13822_s16 + $0xb8] sm:$0xff] }
 0x71e   :  { %11072 = vmatprep.subr.bf16.mxu0 %v11298_v62  ;;  %v11052_v53 = vpack.c.bf16 %v8435_v31, %v8434_v41  ;;  %v8461_v41 = vld [vmem:[%s13827_s21] ss:$0 sm:$0xff] }
 0x720   :  { %10484 = vmatmul.mubr.msk.f32.vlgmr.msra.gmra.mrb[210].mxu0 %vm6345_vm6, %v8451_v52  ;;  %v8454_v52 = vld [vmem:[%s13822_s16 + $0x108] sm:$0xff] }
 0x721   :  { %10505 = vmatprep.mubr.msk.f32.mxu0 %vm11297_vm5, %v11296_v40  ;;  %v11067_v60 = vpack.c.bf16 %v8454_v52, %v8453_v32 }
 0x7d7   :  { %v6494_v28 = vpop.f32.mrb[196].mxu0 }
 0x7d8   :  { %10372 = vmatmul.mubr.msk.f32.vlgmr.msra.gmra.mrb[78].mxu1 %vm793_vm4, %v6494_v28  ;;  %v10362_v27 = vpop.f32.mrb[197].mxu0  ;;  %v7787_v28 = vld [vmem:[%s13826_s20 + $0x8] sm:$0xff] }
 0x7d9   :  { %11026 = vmatpush3.bf16.msra.mxu1 %v11025_v55  ;;  %v6415_v61 = vpop.f32.mrb[76].mxu1  ;;  %10382 = vmatprep.mubr.msk.f32.mxu1 %vm11297_vm5, %v11296_v40  ;;  %v8456_v55 = vld [vmem:[%s13822_s16 + $0x118] sm:$0xff]  ;;  %v11073_v27 = vpack.c.bf16 %v7787_v28, %v7786_v16 }
 0x7da   :  { %11027 = vmatprep.subr.bf16.mxu1 %v11298_v62  ;;  %v10357_v63 = vpop.f32.mrb[77].mxu1  ;;  %v11070_v4 = vpack.c.bf16 %v8456_v55, %v8455_v19 }
 0x7db   :  { %v6720_v33 = vpop.f32.mrb[198].mxu0  ;;  %11074 = vmatpush3.bf16.msra.mxu0 %v11073_v27 }
 0x7dc   :  { %v10389_v47 = vpop.f32.mrb[199].mxu0  ;;  %11075 = vmatprep.subr.bf16.mxu0 %v11298_v62 }
 0x7dd   :  { %11029 = vmatpush3.bf16.msra.mxu1 %v11028_v8  ;;  %v7788_v8 = vld [vmem:[%s13826_s20 + $0x10] sm:$0xff] }
 0x7de   :  { %11030 = vmatprep.subr.bf16.mxu1 %v11298_v62 }
 0x7df   :  { %v6874_v26 = vpop.f32.mrb[200].mxu0 }
 0x7e0   :  { %10383 = vmatmul.mubr.msk.f32.vlgmr.msra.gmra.mrb[78].mxu1 %vm793_vm4, %v6415_v61  ;;  %v10405_v51 = vpop.f32.mrb[201].mxu0 }
 0x7e1   :  { %11032 = vmatpush3.bf16.msra.mxu1 %v11031_v58  ;;  %10398 = vmatprep.mubr.msk.f32.mxu1 %vm11297_vm5, %v11296_v40  ;;  %v8458_v58 = vld [vmem:[%s13823_s17] ss:$0 sm:$0xff] }
 0x7e2   :  { %11033 = vmatprep.subr.bf16.mxu1 %v11298_v62 }
 0x7e3   :  { %v7028_v39 = vpop.f32.mrb[202].mxu0 }
 0x7e4   :  { %v10421_v56 = vpop.f32.mrb[203].mxu0 }
 0x7e5   :  { %11035 = vmatpush3.bf16.msra.mxu1 %v11034_v29 }
 0x7e6   :  { %11036 = vmatprep.subr.bf16.mxu1 %v11298_v62 }
 0x7e7   :  { %v7182_v1 = vpop.f32.mrb[204].mxu0 }
 0x7e8   :  { %10399 = vmatmul.mubr.msk.f32.vlgmr.msra.gmra.mrb[78].mxu1 %vm793_vm4, %v6720_v33  ;;  %v10437_v21 = vpop.f32.mrb[205].mxu0 }
 0x7e9   :  { %11038 = vmatpush3.bf16.msra.mxu1 %v11037_v7  ;;  %10414 = vmatprep.mubr.msk.f32.mxu1 %vm11297_vm5, %v11296_v40 }
 0x7ea   :  { %11039 = vmatprep.subr.bf16.mxu1 %v11298_v62 }
 0x7eb   :  { %v7336_v23 = vpop.f32.mrb[206].mxu0 }
 0x7ec   :  { %v10453_v38 = vpop.f32.mrb[207].mxu0 }
 0x7ed   :  { %11041 = vmatpush3.bf16.msra.mxu1 %v11040_v5 }
 0x7ee   :  { %11042 = vmatprep.subr.bf16.mxu1 %v11298_v62 }
 0x7ef   :  { %v7490_v50 = vpop.f32.mrb[208].mxu0 }
 0x7f0   :  { %10415 = vmatmul.mubr.msk.f32.vlgmr.msra.gmra.mrb[78].mxu1 %vm793_vm4, %v6874_v26  ;;  %v10469_v49 = vpop.f32.mrb[209].mxu0 }
 0x7f1   :  { %11044 = vmatpush3.bf16.msra.mxu1 %v11043_v37  ;;  %10430 = vmatprep.mubr.msk.f32.mxu1 %vm11297_vm5, %v11296_v40 }
 0x7f2   :  { %11045 = vmatprep.subr.bf16.mxu1 %v11298_v62 }
 0x7f3   :  { %v7644_v17 = vpop.f32.mrb[210].mxu0 }
 0x7f4   :  { %v10485_v30 = vpop.f32.mrb[211].mxu0 }
 0x7f5   :  { %11047 = vmatpush3.bf16.msra.mxu1 %v11046_v15  ;;  %v8459_v15 = vld [vmem:[%s13824_s18] ss:$0 sm:$0xff]  ;;  %s11271_s18 = scalar_lea.vmem %s7879_s15, 32 }
 0x7f6   :  { %11048 = vmatprep.subr.bf16.mxu1 %v11298_v62  ;;  %p11272_p0 = scmp.ne.s32.totalorder %s7879_s15, %s11271_s18  ;;  %p11277_p2 = scmp.lt.s32.totalorder %s11271_s18, %s11271_s18 }
 0x7f8   :  { %10431 = vmatmul.mubr.msk.f32.vlgmr.msra.gmra.mrb[78].mxu1 %vm793_vm4, %v7028_v39  ;;  %p11278_p3 = por %p11277_p2, %p11276_p1 }
 0x7f9   :  { %11050 = vmatpush3.bf16.msra.mxu1 %v11049_v35  ;;  %10446 = vmatprep.mubr.msk.f32.mxu1 %vm11297_vm5, %v11296_v40 }
 0x7fa   :  { %11051 = vmatprep.subr.bf16.mxu1 %v11298_v62  ;;  %p11279_p4 = pnand %p11278_p3, %p11272_p0 }
 0x7fd   :  { %11053 = vmatpush3.bf16.msra.mxu1 %v11052_v53 }
 0x7fe   :  { %11054 = vmatprep.subr.bf16.mxu1 %v11298_v62 }
 0x800   :  { %10447 = vmatmul.mubr.msk.f32.vlgmr.msra.gmra.mrb[78].mxu1 %vm793_vm4, %v7182_v1 }
 0x801   :  { %11056 = vmatpush3.bf16.msra.mxu1 %v11055_v22  ;;  %10462 = vmatprep.mubr.msk.f32.mxu1 %vm11297_vm5, %v11296_v40 }
 0x802   :  { %11057 = vmatprep.subr.bf16.mxu1 %v11298_v62 }
 0x805   :  { %11059 = vmatpush3.bf16.msra.mxu1 %v11058_v14 }
 0x806   :  { %11060 = vmatprep.subr.bf16.mxu1 %v11298_v62 }
 0x808   :  { %10463 = vmatmul.mubr.msk.f32.vlgmr.msra.gmra.mrb[78].mxu1 %vm793_vm4, %v7336_v23 }
 0x809   :  { %11062 = vmatpush3.bf16.msra.mxu1 %v11061_v10  ;;  %10478 = vmatprep.mubr.msk.f32.mxu1 %vm11297_vm5, %v11296_v40 }
 0x80a   :  { %11063 = vmatprep.subr.bf16.mxu1 %v11298_v62 }
 0x80d   :  { %11065 = vmatpush3.bf16.msra.mxu1 %v11064_v25 }
 0x80e   :  { %11066 = vmatprep.subr.bf16.mxu1 %v11298_v62 }
 0x810   :  { %10479 = vmatmul.mubr.msk.f32.vlgmr.msra.gmra.mrb[78].mxu1 %vm793_vm4, %v7490_v50 }
 0x811   :  { %11068 = vmatpush3.bf16.msra.mxu1 %v11067_v60  ;;  %10494 = vmatprep.mubr.msk.f32.mxu1 %vm11297_vm5, %v11296_v40  ;;  %v7789_v40 = vld [vmem:[%s13826_s20 + $0x18] sm:$0xff] }
 0x812   :  { %11069 = vmatprep.subr.bf16.mxu1 %v11298_v62  ;;  %v11076_v61 = vpack.c.bf16 %v7789_v40, %v7788_v8 }
 0x814   :  { %11077 = vmatpush3.bf16.msra.mxu0 %v11076_v61 }
 0x815   :  { %11071 = vmatpush3.bf16.msra.mxu1 %v11070_v4 }
 0x818   :  { %10495 = vmatmul.mubr.msk.f32.vlgmr.msra.gmra.mrb[78].mxu1 %vm793_vm4, %v7644_v17 }
 0x8eb   :  { %v7722_v54 = vpop.f32.mrb[78].mxu1 }
 0x8ec   :  { %v7731_v24 = vrot.slane %v7722_v54, 2  ;;  %v10496_v63 = vpop.f32.mrb[79].mxu1 }
 0x8ee   :  { %v7733_v33 = vmax.f32 %v7722_v54, %v7731_v24 }
 0x8f0   :  { %v7735_v47 = vrot.slane %v7733_v33, 4 }
 0x8f2   :  { %v7737_v59 = vmax.f32 %v7733_v33, %v7735_v47 }
 0x8f4   :  { %v7744_v18 = vadd.f32 %v8458_v58, %v7737_v59 }
 0x8f6   :  { %v7746_v26 = vsel %vm7745_vm7, %v7744_v18, 0.0  ;;  %v7755_v51 = vmul.f32 %v7744_v18, %v7744_v18 }
 0x8f7   :  { %v7747_v29 = vrot.slane %v7746_v26, 4 }
 0x8f8   :  { %v7756_v48 = vsel %vm7745_vm7, %v7755_v51, 0.0 }
 0x8f9   :  { %v7748_v11 = vadd.f32 %v7747_v29, %v7746_v26  ;;  %v7757_v62 = vrot.slane %v7756_v48, 4 }
 0x8fb   :  { %v7749_v39 = vrot.slane %v7748_v11, 2  ;;  %v7758_v56 = vadd.f32 %v7757_v62, %v7756_v48 }
 0x8fd   :  { %v7750_v7 = vadd.f32 %v7749_v39, %v7748_v11  ;;  %v7759_v2 = vrot.slane %v7758_v56, 2 }
 0x8ff   :  { %v7751_v45 = vrot.slane %v7750_v7, 1  ;;  %v7760_v1 = vadd.f32 %v7759_v2, %v7758_v56 }
 0x901   :  { %v7752_v21 = vadd.f32 %v7751_v45, %v7750_v7  ;;  %v7761_v5 = vrot.slane %v7760_v1, 1 }
 0x903   :  { %v7754_v9 = vmul.f32 0.5, %v7752_v21  ;;  %v7762_v3 = vadd.f32 %v7761_v5, %v7760_v1 }
 0x905   :  { %v7763_v23 = vmul.f32 0.5, %v7762_v3  ;;  %v7764_v38 = vmul.f32 %v7754_v9, %v7754_v9  ;;  %v7767_v50 = vsub.f32 %v7744_v18, %v7754_v9 }
 0x907   :  { %v7765_v37 = vsub.f32 %v7763_v23, %v7764_v38 }
 0x909   :  { %v7766_v44 = vmax.f32 %v7765_v37, 0.0 }
 0x90b   :  { %v7768_v36 = vadd.f32 1e-05, %v7766_v44 }
 0x90d   :  { %11269 = vrsqrt.f32 %v7768_v36 }
 0x917   :  { %v11270_v49 = vpop.eup %11269 }
 0x918   :  { %v7770_v57 = vmul.f32 %v11270_v49, %v7767_v50 }
 0x91a   :  { %v7777_v17 = vmul.f32 %v8459_v15, %v7770_v57 }
 0x91c   :  { %v7784_v30 = vadd.f32 %v8460_v46, %v7777_v17 }
 0x91e   :  { %v7785_v35 = vmax.f32 %v7784_v30, 0.0 }
 0x920   :  { %10506 = vmatmul.mubr.msk.f32.vlgmr.msra.gmra.mrb[212].mxu0 %vm793_vm4, %v7785_v35 }
 0x9f3   :  { %v7866_v31 = vpop.f32.mrb[212].mxu0 }
 0x9f4   :  { %v7867_v53 = vadd.f32 %v8461_v41, %v7866_v31  ;;  %v10507_v34 = vpop.f32.mrb[213].mxu0 }
 0x9f6   :  { %7871 = vst.msk [vmem:[#allocation2] sm:$0x3] %vm7870_vm8, %v7867_v53 }
 0x9f7   :  { %11282 = shalt.err (!%p11279_p4)
}
 0x9f8   :  { %s11283_s24 = scalar_lea.hbm %s13828_s22, 32 }
 0x9f9   :  { %p11284_p5 = scmp.ne.s32.totalorder %s13828_s22, %s11283_s24  ;;  %p11287_p6 = scmp.lt.u32.totalorder %s11283_s24, %s13828_s22 }
 0x9fb   :  { %p11289_p7 = pnand %p11287_p6, %p11284_p5 }
 0x9fd   :  { %11292 = shalt.err (!%p11289_p7)
}
 0x9fe   :  { %7881 = dma.vmem_to_hbm [thread:$0]  %s7879_s15, 32, %s13828_s22, [#allocation3]  }
 0x9ff   :  { %11293 = dma.done.wait [#allocation3], 32  }
 0xa00   :  { %11294 = vsyncadd [#allocation3], 4294967264 }
 0xa01   :  { %7885 = vsyncpa [#allocation3], 1 }

</bundles_post_ra>
